<compile_context>
chip_gen: v5e
topology: v5e:2x2
jax: 0.10.0
libtpu: 0.0.40
codegen_flags: <defaults>
</compile_context>

<pallas_src>
import numpy as np
import jax
import jax.numpy as jnp
from jax.experimental import pallas as pl
from jax.experimental.pallas import tpu as pltpu

EPS = 1e-5
CONV1_STRIDE = 16          # SCModel default stride
NEG_BIG = -1e30            # bias value for padded logit lanes (kills them in softmax)


# ------------------------------ kernel helpers ------------------------------

def _conv_bn_relu(cols, w_ref, b_ref, dst_ref):
    """One K-stacked matmul: concat(shifted taps) @ W, + folded-BN bias, ReLU.

    cols    : list of k (L_out, C_in) f32 tap slices (tap-major, c_in-minor)
    w_ref   : (K*C_in, C_out) bf16 BN-scaled weights, rows tap-major / c_in-minor
    b_ref   : (1, C_out) f32 folded BN bias
    dst_ref : (L_out, C_out) f32 VMEM destination
    """
    a = cols[0] if len(cols) == 1 else jnp.concatenate(cols, axis=-1)
    acc = jnp.dot(a.astype(jnp.bfloat16), w_ref[...],
                  preferred_element_type=jnp.float32)
    dst_ref[...] = jnp.maximum(acc + b_ref[...], 0.0)


def _taps2d(src_ref, l_out, k):
    """Shifted tap slices of a 2-D VMEM ref."""
    return [src_ref[pl.ds(j, l_out), :] for j in range(k)]


def _taps3d(src_ref, e, l_out, k):
    """Shifted tap slices of batch element `e` of a 3-D VMEM ref."""
    return [src_ref[e, pl.ds(j, l_out), :] for j in range(k)]


def _maxpool4(src_ref, l_pool):
    """MaxPool1d(kernel=4, stride=4), floor mode, over the rows of a 2-D VMEM ref."""
    if l_pool == 1:
        parts = [src_ref[pl.ds(q, 1), :] for q in range(4)]
    else:
        parts = [src_ref[pl.ds(q, l_pool, stride=4), :] for q in range(4)]
    return jnp.maximum(jnp.maximum(parts[0], parts[1]),
                       jnp.maximum(parts[2], parts[3]))


def _sc_fused_kernel(fr_ref, w1, b1, w2, b2, w3, b3, w4, b4, wf, bf,
                     out_ref, c1, p1, c2, p2, c3, p3, c4):
    tb = fr_ref.shape[0]                       # batch elements in this grid step
    c_in1 = fr_ref.shape[-1]
    k1 = w1.shape[0] // c_in1                  # conv1 taps (80/16 = 5)
    l1c, l1p = c1.shape[0], p1.shape[0]
    l2c, l2p = c2.shape[0], p2.shape[0]
    l3c, l3p = c3.shape[0], p3.shape[0]
    l4c = c4.shape[0]
    l4p = l4c // 4
    inv_l4p = 1.0 / l4p

    rows = []
    # Unrolled loop over the TB elements of this block.  The scratch buffers are
    # reused; WAR dependencies still let layer i of element e+1 overlap with the
    # later layers of element e.
    for e in range(tb):
        # layer 1: conv(K=80, stride=16) as ONE (L1C,80)@(80,C1) matmul on frames.
        _conv_bn_relu(_taps3d(fr_ref, e, l1c, k1), w1, b1, c1)
        p1[...] = _maxpool4(c1, l1p)
        # layers 2-4: K=3, stride=1 convs as single K-stacked matmuls.
        _conv_bn_relu(_taps2d(p1, l2c, 3), w2, b2, c2)
        p2[...] = _maxpool4(c2, l2p)
        _conv_bn_relu(_taps2d(p2, l3c, 3), w3, b3, c3)
        p3[...] = _maxpool4(c3, l3p)
        _conv_bn_relu(_taps2d(p3, l4c, 3), w4, b4, c4)
        pooled = _maxpool4(c4, l4p)                              # (L4P, C4) f32
        # head: avg over remaining length -> Linear (lane-padded) -> log_softmax.
        feat = jnp.sum(pooled, axis=0, keepdims=True) * inv_l4p  # (1, C4)
        logits = jnp.dot(feat, wf[...],
                         preferred_element_type=jnp.float32) + bf[...]
        z = logits - jnp.max(logits, axis=-1, keepdims=True)
        rows.append(z - jnp.log(jnp.sum(jnp.exp(z), axis=-1, keepdims=True)))

    # Single lane-dense (TB, 128) store per grid step.
    out_ref[...] = rows[0] if tb == 1 else jnp.concatenate(rows, axis=0)


# ------------------------------ Pallas wrapper -------------------------------

def _fold_bn_conv(w, conv_b, gamma, beta, mean, var):
    # Fold inference-mode BatchNorm into the conv weights / bias (trace time).
    # TODO(synk): training-mode BatchNorm (batch statistics) is not implemented.
    scale = gamma / jnp.sqrt(var + EPS)
    c_out, c_in, k = w.shape
    w_flat = jnp.transpose(w, (2, 1, 0)).reshape(k * c_in, c_out) * scale[None, :]
    bias = (conv_b - mean) * scale + beta
    return w_flat.astype(jnp.bfloat16), bias.reshape(1, c_out).astype(jnp.float32)


def _full_spec(arr):
    nd = arr.ndim
    return pl.BlockSpec(arr.shape, lambda *_: (0,) * nd)


def _pick_block_batch(B):
    # Block up to 8 elements per grid step while keeping >=2 grid steps so the
    # parallel grid axis can feed both v7x TensorCores.
    if B <= 1:
        return 1
    return max(1, min(8, B // 2))


@jax.jit
def sc_forward(x, p):
    """x: (B, n_input, L) in PyTorch NCL layout -> (B, 1, n_output) log-probs."""
    B, c_in, L = x.shape
    K1 = p['w1'].shape[2]
    S1 = CONV1_STRIDE
    assert K1 % S1 == 0, "conv1 kernel size must be a multiple of its stride"

    # Static per-layer lengths (PyTorch VALID conv + floor MaxPool semantics).
    L1C = (L - K1) // S1 + 1; L1P = L1C // 4
    L2C = L1P - 2;            L2P = L2C // 4
    L3C = L2P - 2;            L3P = L3C // 4
    L4C = L3P - 2;            L4P = L4C // 4
    assert L4P >= 1, "input sequence too short for SCModel"

    C1 = p['w1'].shape[0]; C2 = p['w2'].shape[0]
    C3 = p['w3'].shape[0]; C4 = p['w4'].shape[0]
    NOUT = p['fcw'].shape[0]
    NPAD = ((NOUT + 127) // 128) * 128          # lane-dense output width

    TB = _pick_block_batch(B)
    nsteps = pl.cdiv(B, TB)
    B_pad = nsteps * TB

    # Frame the waveform into non-overlapping stride-wide frames; the conv1
    # im2col ((L1C, 80)) is built from these frames inside the kernel.
    F = L // S1
    frames = (jnp.transpose(x, (0, 2, 1))[:, :F * S1, :]
              .reshape(B, F, S1 * c_in).astype(jnp.float32))
    if B_pad > B:
        frames = jnp.pad(frames, ((0, B_pad - B), (0, 0), (0, 0)))

    w1, b1 = _fold_bn_conv(p['w1'], p['b1'], p['g1'], p['be1'], p['m1'], p['v1'])
    w2, b2 = _fold_bn_conv(p['w2'], p['b2'], p['g2'], p['be2'], p['m2'], p['v2'])
    w3, b3 = _fold_bn_conv(p['w3'], p['b3'], p['g3'], p['be3'], p['m3'], p['v3'])
    w4, b4 = _fold_bn_conv(p['w4'], p['b4'], p['g4'], p['be4'], p['m4'], p['v4'])
    # FC weight zero-padded to 128 lanes; padded bias lanes get -1e30 so they
    # contribute nothing to max / sum-exp in log_softmax.
    wf = jnp.zeros((C4, NPAD), jnp.float32).at[:, :NOUT].set(p['fcw'].T)
    bf = jnp.full((1, NPAD), NEG_BIG, jnp.float32).at[0, :NOUT].set(p['fcb'])

    out = pl.pallas_call(
        _sc_fused_kernel,
        out_shape=jax.ShapeDtypeStruct((nsteps, TB, NPAD), jnp.float32),
        grid=(nsteps,),
        in_specs=[
            pl.BlockSpec((TB, F, S1 * c_in), lambda b: (b, 0, 0)),
            _full_spec(w1), _full_spec(b1),
            _full_spec(w2), _full_spec(b2),
            _full_spec(w3), _full_spec(b3),
            _full_spec(w4), _full_spec(b4),
            _full_spec(wf), _full_spec(bf),
        ],
        out_specs=pl.BlockSpec((None, TB, NPAD), lambda b: (b, 0, 0)),
        scratch_shapes=[
            pltpu.VMEM((L1C, C1), jnp.float32),   # conv1 out
            pltpu.VMEM((L1P, C1), jnp.float32),   # pool1 out
            pltpu.VMEM((L2C, C2), jnp.float32),   # conv2 out
            pltpu.VMEM((L2P, C2), jnp.float32),   # pool2 out
            pltpu.VMEM((L3C, C3), jnp.float32),   # conv3 out
            pltpu.VMEM((L3P, C3), jnp.float32),   # pool3 out
            pltpu.VMEM((L4C, C4), jnp.float32),   # conv4 out
        ],
        compiler_params=pltpu.CompilerParams(
            dimension_semantics=("parallel",)),
    )(frames, w1, b1, w2, b2, w3, b3, w4, b4, wf, bf)

    out = out.reshape(B_pad, NPAD)[:B, :NOUT]
    return out[:, None, :]                                    # (B, 1, n_output)


# ---------------------------- parameter creation ----------------------------

def init_params(key, n_input=1, n_output=35, n_channel=32):
    ks = jax.random.split(key, 14)

    def conv_init(kw, kb, c_out, c_in, ksz):
        bound = 1.0 / np.sqrt(c_in * ksz)
        w = jax.random.uniform(kw, (c_out, c_in, ksz), jnp.float32, -bound, bound)
        b = jax.random.uniform(kb, (c_out,), jnp.float32, -bound, bound)
        return w, b

    def bn_init(k, c):
        k1, k2, k3, k4 = jax.random.split(k, 4)
        gamma = 1.0 + 0.1 * jax.random.normal(k1, (c,), jnp.float32)
        beta = 0.1 * jax.random.normal(k2, (c,), jnp.float32)
        mean = 0.1 * jax.random.normal(k3, (c,), jnp.float32)
        var = 1.0 + 0.2 * jax.random.uniform(k4, (c,), jnp.float32)
        return gamma, beta, mean, var

    p = {}
    p['w1'], p['b1'] = conv_init(ks[0], ks[1], n_channel, n_input, 80)
    p['g1'], p['be1'], p['m1'], p['v1'] = bn_init(ks[2], n_channel)
    p['w2'], p['b2'] = conv_init(ks[3], ks[4], n_channel, n_channel, 3)
    p['g2'], p['be2'], p['m2'], p['v2'] = bn_init(ks[5], n_channel)
    p['w3'], p['b3'] = conv_init(ks[6], ks[7], 2 * n_channel, n_channel, 3)
    p['g3'], p['be3'], p['m3'], p['v3'] = bn_init(ks[8], 2 * n_channel)
    p['w4'], p['b4'] = conv_init(ks[9], ks[10], 2 * n_channel, 2 * n_channel, 3)
    p['g4'], p['be4'], p['m4'], p['v4'] = bn_init(ks[11], 2 * n_channel)
    bound = 1.0 / np.sqrt(2 * n_channel)
    p['fcw'] = jax.random.uniform(ks[12], (n_output, 2 * n_channel),
                                  jnp.float32, -bound, bound)
    p['fcb'] = jax.random.uniform(ks[13], (n_output,), jnp.float32, -bound, bound)
    return p


# ----------------------------- pure-JAX reference ---------------------------

def reference_forward(x, p):
    hp = jax.lax.Precision.HIGHEST

    def conv(h, w, b, stride):
        y = jax.lax.conv_general_dilated(
            h, w, (stride,), 'VALID',
            dimension_numbers=('NCH', 'OIH', 'NCH'), precision=hp)
        return y + b[None, :, None]

    def bnrelu(h, g, be, m, v):
        s = g / jnp.sqrt(v + EPS)
        return jnp.maximum((h - m[None, :, None]) * s[None, :, None]
                           + be[None, :, None], 0.0)

    def mp4(h):
        B, C, L = h.shape
        Lp = L // 4
        return jnp.max(h[:, :, :Lp * 4].reshape(B, C, Lp, 4), axis=-1)

    h = mp4(bnrelu(conv(x, p['w1'], p['b1'], 16), p['g1'], p['be1'], p['m1'], p['v1']))
    h = mp4(bnrelu(conv(h, p['w2'], p['b2'], 1), p['g2'], p['be2'], p['m2'], p['v2']))
    h = mp4(bnrelu(conv(h, p['w3'], p['b3'], 1), p['g3'], p['be3'], p['m3'], p['v3']))
    h = mp4(bnrelu(conv(h, p['w4'], p['b4'], 1), p['g4'], p['be4'], p['m4'], p['v4']))
    h = jnp.mean(h, axis=-1)                                   # (B, 2*n_channel)
    logits = jnp.dot(h, p['fcw'].T, precision=hp) + p['fcb']
    return jax.nn.log_softmax(logits, axis=-1)[:, None, :]


# ----------------------------------- main ------------------------------------

if __name__ == "__main__":
    key = jax.random.PRNGKey(0)
    params = init_params(key)

    # Tolerances cover the bf16 matmul operands (f32 accumulation / epilogue).
    ATOL = RTOL = 2e-2

    # Case 1: B=2, L=8000 -> TB=1, grid=(2,), final feature length 1.
    x1 = jax.random.normal(jax.random.fold_in(key, 123), (2, 1, 8000),
                           dtype=jnp.float32)
    out1 = jax.block_until_ready(sc_forward(x1, params))
    ref1 = jax.block_until_ready(reference_forward(x1, params))
    assert out1.shape == (2, 1, 35), out1.shape
    np.testing.assert_allclose(np.asarray(out1), np.asarray(ref1),
                               atol=ATOL, rtol=RTOL)
    assert np.allclose(np.exp(np.asarray(out1)).sum(-1), 1.0, atol=1e-3)

    # Case 2: B=5 -> TB=2 elements per grid step, grid=(3,), one padded element.
    x2 = jax.random.normal(jax.random.fold_in(key, 7), (5, 1, 8000),
                           dtype=jnp.float32)
    out2 = jax.block_until_ready(sc_forward(x2, params))
    ref2 = jax.block_until_ready(reference_forward(x2, params))
    assert out2.shape == (5, 1, 35), out2.shape
    np.testing.assert_allclose(np.asarray(out2), np.asarray(ref2),
                               atol=ATOL, rtol=RTOL)
    assert np.allclose(np.exp(np.asarray(out2)).sum(-1), 1.0, atol=1e-3)

    print("KERNEL_OK")
</pallas_src>

<mosaic_0001>
module attributes {stable_mosaic.version = 11 : i64} {
  func.func @_sc_fused_kernel(%arg0: i32, %arg1: memref<1x500x16xf32, #tpu.memory_space<vmem>>, %arg2: memref<80x32xbf16, #tpu.memory_space<vmem>>, %arg3: memref<1x32xf32, #tpu.memory_space<vmem>>, %arg4: memref<96x32xbf16, #tpu.memory_space<vmem>>, %arg5: memref<1x32xf32, #tpu.memory_space<vmem>>, %arg6: memref<96x64xbf16, #tpu.memory_space<vmem>>, %arg7: memref<1x64xf32, #tpu.memory_space<vmem>>, %arg8: memref<192x64xbf16, #tpu.memory_space<vmem>>, %arg9: memref<1x64xf32, #tpu.memory_space<vmem>>, %arg10: memref<64x128xf32, #tpu.memory_space<vmem>>, %arg11: memref<1x128xf32, #tpu.memory_space<vmem>>, %arg12: memref<1x1x128xf32, #tpu.memory_space<vmem>>, %arg13: memref<496x32xf32, #tpu.memory_space<vmem>>, %arg14: memref<124x32xf32, #tpu.memory_space<vmem>>, %arg15: memref<122x32xf32, #tpu.memory_space<vmem>>, %arg16: memref<30x32xf32, #tpu.memory_space<vmem>>, %arg17: memref<28x64xf32, #tpu.memory_space<vmem>>, %arg18: memref<7x64xf32, #tpu.memory_space<vmem>>, %arg19: memref<5x64xf32, #tpu.memory_space<vmem>>) attributes {dimension_semantics = [#tpu.dimension_semantics<parallel>], iteration_bounds = array<i64: 2>, scalar_prefetch = 0 : i64, scratch_operands = 7 : i64, tpu.core_type = #tpu.core_type<tc>, window_params = [{transform_indices = @transform_0, window_bounds = array<i64: 1, 500, 16>}, {pipeline_mode = #tpu.pipeline_mode<synchronous>, transform_indices = @transform_1, window_bounds = array<i64: 80, 32>}, {pipeline_mode = #tpu.pipeline_mode<synchronous>, transform_indices = @transform_2, window_bounds = array<i64: 1, 32>}, {pipeline_mode = #tpu.pipeline_mode<synchronous>, transform_indices = @transform_3, window_bounds = array<i64: 96, 32>}, {pipeline_mode = #tpu.pipeline_mode<synchronous>, transform_indices = @transform_4, window_bounds = array<i64: 1, 32>}, {pipeline_mode = #tpu.pipeline_mode<synchronous>, transform_indices = @transform_5, window_bounds = array<i64: 96, 64>}, {pipeline_mode = #tpu.pipeline_mode<synchronous>, transform_indices = @transform_6, window_bounds = array<i64: 1, 64>}, {pipeline_mode = #tpu.pipeline_mode<synchronous>, transform_indices = @transform_7, window_bounds = array<i64: 192, 64>}, {pipeline_mode = #tpu.pipeline_mode<synchronous>, transform_indices = @transform_8, window_bounds = array<i64: 1, 64>}, {pipeline_mode = #tpu.pipeline_mode<synchronous>, transform_indices = @transform_9, window_bounds = array<i64: 64, 128>}, {pipeline_mode = #tpu.pipeline_mode<synchronous>, transform_indices = @transform_10, window_bounds = array<i64: 1, 128>}, {transform_indices = @transform_11, window_bounds = array<i64: 1, 1, 128>}]} {
    %c0 = arith.constant 0 : index
    %c0_0 = arith.constant 0 : index
    %c0_1 = arith.constant 0 : index
    %0 = vector.load %arg1[%c0, %c0_0, %c0_1] : memref<1x500x16xf32, #tpu.memory_space<vmem>>, vector<1x496x16xf32>
    %1 = vector.shape_cast %0 : vector<1x496x16xf32> to vector<496x16xf32>
    %c0_2 = arith.constant 0 : index
    %c1 = arith.constant 1 : index
    %c0_3 = arith.constant 0 : index
    %2 = vector.load %arg1[%c0_2, %c1, %c0_3] : memref<1x500x16xf32, #tpu.memory_space<vmem>>, vector<1x496x16xf32>
    %3 = vector.shape_cast %2 : vector<1x496x16xf32> to vector<496x16xf32>
    %c0_4 = arith.constant 0 : index
    %c2 = arith.constant 2 : index
    %c0_5 = arith.constant 0 : index
    %4 = vector.load %arg1[%c0_4, %c2, %c0_5] : memref<1x500x16xf32, #tpu.memory_space<vmem>>, vector<1x496x16xf32>
    %5 = vector.shape_cast %4 : vector<1x496x16xf32> to vector<496x16xf32>
    %c0_6 = arith.constant 0 : index
    %c3 = arith.constant 3 : index
    %c0_7 = arith.constant 0 : index
    %6 = vector.load %arg1[%c0_6, %c3, %c0_7] : memref<1x500x16xf32, #tpu.memory_space<vmem>>, vector<1x496x16xf32>
    %7 = vector.shape_cast %6 : vector<1x496x16xf32> to vector<496x16xf32>
    %c0_8 = arith.constant 0 : index
    %c4 = arith.constant 4 : index
    %c0_9 = arith.constant 0 : index
    %8 = vector.load %arg1[%c0_8, %c4, %c0_9] : memref<1x500x16xf32, #tpu.memory_space<vmem>>, vector<1x496x16xf32>
    %9 = vector.shape_cast %8 : vector<1x496x16xf32> to vector<496x16xf32>
    %10 = tpu.concatenate %1, %3, %5, %7, %9 in 1 : vector<496x16xf32>, vector<496x16xf32>, vector<496x16xf32>, vector<496x16xf32>, vector<496x16xf32> -> vector<496x80xf32>
    %11 = arith.truncf %10 : vector<496x80xf32> to vector<496x80xbf16>
    %c0_10 = arith.constant 0 : index
    %c0_11 = arith.constant 0 : index
    %12 = vector.load %arg2[%c0_10, %c0_11] : memref<80x32xbf16, #tpu.memory_space<vmem>>, vector<80x32xbf16>
    %cst = arith.constant dense<0.000000e+00> : vector<496x32xf32>
    %13 = tpu.matmul %11, %12, %cst {dimension_numbers = #tpu.dot_dimension_numbers<[1], [0], [0], [1], [0, 0, 1, 1], [], []>} : vector<496x80xbf16>, vector<80x32xbf16>, vector<496x32xf32> -> vector<496x32xf32>
    %c0_12 = arith.constant 0 : index
    %c0_13 = arith.constant 0 : index
    %14 = vector.load %arg3[%c0_12, %c0_13] : memref<1x32xf32, #tpu.memory_space<vmem>>, vector<1x32xf32>
    %15 = vector.broadcast %14 : vector<1x32xf32> to vector<496x32xf32>
    %16 = arith.addf %13, %15 : vector<496x32xf32>
    %cst_14 = arith.constant 0.000000e+00 : f32
    %17 = vector.broadcast %cst_14 : f32 to vector<496x32xf32>
    %18 = arith.maximumf %16, %17 : vector<496x32xf32>
    %c0_15 = arith.constant 0 : index
    %c0_16 = arith.constant 0 : index
    %19 = vector.load %arg13[%c0_15, %c0_16] : memref<496x32xf32, #tpu.memory_space<vmem>>, vector<496x32xf32>
    tpu.vector_store %arg13[%c0_15, %c0_16], %18 {strides = array<i32>} : memref<496x32xf32, #tpu.memory_space<vmem>>, vector<496x32xf32>,
    %c0_17 = arith.constant 0 : index
    %c0_18 = arith.constant 0 : index
    %20 = tpu.strided_load %arg13[%c0_17, %c0_18] {strides = array<i32: 4, 1>} : memref<496x32xf32, #tpu.memory_space<vmem>>, vector<124x32xf32>
    %c1_19 = arith.constant 1 : index
    %c0_20 = arith.constant 0 : index
    %21 = tpu.strided_load %arg13[%c1_19, %c0_20] {strides = array<i32: 4, 1>} : memref<496x32xf32, #tpu.memory_space<vmem>>, vector<124x32xf32>
    %c2_21 = arith.constant 2 : index
    %c0_22 = arith.constant 0 : index
    %22 = tpu.strided_load %arg13[%c2_21, %c0_22] {strides = array<i32: 4, 1>} : memref<496x32xf32, #tpu.memory_space<vmem>>, vector<124x32xf32>
    %c3_23 = arith.constant 3 : index
    %c0_24 = arith.constant 0 : index
    %23 = tpu.strided_load %arg13[%c3_23, %c0_24] {strides = array<i32: 4, 1>} : memref<496x32xf32, #tpu.memory_space<vmem>>, vector<124x32xf32>
    %24 = arith.maximumf %20, %21 : vector<124x32xf32>
    %25 = arith.maximumf %22, %23 : vector<124x32xf32>
    %26 = arith.maximumf %24, %25 : vector<124x32xf32>
    %c0_25 = arith.constant 0 : index
    %c0_26 = arith.constant 0 : index
    %27 = vector.load %arg14[%c0_25, %c0_26] : memref<124x32xf32, #tpu.memory_space<vmem>>, vector<124x32xf32>
    tpu.vector_store %arg14[%c0_25, %c0_26], %26 {strides = array<i32>} : memref<124x32xf32, #tpu.memory_space<vmem>>, vector<124x32xf32>,
    %c0_27 = arith.constant 0 : index
    %c0_28 = arith.constant 0 : index
    %28 = vector.load %arg14[%c0_27, %c0_28] : memref<124x32xf32, #tpu.memory_space<vmem>>, vector<122x32xf32>
    %c1_29 = arith.constant 1 : index
    %c0_30 = arith.constant 0 : index
    %29 = vector.load %arg14[%c1_29, %c0_30] : memref<124x32xf32, #tpu.memory_space<vmem>>, vector<122x32xf32>
    %c2_31 = arith.constant 2 : index
    %c0_32 = arith.constant 0 : index
    %30 = vector.load %arg14[%c2_31, %c0_32] : memref<124x32xf32, #tpu.memory_space<vmem>>, vector<122x32xf32>
    %31 = tpu.concatenate %28, %29, %30 in 1 : vector<122x32xf32>, vector<122x32xf32>, vector<122x32xf32> -> vector<122x96xf32>
    %32 = arith.truncf %31 : vector<122x96xf32> to vector<122x96xbf16>
    %c0_33 = arith.constant 0 : index
    %c0_34 = arith.constant 0 : index
    %33 = vector.load %arg4[%c0_33, %c0_34] : memref<96x32xbf16, #tpu.memory_space<vmem>>, vector<96x32xbf16>
    %cst_35 = arith.constant dense<0.000000e+00> : vector<122x32xf32>
    %34 = tpu.matmul %32, %33, %cst_35 {dimension_numbers = #tpu.dot_dimension_numbers<[1], [0], [0], [1], [0, 0, 1, 1], [], []>} : vector<122x96xbf16>, vector<96x32xbf16>, vector<122x32xf32> -> vector<122x32xf32>
    %c0_36 = arith.constant 0 : index
    %c0_37 = arith.constant 0 : index
    %35 = vector.load %arg5[%c0_36, %c0_37] : memref<1x32xf32, #tpu.memory_space<vmem>>, vector<1x32xf32>
    %36 = vector.broadcast %35 : vector<1x32xf32> to vector<122x32xf32>
    %37 = arith.addf %34, %36 : vector<122x32xf32>
    %cst_38 = arith.constant 0.000000e+00 : f32
    %38 = vector.broadcast %cst_38 : f32 to vector<122x32xf32>
    %39 = arith.maximumf %37, %38 : vector<122x32xf32>
    %c0_39 = arith.constant 0 : index
    %c0_40 = arith.constant 0 : index
    %40 = vector.load %arg15[%c0_39, %c0_40] : memref<122x32xf32, #tpu.memory_space<vmem>>, vector<122x32xf32>
    tpu.vector_store %arg15[%c0_39, %c0_40], %39 {strides = array<i32>} : memref<122x32xf32, #tpu.memory_space<vmem>>, vector<122x32xf32>,
    %c0_41 = arith.constant 0 : index
    %c0_42 = arith.constant 0 : index
    %41 = tpu.strided_load %arg15[%c0_41, %c0_42] {strides = array<i32: 4, 1>} : memref<122x32xf32, #tpu.memory_space<vmem>>, vector<30x32xf32>
    %c1_43 = arith.constant 1 : index
    %c0_44 = arith.constant 0 : index
    %42 = tpu.strided_load %arg15[%c1_43, %c0_44] {strides = array<i32: 4, 1>} : memref<122x32xf32, #tpu.memory_space<vmem>>, vector<30x32xf32>
    %c2_45 = arith.constant 2 : index
    %c0_46 = arith.constant 0 : index
    %43 = tpu.strided_load %arg15[%c2_45, %c0_46] {strides = array<i32: 4, 1>} : memref<122x32xf32, #tpu.memory_space<vmem>>, vector<30x32xf32>
    %c3_47 = arith.constant 3 : index
    %c0_48 = arith.constant 0 : index
    %44 = tpu.strided_load %arg15[%c3_47, %c0_48] {strides = array<i32: 4, 1>} : memref<122x32xf32, #tpu.memory_space<vmem>>, vector<30x32xf32>
    %45 = arith.maximumf %41, %42 : vector<30x32xf32>
    %46 = arith.maximumf %43, %44 : vector<30x32xf32>
    %47 = arith.maximumf %45, %46 : vector<30x32xf32>
    %c0_49 = arith.constant 0 : index
    %c0_50 = arith.constant 0 : index
    %48 = vector.load %arg16[%c0_49, %c0_50] : memref<30x32xf32, #tpu.memory_space<vmem>>, vector<30x32xf32>
    tpu.vector_store %arg16[%c0_49, %c0_50], %47 {strides = array<i32>} : memref<30x32xf32, #tpu.memory_space<vmem>>, vector<30x32xf32>,
    %c0_51 = arith.constant 0 : index
    %c0_52 = arith.constant 0 : index
    %49 = vector.load %arg16[%c0_51, %c0_52] : memref<30x32xf32, #tpu.memory_space<vmem>>, vector<28x32xf32>
    %c1_53 = arith.constant 1 : index
    %c0_54 = arith.constant 0 : index
    %50 = vector.load %arg16[%c1_53, %c0_54] : memref<30x32xf32, #tpu.memory_space<vmem>>, vector<28x32xf32>
    %c2_55 = arith.constant 2 : index
    %c0_56 = arith.constant 0 : index
    %51 = vector.load %arg16[%c2_55, %c0_56] : memref<30x32xf32, #tpu.memory_space<vmem>>, vector<28x32xf32>
    %52 = tpu.concatenate %49, %50, %51 in 1 : vector<28x32xf32>, vector<28x32xf32>, vector<28x32xf32> -> vector<28x96xf32>
    %53 = arith.truncf %52 : vector<28x96xf32> to vector<28x96xbf16>
    %c0_57 = arith.constant 0 : index
    %c0_58 = arith.constant 0 : index
    %54 = vector.load %arg6[%c0_57, %c0_58] : memref<96x64xbf16, #tpu.memory_space<vmem>>, vector<96x64xbf16>
    %cst_59 = arith.constant dense<0.000000e+00> : vector<28x64xf32>
    %55 = tpu.matmul %53, %54, %cst_59 {dimension_numbers = #tpu.dot_dimension_numbers<[1], [0], [0], [1], [0, 0, 1, 1], [], []>} : vector<28x96xbf16>, vector<96x64xbf16>, vector<28x64xf32> -> vector<28x64xf32>
    %c0_60 = arith.constant 0 : index
    %c0_61 = arith.constant 0 : index
    %56 = vector.load %arg7[%c0_60, %c0_61] : memref<1x64xf32, #tpu.memory_space<vmem>>, vector<1x64xf32>
    %57 = vector.broadcast %56 : vector<1x64xf32> to vector<28x64xf32>
    %58 = arith.addf %55, %57 : vector<28x64xf32>
    %cst_62 = arith.constant 0.000000e+00 : f32
    %59 = vector.broadcast %cst_62 : f32 to vector<28x64xf32>
    %60 = arith.maximumf %58, %59 : vector<28x64xf32>
    %c0_63 = arith.constant 0 : index
    %c0_64 = arith.constant 0 : index
    %61 = vector.load %arg17[%c0_63, %c0_64] : memref<28x64xf32, #tpu.memory_space<vmem>>, vector<28x64xf32>
    tpu.vector_store %arg17[%c0_63, %c0_64], %60 {strides = array<i32>} : memref<28x64xf32, #tpu.memory_space<vmem>>, vector<28x64xf32>,
    %c0_65 = arith.constant 0 : index
    %c0_66 = arith.constant 0 : index
    %62 = tpu.strided_load %arg17[%c0_65, %c0_66] {strides = array<i32: 4, 1>} : memref<28x64xf32, #tpu.memory_space<vmem>>, vector<7x64xf32>
    %c1_67 = arith.constant 1 : index
    %c0_68 = arith.constant 0 : index
    %63 = tpu.strided_load %arg17[%c1_67, %c0_68] {strides = array<i32: 4, 1>} : memref<28x64xf32, #tpu.memory_space<vmem>>, vector<7x64xf32>
    %c2_69 = arith.constant 2 : index
    %c0_70 = arith.constant 0 : index
    %64 = tpu.strided_load %arg17[%c2_69, %c0_70] {strides = array<i32: 4, 1>} : memref<28x64xf32, #tpu.memory_space<vmem>>, vector<7x64xf32>
    %c3_71 = arith.constant 3 : index
    %c0_72 = arith.constant 0 : index
    %65 = tpu.strided_load %arg17[%c3_71, %c0_72] {strides = array<i32: 4, 1>} : memref<28x64xf32, #tpu.memory_space<vmem>>, vector<7x64xf32>
    %66 = arith.maximumf %62, %63 : vector<7x64xf32>
    %67 = arith.maximumf %64, %65 : vector<7x64xf32>
    %68 = arith.maximumf %66, %67 : vector<7x64xf32>
    %c0_73 = arith.constant 0 : index
    %c0_74 = arith.constant 0 : index
    %69 = vector.load %arg18[%c0_73, %c0_74] : memref<7x64xf32, #tpu.memory_space<vmem>>, vector<7x64xf32>
    tpu.vector_store %arg18[%c0_73, %c0_74], %68 {strides = array<i32>} : memref<7x64xf32, #tpu.memory_space<vmem>>, vector<7x64xf32>,
    %c0_75 = arith.constant 0 : index
    %c0_76 = arith.constant 0 : index
    %70 = vector.load %arg18[%c0_75, %c0_76] : memref<7x64xf32, #tpu.memory_space<vmem>>, vector<5x64xf32>
    %c1_77 = arith.constant 1 : index
    %c0_78 = arith.constant 0 : index
    %71 = vector.load %arg18[%c1_77, %c0_78] : memref<7x64xf32, #tpu.memory_space<vmem>>, vector<5x64xf32>
    %c2_79 = arith.constant 2 : index
    %c0_80 = arith.constant 0 : index
    %72 = vector.load %arg18[%c2_79, %c0_80] : memref<7x64xf32, #tpu.memory_space<vmem>>, vector<5x64xf32>
    %73 = tpu.concatenate %70, %71, %72 in 1 : vector<5x64xf32>, vector<5x64xf32>, vector<5x64xf32> -> vector<5x192xf32>
    %74 = arith.truncf %73 : vector<5x192xf32> to vector<5x192xbf16>
    %c0_81 = arith.constant 0 : index
    %c0_82 = arith.constant 0 : index
    %75 = vector.load %arg8[%c0_81, %c0_82] : memref<192x64xbf16, #tpu.memory_space<vmem>>, vector<192x64xbf16>
    %cst_83 = arith.constant dense<0.000000e+00> : vector<5x64xf32>
    %76 = tpu.matmul %74, %75, %cst_83 {dimension_numbers = #tpu.dot_dimension_numbers<[1], [0], [0], [1], [0, 0, 1, 1], [], []>} : vector<5x192xbf16>, vector<192x64xbf16>, vector<5x64xf32> -> vector<5x64xf32>
    %c0_84 = arith.constant 0 : index
    %c0_85 = arith.constant 0 : index
    %77 = vector.load %arg9[%c0_84, %c0_85] : memref<1x64xf32, #tpu.memory_space<vmem>>, vector<1x64xf32>
    %78 = vector.broadcast %77 : vector<1x64xf32> to vector<5x64xf32>
    %79 = arith.addf %76, %78 : vector<5x64xf32>
    %cst_86 = arith.constant 0.000000e+00 : f32
    %80 = vector.broadcast %cst_86 : f32 to vector<5x64xf32>
    %81 = arith.maximumf %79, %80 : vector<5x64xf32>
    %c0_87 = arith.constant 0 : index
    %c0_88 = arith.constant 0 : index
    %82 = vector.load %arg19[%c0_87, %c0_88] : memref<5x64xf32, #tpu.memory_space<vmem>>, vector<5x64xf32>
    tpu.vector_store %arg19[%c0_87, %c0_88], %81 {strides = array<i32>} : memref<5x64xf32, #tpu.memory_space<vmem>>, vector<5x64xf32>,
    %c0_89 = arith.constant 0 : index
    %c0_90 = arith.constant 0 : index
    %83 = vector.load %arg19[%c0_89, %c0_90] : memref<5x64xf32, #tpu.memory_space<vmem>>, vector<1x64xf32>
    %c1_91 = arith.constant 1 : index
    %c0_92 = arith.constant 0 : index
    %84 = vector.load %arg19[%c1_91, %c0_92] : memref<5x64xf32, #tpu.memory_space<vmem>>, vector<1x64xf32>
    %c2_93 = arith.constant 2 : index
    %c0_94 = arith.constant 0 : index
    %85 = vector.load %arg19[%c2_93, %c0_94] : memref<5x64xf32, #tpu.memory_space<vmem>>, vector<1x64xf32>
    %c3_95 = arith.constant 3 : index
    %c0_96 = arith.constant 0 : index
    %86 = vector.load %arg19[%c3_95, %c0_96] : memref<5x64xf32, #tpu.memory_space<vmem>>, vector<1x64xf32>
    %87 = arith.maximumf %83, %84 : vector<1x64xf32>
    %88 = arith.maximumf %85, %86 : vector<1x64xf32>
    %89 = arith.maximumf %87, %88 : vector<1x64xf32>
    %cst_97 = arith.constant dense<0.000000e+00> : vector<64xf32>
    %90 = vector.multi_reduction <add>, %89, %cst_97 [0] : vector<1x64xf32> to vector<64xf32>
    %91 = vector.shape_cast %90 : vector<64xf32> to vector<1x64xf32>
    %cst_98 = arith.constant 1.000000e+00 : f32
    %92 = vector.broadcast %cst_98 : f32 to vector<1x64xf32>
    %93 = arith.mulf %91, %92 : vector<1x64xf32>
    %c0_99 = arith.constant 0 : index
    %c0_100 = arith.constant 0 : index
    %94 = vector.load %arg10[%c0_99, %c0_100] : memref<64x128xf32, #tpu.memory_space<vmem>>, vector<64x128xf32>
    %cst_101 = arith.constant dense<0.000000e+00> : vector<1x128xf32>
    %95 = tpu.matmul %93, %94, %cst_101 {dimension_numbers = #tpu.dot_dimension_numbers<[1], [0], [0], [1], [0, 0, 1, 1], [], []>} : vector<1x64xf32>, vector<64x128xf32>, vector<1x128xf32> -> vector<1x128xf32>
    %c0_102 = arith.constant 0 : index
    %c0_103 = arith.constant 0 : index
    %96 = vector.load %arg11[%c0_102, %c0_103] : memref<1x128xf32, #tpu.memory_space<vmem>>, vector<1x128xf32>
    %97 = arith.addf %95, %96 : vector<1x128xf32>
    %cst_104 = arith.constant dense<0xFF800000> : vector<1xf32>
    %98 = vector.multi_reduction <maximumf>, %97, %cst_104 [1] : vector<1x128xf32> to vector<1xf32>
    %99 = vector.shape_cast %98 : vector<1xf32> to vector<1x1xf32>
    %100 = vector.broadcast %99 : vector<1x1xf32> to vector<1x128xf32>
    %101 = arith.subf %97, %100 : vector<1x128xf32>
    %102 = math.exp %101 : vector<1x128xf32>
    %cst_105 = arith.constant dense<0.000000e+00> : vector<1xf32>
    %103 = vector.multi_reduction <add>, %102, %cst_105 [1] : vector<1x128xf32> to vector<1xf32>
    %104 = vector.shape_cast %103 : vector<1xf32> to vector<1x1xf32>
    %105 = math.log %104 : vector<1x1xf32>
    %106 = vector.broadcast %105 : vector<1x1xf32> to vector<1x128xf32>
    %107 = arith.subf %101, %106 : vector<1x128xf32>
    %c0_106 = arith.constant 0 : index
    %c0_107 = arith.constant 0 : index
    %c0_108 = arith.constant 0 : index
    %108 = vector.load %arg12[%c0_106, %c0_107, %c0_108] : memref<1x1x128xf32, #tpu.memory_space<vmem>>, vector<1x1x128xf32>
    %109 = vector.shape_cast %108 : vector<1x1x128xf32> to vector<1x128xf32>
    %110 = vector.shape_cast %107 : vector<1x128xf32> to vector<1x1x128xf32>
    tpu.vector_store %arg12[%c0_106, %c0_107, %c0_108], %110 {strides = array<i32>} : memref<1x1x128xf32, #tpu.memory_space<vmem>>, vector<1x1x128xf32>,
    return
  }
  func.func @transform_0(%arg0: i32) -> (i32, i32, i32) {
    %c0_i32 = arith.constant 0 : i32
    %c0_i32_0 = arith.constant 0 : i32
    %c0_i32_1 = arith.constant 0 : i32
    return %arg0, %c0_i32, %c0_i32_0 : i32, i32, i32
  }
  func.func @transform_1(%arg0: i32) -> (i32, i32) {
    %c0_i32 = arith.constant 0 : i32
    %c0_i32_0 = arith.constant 0 : i32
    %c0_i32_1 = arith.constant 0 : i32
    return %c0_i32, %c0_i32_0 : i32, i32
  }
  func.func @transform_2(%arg0: i32) -> (i32, i32) {
    %c0_i32 = arith.constant 0 : i32
    %c0_i32_0 = arith.constant 0 : i32
    %c0_i32_1 = arith.constant 0 : i32
    return %c0_i32, %c0_i32_0 : i32, i32
  }
  func.func @transform_3(%arg0: i32) -> (i32, i32) {
    %c0_i32 = arith.constant 0 : i32
    %c0_i32_0 = arith.constant 0 : i32
    %c0_i32_1 = arith.constant 0 : i32
    return %c0_i32, %c0_i32_0 : i32, i32
  }
  func.func @transform_4(%arg0: i32) -> (i32, i32) {
    %c0_i32 = arith.constant 0 : i32
    %c0_i32_0 = arith.constant 0 : i32
    %c0_i32_1 = arith.constant 0 : i32
    return %c0_i32, %c0_i32_0 : i32, i32
  }
  func.func @transform_5(%arg0: i32) -> (i32, i32) {
    %c0_i32 = arith.constant 0 : i32
    %c0_i32_0 = arith.constant 0 : i32
    %c0_i32_1 = arith.constant 0 : i32
    return %c0_i32, %c0_i32_0 : i32, i32
  }
  func.func @transform_6(%arg0: i32) -> (i32, i32) {
    %c0_i32 = arith.constant 0 : i32
    %c0_i32_0 = arith.constant 0 : i32
    %c0_i32_1 = arith.constant 0 : i32
    return %c0_i32, %c0_i32_0 : i32, i32
  }
  func.func @transform_7(%arg0: i32) -> (i32, i32) {
    %c0_i32 = arith.constant 0 : i32
    %c0_i32_0 = arith.constant 0 : i32
    %c0_i32_1 = arith.constant 0 : i32
    return %c0_i32, %c0_i32_0 : i32, i32
  }
  func.func @transform_8(%arg0: i32) -> (i32, i32) {
    %c0_i32 = arith.constant 0 : i32
    %c0_i32_0 = arith.constant 0 : i32
    %c0_i32_1 = arith.constant 0 : i32
    return %c0_i32, %c0_i32_0 : i32, i32
  }
  func.func @transform_9(%arg0: i32) -> (i32, i32) {
    %c0_i32 = arith.constant 0 : i32
    %c0_i32_0 = arith.constant 0 : i32
    %c0_i32_1 = arith.constant 0 : i32
    return %c0_i32, %c0_i32_0 : i32, i32
  }
  func.func @transform_10(%arg0: i32) -> (i32, i32) {
    %c0_i32 = arith.constant 0 : i32
    %c0_i32_0 = arith.constant 0 : i32
    %c0_i32_1 = arith.constant 0 : i32
    return %c0_i32, %c0_i32_0 : i32, i32
  }
  func.func @transform_11(%arg0: i32) -> (i32, i32, i32) {
    %c0_i32 = arith.constant 0 : i32
    %c0_i32_0 = arith.constant 0 : i32
    %c0_i32_1 = arith.constant 0 : i32
    return %arg0, %c0_i32, %c0_i32_0 : i32, i32, i32
  }
}

</mosaic_0001>

<bundles_post_ra>
// kernel: sc_forward.1
= control target key start
LH: loop header
LB: loop body
LE: loop exit
PB: predicated region body
PF: predicated region fallthrough
CT: control target
= control target key end

     0   :  { %s5903_s0 = inlined_call_operand.vmem [shape: f32[2,500,16], index: 0, kind: input, shape index: {}]   ;;  %s5904_s1 = inlined_call_operand.vmem [shape: bf16[80,32], index: 1, kind: input, shape index: {}]   ;;  %s5905_s2 = inlined_call_operand.vmem [shape: f32[1,32], index: 2, kind: input, shape index: {}]   ;;  %s5906_s3 = inlined_call_operand.vmem [shape: bf16[96,32], index: 3, kind: input, shape index: {}]   ;;  %s5907_s4 = inlined_call_operand.vmem [shape: f32[1,32], index: 4, kind: input, shape index: {}]   ;;  %s5908_s5 = inlined_call_operand.vmem [shape: bf16[96,64], index: 5, kind: input, shape index: {}]   ;;  %s5909_s6 = inlined_call_operand.vmem [shape: f32[1,64], index: 6, kind: input, shape index: {}]   ;;  %s5910_s7 = inlined_call_operand.vmem [shape: bf16[192,64], index: 7, kind: input, shape index: {}]   ;;  %s5911_s8 = inlined_call_operand.vmem [shape: f32[1,64], index: 8, kind: input, shape index: {}]   ;;  %s5912_s9 = inlined_call_operand.vmem [shape: f32[64,128], index: 9, kind: input, shape index: {}]   ;;  %s5913_s10 = inlined_call_operand.vmem [shape: f32[1,128], index: 10, kind: input, shape index: {}]   ;;  %s5914_s11 = inlined_call_operand.hbm [shape: f32[2,1,128], index: 11, kind: output, shape index: {}]  }
   0x1   :  { %5915 = sst [smem:[#allocation12_spill]] %s5903_s0 }
   0x2   :  { %5916 = sst [smem:[#allocation13_spill]] %s5904_s1 }
   0x3   :  { %16 = vsyncpa [#allocation10], 0 }
   0x4   :  { %18 = vsyncpa [#allocation10 + $0x1], 0  ;;  %s4533_s17 = smov 0   ;;  %s4535_s18 = smov 0  }
   0x5   :  { %s4537_s19 = smov 0   ;;  %s4539_s20 = smov 0  }
   0x6 LB: > { %s4554_s21 = sadd.s32 4294967295, %s4467_s20   ;;  %s3427_s22 = sadd.s32 4294967294, %s4467_s20   ;;  %s4467_s20 = sphi %s4539_s20, %s5924_s20   ;;  %s4463_s19 = sphi %s4537_s19, %s5923_s19   ;;  %s4459_s18 = sphi %s4535_s18, %s5922_s18   ;;  %s4455_s17 = sphi %s4533_s17, %s5921_s17  }
   0x7   : > { %s4558_s23 = sadd.s32 1, %s4467_s20   ;;  %s267_s24 = sadd.s32 1, %s4463_s19 }
   0x8   : > { %s264_s25 = ssub.s32 %s4467_s20, %s4558_s23  ;;  %p277_p0 = scmp.ne.s32.totalorder %s4463_s19, %s4459_s18 }
   0x9   : > { %p265_p1 = scmp.eq.s32.totalorder %s264_s25, 0  ;;  %p278_p2 = scmp.eq.s32.totalorder %s4554_s21, 1 }
   0xa   : > { %p283_p3 = scmp.ne.s32.totalorder %s4459_s18, %s4455_s17  ;;  %p284_p4 = scmp.eq.s32.totalorder %s3427_s22, 1 }
   0xb   : > { %s4569_s26 = scalar_select %p265_p1, %s4463_s19, %s267_s24  }
   0xc   : > { %p4571_p5 = por %p278_p2, %p277_p0  ;;  %p4575_p6 = por %p284_p4, %p283_p3 }
   0xd   : > { %p3430_p7 = scmp.ge.s32.totalorder %s4467_s20, 1  ;;  %p340_p8 = scmp.lt.s32.totalorder %s4467_s20, 3 }
   0xf   : > { %p341_p9 = pnand %p3430_p7, %p340_p8 }
  0x10   : > { %p379_p10 = scmp.lt.s32.totalorder (!%p341_p9), %s4554_s21, 1  ;;  %s5919_s0 = sld [smem:[#allocation12_spill]] (!%p341_p9) }
  0x11   : > { %344 = sbr.rel (%p341_p9) target bundleno = 1899 (0x76b), region = 64  ;;  %s4469_s15 = smov (!%p341_p9), 48  }
  0x12   : > { %s4470_s16 = smov (!%p341_p9), 16   ;;  %s4471_s22 = smov (!%p341_p9), 64  }
  0x13   : > { %s4472_s24 = smov (!%p341_p9), 32   ;;  %s5920_s1 = sld [smem:[#allocation13_spill]] (!%p341_p9) }
  0x14   : > { %s3368_s13 = scalar_lea.hbm (!%p341_p9), %s5914_s11, %s4554_s21 }
  0x16   : > { %s380_s29 = scalar_select %p379_p10, %s4554_s21, 1  ;;  %vm1687_vm0 = vcmask 130048   ;;  %vm1750_vm1 = vcmask 261120   ;;  %vm1813_vm2 = vcmask 392192   ;;  %vm1876_vm3 = vcmask 523264  }
  0x17   : > { %vm2014_vm4 = vcmask 654336   ;;  %vm2856_vm5 = vcmask 785408   ;;  %vm2586_vm6 = vcmask 257024   ;;  %vm3009_vm7 = vcmask 259072   ;;  %s4425_s21 = scalar_lea.hbm %s5914_s11, 2 }
  0x18   : > { %s3632_s30 = smul.u32 504, %s380_s29  ;;  %vm3149_vm8 = vcmask 519168   ;;  %vm3161_vm9 = vcmask 522240   ;;  %vm3303_vm10 = vcmask 520192   ;;  %vm3345_vm11 = vcmask 1040384  }
  0x1a   : > { %s4586_s14 = scalar_lea.vmem %s5919_s0, %s3632_s30 }
  0x1b   : > { %v571_v0 = vld [vmem:[%s4586_s14 + $0x3] sm:$0xff]  ;;  %v572_v1 = vld [vmem:[%s4586_s14 + $0xb] sm:$0xff]  ;;  %v450_v11 = vld [vmem:[%s4586_s14 + $0x19] sm:$0xff] }
  0x1c   : > { %v447_v2 = vld [vmem:[%s4586_s14 + $0x1] sm:$0xff]  ;;  %v3686_v3 = vpack.i.bf16 %v572_v1, %v571_v0  ;;  %v448_v4 = vld [vmem:[%s4586_s14 + $0x9] sm:$0xff]  ;;  %v449_v10 = vld [vmem:[%s4586_s14 + $0x11] sm:$0xff] }
  0x1d   : > { %v3676_v5 = vpack.i.bf16 %v448_v4, %v447_v2  ;;  %v633_v6 = vld [vmem:[%s4586_s14 + $0x4] sm:$0xff]  ;;  %v634_v7 = vld [vmem:[%s4586_s14 + $0xc] sm:$0xff]  ;;  %v3696_v12 = vpack.i.bf16 %v450_v11, %v449_v10  ;;  %v512_v16 = vld [vmem:[%s4586_s14 + $0x1a] sm:$0xff] }
  0x1e   : > { %3687 = vrot.lane.b32.xlu1 %v3686_v3, %s4469_s15  ;;  %v509_v8 = vld [vmem:[%s4586_s14 + $0x2] sm:$0xff]  ;;  %v510_v9 = vld [vmem:[%s4586_s14 + $0xa] sm:$0xff]  ;;  %v3691_v13 = vpack.i.bf16 %v634_v7, %v633_v6  ;;  %v511_v15 = vld [vmem:[%s4586_s14 + $0x12] sm:$0xff] }
  0x1f   : > { %3677 = vrot.lane.b32.xlu0 %v3676_v5, %s4470_s16  ;;  %v3681_v14 = vpack.i.bf16 %v510_v9, %v509_v8  ;;  %3697 = vrot.lane.b32.xlu2 %v3696_v12, %s4470_s16  ;;  %v635_v17 = vld [vmem:[%s4586_s14 + $0x14] sm:$0xff]  ;;  %v636_v18 = vld [vmem:[%s4586_s14 + $0x1c] sm:$0xff]  ;;  %v3701_v19 = vpack.i.bf16 %v512_v16, %v511_v15 }
  0x20   : > { %v573_v20 = vld [vmem:[%s4586_s14 + $0x13] sm:$0xff]  ;;  %v574_v21 = vld [vmem:[%s4586_s14 + $0x1b] sm:$0xff]  ;;  %v3711_v22 = vpack.i.bf16 %v636_v18, %v635_v17  ;;  %v452_v25 = vld [vmem:[%s4586_s14 + $0x29] sm:$0xff] }
  0x21   : > { %v3706_v23 = vpack.i.bf16 %v574_v21, %v573_v20  ;;  %v451_v24 = vld [vmem:[%s4586_s14 + $0x21] sm:$0xff]  ;;  %v576_v27 = vld [vmem:[%s4586_s14 + $0x2b] sm:$0xff]  ;;  %v454_v39 = vld [vmem:[%s4586_s14 + $0x39] sm:$0xff] }
  0x22   : > { %v575_v26 = vld [vmem:[%s4586_s14 + $0x23] sm:$0xff]  ;;  %v3716_v28 = vpack.i.bf16 %v452_v25, %v451_v24  ;;  %v638_v34 = vld [vmem:[%s4586_s14 + $0x2c] sm:$0xff]  ;;  %v516_v36 = vld [vmem:[%s4586_s14 + $0x3a] sm:$0xff] }
  0x23   : > { %v513_v29 = vld [vmem:[%s4586_s14 + $0x22] sm:$0xff]  ;;  %v514_v30 = vld [vmem:[%s4586_s14 + $0x2a] sm:$0xff]  ;;  %v3726_v31 = vpack.i.bf16 %v576_v27, %v575_v26  ;;  %v515_v35 = vld [vmem:[%s4586_s14 + $0x32] sm:$0xff] }
  0x24   : > { %v3721_v32 = vpack.i.bf16 %v514_v30, %v513_v29  ;;  %v637_v33 = vld [vmem:[%s4586_s14 + $0x24] sm:$0xff]  ;;  %v453_v38 = vld [vmem:[%s4586_s14 + $0x31] sm:$0xff]  ;;  %v3741_v40 = vpack.i.bf16 %v516_v36, %v515_v35  ;;  %v578_v43 = vld [vmem:[%s4586_s14 + $0x3b] sm:$0xff] }
  0x25   : > { %v3731_v37 = vpack.i.bf16 %v638_v34, %v637_v33  ;;  %v3736_v41 = vpack.i.bf16 %v454_v39, %v453_v38  ;;  %v577_v42 = vld [vmem:[%s4586_s14 + $0x33] sm:$0xff]  ;;  %v455_v44 = vld [vmem:[%s4586_s14 + $0x41] sm:$0xff]  ;;  %v456_v45 = vld [vmem:[%s4586_s14 + $0x49] sm:$0xff] }
  0x26   : > { %3692 = vrot.lane.b32.xlu1 %v3691_v13, %s4471_s22  ;;  %v3746_v46 = vpack.i.bf16 %v578_v43, %v577_v42  ;;  %v639_v47 = vld [vmem:[%s4586_s14 + $0x34] sm:$0xff]  ;;  %v640_v48 = vld [vmem:[%s4586_s14 + $0x3c] sm:$0xff]  ;;  %v3756_v49 = vpack.i.bf16 %v456_v45, %v455_v44  ;;  %v518_v52 = vld [vmem:[%s4586_s14 + $0x4a] sm:$0xff] }
  0x27   : > { %3682 = vrot.lane.b32.xlu0 %v3681_v14, %s4472_s24  ;;  %3702 = vrot.lane.b32.xlu2 %v3701_v19, %s4472_s24  ;;  %v3751_v50 = vpack.i.bf16 %v640_v48, %v639_v47  ;;  %v517_v51 = vld [vmem:[%s4586_s14 + $0x42] sm:$0xff]  ;;  %v642_v54 = vld [vmem:[%s4586_s14 + $0x4c] sm:$0xff] }
  0x28   : > { %v641_v53 = vld [vmem:[%s4586_s14 + $0x44] sm:$0xff]  ;;  %v3761_v55 = vpack.i.bf16 %v518_v52, %v517_v51  ;;  %v658_v6 = vld [vmem:[%s4586_s14 + $0xcc] sm:$0xff]  ;;  %v520_v8 = vld [vmem:[%s4586_s14 + $0x5a] sm:$0xff] }
  0x29   : > { %v579_v56 = vld [vmem:[%s4586_s14 + $0x43] sm:$0xff]  ;;  %v580_v57 = vld [vmem:[%s4586_s14 + $0x4b] sm:$0xff]  ;;  %v3771_v58 = vpack.i.bf16 %v642_v54, %v641_v53  ;;  %v458_v11 = vld [vmem:[%s4586_s14 + $0x59] sm:$0xff] }
  0x2a   : > { %v3766_v59 = vpack.i.bf16 %v580_v57, %v579_v56  ;;  %v471_v60 = vld [vmem:[%s4586_s14 + $0xc1] sm:$0xff]  ;;  %v472_v61 = vld [vmem:[%s4586_s14 + $0xc9] sm:$0xff]  ;;  %v519_v7 = vld [vmem:[%s4586_s14 + $0x52] sm:$0xff] }
  0x2b   : > { %v595_v62 = vld [vmem:[%s4586_s14 + $0xc3] sm:$0xff]  ;;  %v596_v63 = vld [vmem:[%s4586_s14 + $0xcb] sm:$0xff]  ;;  %v3776_v0 = vpack.i.bf16 %v472_v61, %v471_v60  ;;  %v3801_v12 = vpack.i.bf16 %v520_v8, %v519_v7  ;;  %v581_v14 = vld [vmem:[%s4586_s14 + $0x53] sm:$0xff] }
  0x2c   : > { %v533_v1 = vld [vmem:[%s4586_s14 + $0xc2] sm:$0xff]  ;;  %v534_v2 = vld [vmem:[%s4586_s14 + $0xca] sm:$0xff]  ;;  %v3786_v3 = vpack.i.bf16 %v596_v63, %v595_v62  ;;  %v474_v17 = vld [vmem:[%s4586_s14 + $0xd9] sm:$0xff] }
  0x2d   : > { %v3781_v4 = vpack.i.bf16 %v534_v2, %v533_v1  ;;  %v657_v5 = vld [vmem:[%s4586_s14 + $0xc4] sm:$0xff]  ;;  %v457_v10 = vld [vmem:[%s4586_s14 + $0x51] sm:$0xff]  ;;  %v582_v15 = vld [vmem:[%s4586_s14 + $0x5b] sm:$0xff] }
  0x2e   : > { %3712 = vrot.lane.b32.xlu1 %v3711_v22, %s4471_s22  ;;  %v3791_v9 = vpack.i.bf16 %v658_v6, %v657_v5  ;;  %v3796_v13 = vpack.i.bf16 %v458_v11, %v457_v10  ;;  %v473_v16 = vld [vmem:[%s4586_s14 + $0xd1] sm:$0xff]  ;;  %v3806_v18 = vpack.i.bf16 %v582_v15, %v581_v14  ;;  %v644_v20 = vld [vmem:[%s4586_s14 + $0x5c] sm:$0xff]  ;;  %v460_v34 = vld [vmem:[%s4586_s14 + $0x69] sm:$0xff] }
  0x2f   : > { %3707 = vrot.lane.b32.xlu0 %v3706_v23, %s4469_s15  ;;  %3717 = vrot.lane.b32.xlu2 %v3716_v28, %s4470_s16  ;;  %v643_v19 = vld [vmem:[%s4586_s14 + $0x54] sm:$0xff]  ;;  %v3816_v21 = vpack.i.bf16 %v474_v17, %v473_v16  ;;  %v660_v26 = vld [vmem:[%s4586_s14 + $0xdc] sm:$0xff] }
  0x30   : > { %v3811_v22 = vpack.i.bf16 %v644_v20, %v643_v19  ;;  %v535_v23 = vld [vmem:[%s4586_s14 + $0xd2] sm:$0xff]  ;;  %v536_v24 = vld [vmem:[%s4586_s14 + $0xda] sm:$0xff]  ;;  %v583_v35 = vld [vmem:[%s4586_s14 + $0x63] sm:$0xff] }
  0x31   : > { %v659_v25 = vld [vmem:[%s4586_s14 + $0xd4] sm:$0xff]  ;;  %v3821_v27 = vpack.i.bf16 %v536_v24, %v535_v23  ;;  %v3597_v28 = vld [vmem:[%s5920_s1 + $0x20] sm:$0xff]  ;;  %v584_v36 = vld [vmem:[%s4586_s14 + $0x6b] sm:$0xff] }
  0x32   : > { %v597_v29 = vld [vmem:[%s4586_s14 + $0xd3] sm:$0xff]  ;;  %v598_v30 = vld [vmem:[%s4586_s14 + $0xdb] sm:$0xff]  ;;  %2111 = vmatpush.bf16.msra.mxu0 %v3597_v28  ;;  %3622 = vmatpush.bf16.msra.mxu2 %v3597_v28  ;;  %v522_v39 = vld [vmem:[%s4586_s14 + $0x6a] sm:$0xff] }
  0x33   : > { %3623 = vmatpush.bf16.msra.mxu3 %v3597_v28  ;;  %v459_v33 = vld [vmem:[%s4586_s14 + $0x61] sm:$0xff]  ;;  %v646_v44 = vld [vmem:[%s4586_s14 + $0x6c] sm:$0xff]  ;;  %v490_v47 = vld [vmem:[%s4586_s14 + $0x159] sm:$0xff] }
  0x34   : > { %v521_v38 = vld [vmem:[%s4586_s14 + $0x62] sm:$0xff]  ;;  %v3595_v45 = vld [vmem:[%s5920_s1 + $0x10] sm:$0xff]  ;;  %v552_v62 = vld [vmem:[%s4586_s14 + $0x15a] sm:$0xff] }
  0x35   : > { %v3841_v42 = vpack.i.bf16 %v522_v39, %v521_v38  ;;  %v645_v43 = vld [vmem:[%s4586_s14 + $0x64] sm:$0xff]  ;;  %v551_v61 = vld [vmem:[%s4586_s14 + $0x152] sm:$0xff]  ;;  %v614_v2 = vld [vmem:[%s4586_s14 + $0x15b] sm:$0xff] }
  0x36   : > { %3727 = vrot.lane.b32.xlu1 %v3726_v31, %s4469_s15  ;;  %v3831_v31 = vpack.i.bf16 %v660_v26, %v659_v25  ;;  %v3851_v48 = vpack.i.bf16 %v646_v44, %v645_v43  ;;  %v3594_v51 = vld [vmem:[%s5920_s1 + $0x8] sm:$0xff]  ;;  %v3593_v56 = vld [vmem:[%s5920_s1] sm:$0xff]  ;;  %v613_v1 = vld [vmem:[%s4586_s14 + $0x153] sm:$0xff] }
  0x37   : > { %3722 = vrot.lane.b32.xlu0 %v3721_v32, %s4472_s24  ;;  %3732 = vrot.lane.b32.xlu2 %v3731_v37, %s4471_s22  ;;  %v3826_v32 = vpack.i.bf16 %v598_v30, %v597_v29  ;;  %v3836_v37 = vpack.i.bf16 %v460_v34, %v459_v33  ;;  %v537_v54 = vld [vmem:[%s4586_s14 + $0xe2] sm:$0xff]  ;;  %v3881_v6 = vpack.i.bf16 %v614_v2, %v613_v1  ;;  %v662_v8 = vld [vmem:[%s4586_s14 + $0xec] sm:$0xff] }
  0x38   : > { %v676_v5 = vld [vmem:[%s4586_s14 + $0x15c] sm:$0xff]  ;;  %v661_v7 = vld [vmem:[%s4586_s14 + $0xe4] sm:$0xff]  ;;  %v461_v11 = vld [vmem:[%s4586_s14 + $0x71] sm:$0xff] }
  0x39   : > { %v3886_v10 = vpack.i.bf16 %v662_v8, %v661_v7  ;;  %v585_v14 = vld [vmem:[%s4586_s14 + $0x73] sm:$0xff]  ;;  %v586_v15 = vld [vmem:[%s4586_s14 + $0x7b] sm:$0xff]  ;;  %v386_v34 = vld [vmem:[%s4586_s14 + $0x8] sm:$0xff] }
  0x3a   : > { %v524_v19 = vld [vmem:[%s4586_s14 + $0x7a] sm:$0xff]  ;;  %v477_v28 = vld [vmem:[%s4586_s14 + $0xf1] sm:$0xff] }
  0x3b   : > { %v647_v23 = vld [vmem:[%s4586_s14 + $0x74] sm:$0xff]  ;;  %v648_v24 = vld [vmem:[%s4586_s14 + $0x7c] sm:$0xff] }
  0x3c   : > { %v491_v25 = vld [vmem:[%s4586_s14 + $0x161] sm:$0xff]  ;;  %v478_v29 = vld [vmem:[%s4586_s14 + $0xf9] sm:$0xff] }
  0x3d   : > { %v385_v33 = vld [vmem:[%s4586_s14] sm:$0xff]  ;;  %v3916_v38 = vpack.i.bf16 %v478_v29, %v477_v28 }
  0x3e   : > { %3742 = vrot.lane.b32.xlu1 %v3741_v40, %s4472_s24  ;;  %v3596_v40 = vld [vmem:[%s5920_s1 + $0x18] sm:$0xff] }
  0x3f   : > { %3737 = vrot.lane.b32.xlu0 %v3736_v41, %s4470_s16  ;;  %3747 = vrot.lane.b32.xlu2 %v3746_v46, %s4469_s15  ;;  %v3846_v41 = vpack.i.bf16 %v584_v36, %v583_v35  ;;  %v489_v46 = vld [vmem:[%s4586_s14 + $0x151] sm:$0xff] }
  0x40   : > { %2112 = vmatpush.bf16.msra.mxu0 %v3596_v40  ;;  %3624 = vmatpush.bf16.msra.mxu2 %v3596_v40  ;;  %v3861_v52 = vpack.i.bf16 %v490_v47, %v489_v46 }
  0x41   : > { %3625 = vmatpush.bf16.msra.mxu3 %v3596_v40 }
  0x44   : > { %2113 = vmatpush.bf16.msra.mxu0 %v3595_v45  ;;  %3626 = vmatpush.bf16.msra.mxu2 %v3595_v45 }
  0x45   : > { %3627 = vmatpush.bf16.msra.mxu3 %v3595_v45 }
  0x46   : > { %3757 = vrot.lane.b32.xlu1 %v3756_v49, %s4470_s16  ;;  %v475_v49 = vld [vmem:[%s4586_s14 + $0xe1] sm:$0xff] }
  0x47   : > { %3752 = vrot.lane.b32.xlu0 %v3751_v50, %s4471_s22  ;;  %3762 = vrot.lane.b32.xlu2 %v3761_v55, %s4472_s24  ;;  %v476_v50 = vld [vmem:[%s4586_s14 + $0xe9] sm:$0xff] }
  0x48   : > { %2114 = vmatpush.bf16.msra.mxu0 %v3594_v51  ;;  %v3856_v53 = vpack.i.bf16 %v476_v50, %v475_v49  ;;  %3628 = vmatpush.bf16.msra.mxu2 %v3594_v51  ;;  %v538_v55 = vld [vmem:[%s4586_s14 + $0xea] sm:$0xff]  ;;  %v539_v49 = vld [vmem:[%s4586_s14 + $0xf2] sm:$0xff]  ;;  %v540_v50 = vld [vmem:[%s4586_s14 + $0xfa] sm:$0xff] }
  0x49   : > { %3629 = vmatpush.bf16.msra.mxu3 %v3594_v51  ;;  %v3866_v60 = vpack.i.bf16 %v538_v55, %v537_v54 }
  0x4c   : > { %2115 = vmatpush.bf16.msra.mxu0 %v3593_v56  ;;  %3630 = vmatpush.bf16.msra.mxu2 %v3593_v56 }
  0x4d   : > { %3631 = vmatpush.bf16.msra.mxu3 %v3593_v56 }
  0x4e   : > { %3772 = vrot.lane.b32.xlu1 %v3771_v58, %s4471_s22  ;;  %v599_v58 = vld [vmem:[%s4586_s14 + $0xe3] sm:$0xff] }
  0x4f   : > { %3767 = vrot.lane.b32.xlu0 %v3766_v59, %s4469_s15  ;;  %3777 = vrot.lane.b32.xlu2 %v3776_v0, %s4470_s16  ;;  %v600_v59 = vld [vmem:[%s4586_s14 + $0xeb] sm:$0xff]  ;;  %v3871_v0 = vpack.i.bf16 %v552_v62, %v551_v61  ;;  %v553_v62 = vld [vmem:[%s4586_s14 + $0x162] sm:$0xff] }
  0x50   : > { %v3876_v63 = vpack.i.bf16 %v600_v59, %v599_v58  ;;  %v601_v58 = vld [vmem:[%s4586_s14 + $0xf3] sm:$0xff]  ;;  %v602_v59 = vld [vmem:[%s4586_s14 + $0xfb] sm:$0xff] }
  0x56   : > { %3787 = vrot.lane.b32.xlu1 %v3786_v3, %s4469_s15 }
  0x57   : > { %3782 = vrot.lane.b32.xlu0 %v3781_v4, %s4472_s24  ;;  %3792 = vrot.lane.b32.xlu2 %v3791_v9, %s4471_s22  ;;  %v675_v4 = vld [vmem:[%s4586_s14 + $0x154] sm:$0xff] }
  0x58   : > { %v3891_v9 = vpack.i.bf16 %v676_v5, %v675_v4  ;;  %v387_v4 = vld [vmem:[%s4586_s14 + $0x10] sm:$0xff]  ;;  %v388_v5 = vld [vmem:[%s4586_s14 + $0x18] sm:$0xff] }
  0x5e   : > { %3802 = vrot.lane.b32.xlu1 %v3801_v12, %s4472_s24  ;;  %v462_v12 = vld [vmem:[%s4586_s14 + $0x79] sm:$0xff] }
  0x5f   : > { %3797 = vrot.lane.b32.xlu0 %v3796_v13, %s4470_s16  ;;  %3807 = vrot.lane.b32.xlu2 %v3806_v18, %s4469_s15  ;;  %v3896_v16 = vpack.i.bf16 %v462_v12, %v461_v11  ;;  %v523_v18 = vld [vmem:[%s4586_s14 + $0x72] sm:$0xff] }
  0x60   : > { %v616_v11 = vld [vmem:[%s4586_s14 + $0x16b] sm:$0xff] }
  0x66   : > { %3817 = vrot.lane.b32.xlu1 %v3816_v21, %s4470_s16  ;;  %v3906_v21 = vpack.i.bf16 %v586_v15, %v585_v14 }
  0x67   : > { %3812 = vrot.lane.b32.xlu0 %v3811_v22, %s4471_s22  ;;  %3822 = vrot.lane.b32.xlu2 %v3821_v27, %s4472_s24  ;;  %v3901_v22 = vpack.i.bf16 %v524_v19, %v523_v18  ;;  %v492_v27 = vld [vmem:[%s4586_s14 + $0x169] sm:$0xff] }
  0x68   : > { %v678_v18 = vld [vmem:[%s4586_s14 + $0x16c] sm:$0xff] }
  0x6e   : > { %3832 = vrot.lane.b32.xlu1 %v3831_v31, %s4471_s22 }
  0x6f   : > { %3827 = vrot.lane.b32.xlu0 %v3826_v32, %s4469_s15  ;;  %3837 = vrot.lane.b32.xlu2 %v3836_v37, %s4470_s16  ;;  %v3911_v32 = vpack.i.bf16 %v648_v24, %v647_v23  ;;  %v3921_v37 = vpack.i.bf16 %v492_v27, %v491_v25  ;;  %v663_v24 = vld [vmem:[%s4586_s14 + $0xf4] sm:$0xff]  ;;  %v664_v25 = vld [vmem:[%s4586_s14 + $0xfc] sm:$0xff] }
  0x76   : > { %3847 = vrot.lane.b32.xlu1 %v3846_v41, %s4469_s15 }
  0x77   : > { %3842 = vrot.lane.b32.xlu0 %v3841_v42, %s4472_s24  ;;  %3852 = vrot.lane.b32.xlu2 %v3851_v48, %s4471_s22 }
  0x79   : > { %v4717_v57 = vpop.permute.xlu2 %3697 }
  0x7a   : > { %v3699_v1 = vunpack.i.l.bf16 %v4717_v57 }
  0x7e   : > { %3862 = vrot.lane.b32.xlu1 %v3861_v52, %s4470_s16 }
  0x7f   : > { %3857 = vrot.lane.b32.xlu0 %v3856_v53, %s4470_s16  ;;  %3867 = vrot.lane.b32.xlu2 %v3866_v60, %s4472_s24  ;;  %v3926_v60 = vpack.i.bf16 %v540_v50, %v539_v49 }
  0x81   : > { %v4728_v3 = vpop.permute.xlu2 %3702 }
  0x82   : > { %v3705_v8 = vunpack.i.h.bf16 %v4728_v3 }
  0x86   : > { %3877 = vrot.lane.b32.xlu1 %v3876_v63, %s4469_s15  ;;  %v554_v63 = vld [vmem:[%s4586_s14 + $0x16a] sm:$0xff] }
  0x87   : > { %3872 = vrot.lane.b32.xlu0 %v3871_v0, %s4472_s24  ;;  %3882 = vrot.lane.b32.xlu2 %v3881_v6, %s4469_s15  ;;  %v3700_v0 = vunpack.i.h.bf16 %v4717_v57  ;;  %v3936_v6 = vpack.i.bf16 %v602_v59, %v601_v58  ;;  %v3931_v7 = vpack.i.bf16 %v554_v63, %v553_v62  ;;  %v1690_v57 = vsel %vm1687_vm0, %v387_v4, %v3699_v1  ;;  %v493_v63 = vld [vmem:[%s4586_s14 + $0x171] sm:$0xff] }
  0x89   : > { %v4739_v13 = vpop.permute.xlu2 %3717  ;;  %v1691_v12 = vsel %vm1687_vm0, %v388_v5, %v3700_v0  ;;  %v494_v0 = vld [vmem:[%s4586_s14 + $0x179] sm:$0xff] }
  0x8e   : > { %3892 = vrot.lane.b32.xlu1 %v3891_v9, %s4471_s22  ;;  %v3704_v9 = vunpack.i.l.bf16 %v4728_v3 }
  0x8f   : > { %3887 = vrot.lane.b32.xlu0 %v3886_v10, %s4471_s22  ;;  %3897 = vrot.lane.b32.xlu2 %v3896_v16, %s4470_s16  ;;  %v615_v10 = vld [vmem:[%s4586_s14 + $0x163] sm:$0xff] }
  0x90   : > { %v3688_v17 = vpop.permute.xlu1 %3687  ;;  %v3941_v19 = vpack.i.bf16 %v616_v11, %v615_v10  ;;  %v1753_v3 = vsel %vm1750_vm1, %v1690_v57, %v3704_v9  ;;  %v3981_v11 = vpack.i.bf16 %v494_v0, %v493_v63 }
  0x91   : > { %v3678_v20 = vpop.permute.xlu0 %3677  ;;  %v4751_v26 = vpop.permute.xlu2 %3732  ;;  %v3690_v43 = vunpack.i.h.bf16 %v3688_v17  ;;  %v3689_v44 = vunpack.i.l.bf16 %v3688_v17  ;;  %v677_v17 = vld [vmem:[%s4586_s14 + $0x164] sm:$0xff] }
  0x92   : > { %v3680_v30 = vunpack.i.h.bf16 %v3678_v20  ;;  %v3679_v31 = vunpack.i.l.bf16 %v3678_v20  ;;  %v1754_v20 = vsel %vm1750_vm1, %v1691_v12, %v3705_v8  ;;  %v3734_v4 = vunpack.i.l.bf16 %v4751_v26 }
  0x94   : > { %v1688_v45 = vsel %vm1687_vm0, %v385_v33, %v3679_v31  ;;  %v1689_v46 = vsel %vm1687_vm0, %v386_v34, %v3680_v30  ;;  %v3951_v30 = vpack.i.bf16 %v678_v18, %v677_v17  ;;  %v3946_v31 = vpack.i.bf16 %v664_v25, %v663_v24  ;;  %v463_v34 = vld [vmem:[%s4586_s14 + $0x81] sm:$0xff] }
  0x96   : > { %3907 = vrot.lane.b32.xlu1 %v3906_v21, %s4469_s15 }
  0x97   : > { %3902 = vrot.lane.b32.xlu0 %v3901_v22, %s4472_s24  ;;  %3912 = vrot.lane.b32.xlu2 %v3911_v32, %s4471_s22 }
  0x98   : > { %v3693_v35 = vpop.permute.xlu1 %3692 }
  0x99   : > { %v3683_v36 = vpop.permute.xlu0 %3682  ;;  %v3695_v39 = vunpack.i.h.bf16 %v3693_v35  ;;  %v3694_v40 = vunpack.i.l.bf16 %v3693_v35  ;;  %v4769_v53 = vpop.permute.xlu2 %3747  ;;  %v464_v35 = vld [vmem:[%s4586_s14 + $0x89] sm:$0xff] }
  0x9a   : > { %v3685_v41 = vunpack.i.h.bf16 %v3683_v36  ;;  %v3684_v42 = vunpack.i.l.bf16 %v3683_v36 }
  0x9c   : > { %v1751_v47 = vsel %vm1750_vm1, %v1688_v45, %v3684_v42  ;;  %v1752_v48 = vsel %vm1750_vm1, %v1689_v46, %v3685_v41  ;;  %v587_v41 = vld [vmem:[%s4586_s14 + $0x83] sm:$0xff]  ;;  %v588_v42 = vld [vmem:[%s4586_s14 + $0x8b] sm:$0xff] }
  0x9d   : > { %v1814_v51 = vsel %vm1813_vm2, %v1751_v47, %v3689_v44  ;;  %v1815_v52 = vsel %vm1813_vm2, %v1752_v48, %v3690_v43  ;;  %v3956_v43 = vpack.i.bf16 %v464_v35, %v463_v34  ;;  %v390_v44 = vld [vmem:[%s4586_s14 + $0x28] sm:$0xff]  ;;  %v3966_v50 = vpack.i.bf16 %v588_v42, %v587_v41  ;;  %v680_v35 = vld [vmem:[%s4586_s14 + $0x17c] sm:$0xff] }
  0x9e   : > { %3922 = vrot.lane.b32.xlu1 %v3921_v37, %s4470_s16  ;;  %v1877_v54 = vsel %vm1876_vm3, %v1814_v51, %v3694_v40  ;;  %v1878_v55 = vsel %vm1876_vm3, %v1815_v52, %v3695_v39  ;;  %v3720_v37 = vunpack.i.h.bf16 %v4739_v13  ;;  %v389_v39 = vld [vmem:[%s4586_s14 + $0x20] sm:$0xff]  ;;  %v526_v47 = vld [vmem:[%s4586_s14 + $0x8a] sm:$0xff] }
  0x9f   : > { %3917 = vrot.lane.b32.xlu0 %v3916_v38, %s4470_s16  ;;  %v1939_v56 = vpack.c.bf16 %v1878_v55, %v1877_v54  ;;  %3927 = vrot.lane.b32.xlu2 %v3926_v60, %s4472_s24  ;;  %v3719_v38 = vunpack.i.l.bf16 %v4739_v13  ;;  %v525_v46 = vld [vmem:[%s4586_s14 + $0x82] sm:$0xff] }
  0xa0   : > { %v3713_v61 = vpop.permute.xlu1 %3712  ;;  %v1693_v52 = vsel %vm1687_vm0, %v390_v44, %v3720_v37  ;;  %v3961_v54 = vpack.i.bf16 %v526_v47, %v525_v46  ;;  %v649_v55 = vld [vmem:[%s4586_s14 + $0x84] sm:$0xff]  ;;  %v617_v37 = vld [vmem:[%s4586_s14 + $0x173] sm:$0xff]  ;;  %v3749_v47 = vunpack.i.l.bf16 %v4769_v53 }
  0xa1   : > { %v3708_v2 = vpop.permute.xlu0 %3707  ;;  %3452 = vmatmul.msk.bf16.vlgmr.msra.gmra.mxu0 %vm2014_vm4, %v1939_v56  ;;  %v4791_v16 = vpop.permute.xlu2 %3762  ;;  %v3715_v21 = vunpack.i.h.bf16 %v3713_v61  ;;  %v3714_v22 = vunpack.i.l.bf16 %v3713_v61  ;;  %v1692_v51 = vsel %vm1687_vm0, %v389_v39, %v3719_v38  ;;  %v650_v56 = vld [vmem:[%s4586_s14 + $0x8c] sm:$0xff]  ;;  %v618_v38 = vld [vmem:[%s4586_s14 + $0x17b] sm:$0xff] }
  0xa2   : > { %v3710_v14 = vunpack.i.h.bf16 %v3708_v2  ;;  %v3709_v15 = vunpack.i.l.bf16 %v3708_v2  ;;  %v3971_v1 = vpack.i.bf16 %v650_v56, %v649_v55  ;;  %v3735_v2 = vunpack.i.h.bf16 %v4751_v26  ;;  %v409_v44 = vld [vmem:[%s4586_s14 + $0xc0] sm:$0xff]  ;;  %v410_v46 = vld [vmem:[%s4586_s14 + $0xc8] sm:$0xff] }
  0xa3   : > { %v666_v55 = vld [vmem:[%s4586_s14 + $0x10c] sm:$0xff] }
  0xa4   : > { %v1816_v27 = vsel %vm1813_vm2, %v1753_v3, %v3709_v15  ;;  %v1817_v28 = vsel %vm1813_vm2, %v1754_v20, %v3710_v14  ;;  %v541_v14 = vld [vmem:[%s4586_s14 + $0x102] sm:$0xff]  ;;  %v542_v15 = vld [vmem:[%s4586_s14 + $0x10a] sm:$0xff] }
  0xa5   : > { %v1879_v32 = vsel %vm1876_vm3, %v1816_v27, %v3714_v22  ;;  %v1880_v33 = vsel %vm1876_vm3, %v1817_v28, %v3715_v21  ;;  %v604_v3 = vld [vmem:[%s4586_s14 + $0x10b] sm:$0xff]  ;;  %v3986_v20 = vpack.i.bf16 %v542_v15, %v541_v14 }
  0xa6   : > { %3937 = vrot.lane.b32.xlu1 %v3936_v6, %s4469_s15  ;;  %v1940_v40 = vpack.c.bf16 %v1880_v33, %v1879_v32  ;;  %v479_v6 = vld [vmem:[%s4586_s14 + $0x101] sm:$0xff]  ;;  %v555_v22 = vld [vmem:[%s4586_s14 + $0x172] sm:$0xff] }
  0xa7   : > { %3932 = vrot.lane.b32.xlu0 %v3931_v7, %s4472_s24  ;;  %3942 = vrot.lane.b32.xlu2 %v3941_v19, %s4469_s15  ;;  %v480_v7 = vld [vmem:[%s4586_s14 + $0x109] sm:$0xff]  ;;  %v679_v32 = vld [vmem:[%s4586_s14 + $0x174] sm:$0xff] }
  0xa8   : > { %v3728_v23 = vpop.permute.xlu1 %3727  ;;  %v3976_v57 = vpack.i.bf16 %v480_v7, %v479_v6  ;;  %v603_v19 = vld [vmem:[%s4586_s14 + $0x103] sm:$0xff]  ;;  %v391_v28 = vld [vmem:[%s4586_s14 + $0x30] sm:$0xff] }
  0xa9   : > { %v3723_v29 = vpop.permute.xlu0 %3722  ;;  %v4808_v36 = vpop.permute.xlu2 %3777  ;;  %v3730_v58 = vunpack.i.h.bf16 %v3728_v23  ;;  %v3729_v59 = vunpack.i.l.bf16 %v3728_v23  ;;  %v556_v23 = vld [vmem:[%s4586_s14 + $0x17a] sm:$0xff] }
  0xaa   : > { %v3725_v49 = vunpack.i.h.bf16 %v3723_v29  ;;  %v3724_v13 = vunpack.i.l.bf16 %v3723_v29  ;;  %v392_v29 = vld [vmem:[%s4586_s14 + $0x38] sm:$0xff]  ;;  %v3780_v41 = vunpack.i.h.bf16 %v4808_v36  ;;  %v3779_v42 = vunpack.i.l.bf16 %v4808_v36 }
  0xac   : > { %v1755_v61 = vsel %vm1750_vm1, %v1692_v51, %v3724_v13  ;;  %v1756_v62 = vsel %vm1750_vm1, %v1693_v52, %v3725_v49  ;;  %v4001_v49 = vpack.i.bf16 %v618_v38, %v617_v37  ;;  %v1712_v56 = vsel %vm1687_vm0, %v409_v44, %v3779_v42 }
  0xad   : > { %v1818_v9 = vsel %vm1813_vm2, %v1755_v61, %v3729_v59  ;;  %v1819_v10 = vsel %vm1813_vm2, %v1756_v62, %v3730_v58  ;;  %v1713_v58 = vsel %vm1687_vm0, %v410_v46, %v3780_v41 }
  0xae   : > { %3952 = vrot.lane.b32.xlu1 %v3951_v30, %s4471_s22  ;;  %v1881_v26 = vsel %vm1876_vm3, %v1818_v9, %v3734_v4  ;;  %v1882_v12 = vsel %vm1876_vm3, %v1819_v10, %v3735_v2  ;;  %v3996_v30 = vpack.i.bf16 %v604_v3, %v603_v19  ;;  %v393_v3 = vld [vmem:[%s4586_s14 + $0x40] sm:$0xff] }
  0xaf   : > { %3947 = vrot.lane.b32.xlu0 %v3946_v31, %s4471_s22  ;;  %3957 = vrot.lane.b32.xlu2 %v3956_v43, %s4470_s16  ;;  %v1941_v18 = vpack.c.bf16 %v1882_v12, %v1881_v26  ;;  %v3991_v31 = vpack.i.bf16 %v556_v23, %v555_v22  ;;  %v589_v23 = vld [vmem:[%s4586_s14 + $0x93] sm:$0xff] }
  0xb0   : > { %v4818_v45 = vpop.permute.xlu1 %3742 }
  0xb1   : > { %v4822_v48 = vpop.permute.xlu0 %3737  ;;  %3453 = vmatmul.msk.bf16.gmra.mxu0 %vm2014_vm4, %v1940_v40  ;;  %v4830_v60 = vpop.permute.xlu2 %3792  ;;  %v3745_v33 = vunpack.i.h.bf16 %v4818_v45  ;;  %v3744_v34 = vunpack.i.l.bf16 %v4818_v45  ;;  %v3750_v45 = vunpack.i.h.bf16 %v4769_v53 }
  0xb2   : > { %v3740_v24 = vunpack.i.h.bf16 %v4822_v48  ;;  %v3739_v25 = vunpack.i.l.bf16 %v4822_v48  ;;  %v4011_v48 = vpack.i.bf16 %v680_v35, %v679_v32  ;;  %v3795_v0 = vunpack.i.h.bf16 %v4830_v60 }
  0xb4   : > { %v1694_v39 = vsel %vm1687_vm0, %v391_v28, %v3739_v25  ;;  %v1695_v40 = vsel %vm1687_vm0, %v392_v29, %v3740_v24  ;;  %v590_v24 = vld [vmem:[%s4586_s14 + $0x9b] sm:$0xff]  ;;  %v394_v28 = vld [vmem:[%s4586_s14 + $0x48] sm:$0xff] }
  0xb5   : > { %v1757_v13 = vsel %vm1750_vm1, %v1694_v39, %v3744_v34  ;;  %v4026_v34 = vpack.i.bf16 %v590_v24, %v589_v23  ;;  %v651_v39 = vld [vmem:[%s4586_s14 + $0x94] sm:$0xff] }
  0xb6   : > { %3967 = vrot.lane.b32.xlu1 %v3966_v50, %s4469_s15  ;;  %v1758_v50 = vsel %vm1750_vm1, %v1695_v40, %v3745_v33  ;;  %v1820_v2 = vsel %vm1813_vm2, %v1757_v13, %v3749_v47  ;;  %v3764_v33 = vunpack.i.l.bf16 %v4791_v16  ;;  %v652_v40 = vld [vmem:[%s4586_s14 + $0x9c] sm:$0xff]  ;;  %v496_v47 = vld [vmem:[%s4586_s14 + $0x189] sm:$0xff] }
  0xb7   : > { %3962 = vrot.lane.b32.xlu0 %v3961_v54, %s4472_s24  ;;  %3972 = vrot.lane.b32.xlu2 %v3971_v1, %s4471_s22  ;;  %v665_v54 = vld [vmem:[%s4586_s14 + $0x104] sm:$0xff]  ;;  %v3794_v1 = vunpack.i.l.bf16 %v4830_v60  ;;  %v1821_v4 = vsel %vm1813_vm2, %v1758_v50, %v3750_v45  ;;  %v466_v60 = vld [vmem:[%s4586_s14 + $0x99] sm:$0xff] }
  0xb8   : > { %v4840_v5 = vpop.permute.xlu1 %3757  ;;  %v4006_v6 = vpack.i.bf16 %v666_v55, %v665_v54  ;;  %v495_v45 = vld [vmem:[%s4586_s14 + $0x181] sm:$0xff]  ;;  %v481_v50 = vld [vmem:[%s4586_s14 + $0x111] sm:$0xff] }
  0xb9   : > { %v4844_v8 = vpop.permute.xlu0 %3752  ;;  %v4853_v17 = vpop.permute.xlu2 %3807  ;;  %v3760_v14 = vunpack.i.h.bf16 %v4840_v5  ;;  %v3759_v19 = vunpack.i.l.bf16 %v4840_v5  ;;  %v3765_v5 = vunpack.i.h.bf16 %v4791_v16  ;;  %v396_v23 = vld [vmem:[%s4586_s14 + $0x58] sm:$0xff] }
  0xba   : > { %v3755_v36 = vunpack.i.h.bf16 %v4844_v8  ;;  %v3754_v51 = vunpack.i.l.bf16 %v4844_v8 }
  0xbb   : > { %v1696_v35 = vsel %vm1687_vm0, %v393_v3, %v3759_v19  ;;  %v1697_v37 = vsel %vm1687_vm0, %v394_v28, %v3760_v14  ;;  %v558_v14 = vld [vmem:[%s4586_s14 + $0x18a] sm:$0xff] }
  0xbc   : > { %v1883_v9 = vsel %vm1876_vm3, %v1820_v2, %v3754_v51  ;;  %v1884_v10 = vsel %vm1876_vm3, %v1821_v4, %v3755_v36  ;;  %v1759_v16 = vsel %vm1750_vm1, %v1696_v35, %v3764_v33  ;;  %v1760_v46 = vsel %vm1750_vm1, %v1697_v37, %v3765_v5  ;;  %v482_v36 = vld [vmem:[%s4586_s14 + $0x119] sm:$0xff]  ;;  %v620_v35 = vld [vmem:[%s4586_s14 + $0x18b] sm:$0xff] }
  0xbe   : > { %3982 = vrot.lane.b32.xlu1 %v3981_v11, %s4470_s16  ;;  %v465_v11 = vld [vmem:[%s4586_s14 + $0x91] sm:$0xff] }
  0xbf   : > { %3977 = vrot.lane.b32.xlu0 %v3976_v57, %s4470_s16  ;;  %3987 = vrot.lane.b32.xlu2 %v3986_v20, %s4472_s24  ;;  %v1942_v20 = vpack.c.bf16 %v1884_v10, %v1883_v9  ;;  %v4016_v25 = vpack.i.bf16 %v466_v60, %v465_v11  ;;  %v605_v9 = vld [vmem:[%s4586_s14 + $0x113] sm:$0xff]  ;;  %v606_v10 = vld [vmem:[%s4586_s14 + $0x11b] sm:$0xff] }
  0xc0   : > { %v4859_v21 = vpop.permute.xlu1 %3772  ;;  %v4056_v28 = vpack.i.bf16 %v606_v10, %v605_v9  ;;  %v529_v10 = vld [vmem:[%s4586_s14 + $0xa2] sm:$0xff] }
  0xc1   : > { %v4865_v27 = vpop.permute.xlu0 %3767  ;;  %3454 = vmatmul.msk.bf16.gmra.mxu0 %vm2014_vm4, %v1941_v18  ;;  %v4881_v43 = vpop.permute.xlu2 %3822  ;;  %v3774_v13 = vunpack.i.l.bf16 %v4859_v21 }
  0xc2   : > { %v3770_v41 = vunpack.i.h.bf16 %v4865_v27  ;;  %v3769_v42 = vunpack.i.l.bf16 %v4865_v27  ;;  %v3824_v2 = vunpack.i.l.bf16 %v4881_v43 }
  0xc4   : > { %v1822_v51 = vsel %vm1813_vm2, %v1759_v16, %v3769_v42  ;;  %v3810_v42 = vunpack.i.h.bf16 %v4853_v17  ;;  %v3809_v16 = vunpack.i.l.bf16 %v4853_v17  ;;  %v667_v17 = vld [vmem:[%s4586_s14 + $0x114] sm:$0xff] }
  0xc6   : > { %3997 = vrot.lane.b32.xlu1 %v3996_v30, %s4469_s15  ;;  %v527_v30 = vld [vmem:[%s4586_s14 + $0x92] sm:$0xff] }
  0xc7   : > { %3992 = vrot.lane.b32.xlu0 %v3991_v31, %s4472_s24  ;;  %4002 = vrot.lane.b32.xlu2 %v4001_v49, %s4469_s15  ;;  %v528_v31 = vld [vmem:[%s4586_s14 + $0x9a] sm:$0xff]  ;;  %v3775_v49 = vunpack.i.h.bf16 %v4859_v21  ;;  %v1885_v21 = vsel %vm1876_vm3, %v1822_v51, %v3774_v13 }
  0xc8   : > { %v3788_v52 = vpop.permute.xlu1 %3787  ;;  %v4021_v38 = vpack.i.bf16 %v528_v31, %v527_v30 }
  0xc9   : > { %v3790_v53 = vunpack.i.h.bf16 %v3788_v52  ;;  %v3789_v59 = vunpack.i.l.bf16 %v3788_v52  ;;  %v3783_v61 = vpop.permute.xlu0 %3782  ;;  %v4910_v12 = vpop.permute.xlu2 %3837  ;;  %v1823_v52 = vsel %vm1813_vm2, %v1760_v46, %v3770_v41  ;;  %v681_v46 = vld [vmem:[%s4586_s14 + $0x184] sm:$0xff] }
  0xca   : > { %v3785_v62 = vunpack.i.h.bf16 %v3783_v61  ;;  %v3784_v63 = vunpack.i.l.bf16 %v3783_v61  ;;  %v4036_v61 = vpack.i.bf16 %v482_v36, %v481_v50  ;;  %v668_v36 = vld [vmem:[%s4586_s14 + $0x11c] sm:$0xff] }
  0xcc   : > { %v1775_v7 = vsel %vm1750_vm1, %v1712_v56, %v3784_v63  ;;  %v1776_v8 = vsel %vm1750_vm1, %v1713_v58, %v3785_v62  ;;  %v4041_v58 = vpack.i.bf16 %v496_v47, %v495_v45  ;;  %v1886_v62 = vsel %vm1876_vm3, %v1823_v52, %v3775_v49  ;;  %v543_v63 = vld [vmem:[%s4586_s14 + $0x112] sm:$0xff] }
  0xcd   : > { %v1838_v57 = vsel %vm1813_vm2, %v1775_v7, %v3789_v59  ;;  %v1839_v26 = vsel %vm1813_vm2, %v1776_v8, %v3790_v53  ;;  %v411_v53 = vld [vmem:[%s4586_s14 + $0xd0] sm:$0xff]  ;;  %v412_v59 = vld [vmem:[%s4586_s14 + $0xd8] sm:$0xff]  ;;  %v1943_v8 = vpack.c.bf16 %v1886_v62, %v1885_v21  ;;  %v3840_v62 = vunpack.i.h.bf16 %v4910_v12 }
  0xce   : > { %4012 = vrot.lane.b32.xlu1 %v4011_v48, %s4471_s22  ;;  %v1901_v15 = vsel %vm1876_vm3, %v1838_v57, %v3794_v1  ;;  %v1902_v18 = vsel %vm1876_vm3, %v1839_v26, %v3795_v0  ;;  %v4031_v48 = vpack.i.bf16 %v652_v40, %v651_v39  ;;  %v544_v0 = vld [vmem:[%s4586_s14 + $0x11a] sm:$0xff]  ;;  %v3825_v1 = vunpack.i.h.bf16 %v4881_v43  ;;  %v557_v26 = vld [vmem:[%s4586_s14 + $0x182] sm:$0xff]  ;;  %v682_v45 = vld [vmem:[%s4586_s14 + $0x18c] sm:$0xff] }
  0xcf   : > { %4007 = vrot.lane.b32.xlu0 %v4006_v6, %s4471_s22  ;;  %v1951_v22 = vpack.c.bf16 %v1902_v18, %v1901_v15  ;;  %4017 = vrot.lane.b32.xlu2 %v4016_v25, %s4470_s16  ;;  %v4046_v11 = vpack.i.bf16 %v544_v0, %v543_v63  ;;  %v4051_v30 = vpack.i.bf16 %v558_v14, %v557_v26  ;;  %v3839_v63 = vunpack.i.l.bf16 %v4910_v12  ;;  %v397_v0 = vld [vmem:[%s4586_s14 + $0x60] sm:$0xff] }
  0xd0   : > { %v4922_v29 = vpop.permute.xlu1 %3802  ;;  %v4071_v52 = vpack.i.bf16 %v682_v45, %v681_v46  ;;  %v413_v46 = vld [vmem:[%s4586_s14 + $0xe0] sm:$0xff] }
  0xd1   : > { %v4926_v32 = vpop.permute.xlu0 %3797  ;;  %3455 = vmatmul.msk.bf16.gmra.mxu0 %vm2014_vm4, %v1942_v20  ;;  %3464 = vmatmul.msk.bf16.vlgmr.msra.gmra.mxu2 %vm2014_vm4, %v1951_v22  ;;  %v4939_v44 = vpop.permute.xlu2 %3852  ;;  %v395_v22 = vld [vmem:[%s4586_s14 + $0x50] sm:$0xff]  ;;  %v3805_v31 = vunpack.i.h.bf16 %v4922_v29  ;;  %v1700_v12 = vsel %vm1687_vm0, %v397_v0, %v3839_v63 }
  0xd2   : > { %v3800_v60 = vunpack.i.h.bf16 %v4926_v32  ;;  %v3799_v43 = vunpack.i.l.bf16 %v4926_v32  ;;  %v3804_v32 = vunpack.i.l.bf16 %v4922_v29 }
  0xd4   : > { %v1698_v37 = vsel %vm1687_vm0, %v395_v22, %v3799_v43 }
  0xd6   : > { %4027 = vrot.lane.b32.xlu1 %v4026_v34, %s4469_s15  ;;  %v619_v34 = vld [vmem:[%s4586_s14 + $0x183] sm:$0xff] }
  0xd7   : > { %4022 = vrot.lane.b32.xlu0 %v4021_v38, %s4472_s24  ;;  %4032 = vrot.lane.b32.xlu2 %v4031_v48, %s4471_s22  ;;  %v1699_v38 = vsel %vm1687_vm0, %v396_v23, %v3800_v60  ;;  %v4061_v47 = vpack.i.bf16 %v620_v35, %v619_v34  ;;  %v1761_v48 = vsel %vm1750_vm1, %v1698_v37, %v3804_v32  ;;  %v483_v32 = vld [vmem:[%s4586_s14 + $0x121] sm:$0xff] }
  0xd8   : > { %v3818_v27 = vpop.permute.xlu1 %3817  ;;  %v1762_v49 = vsel %vm1750_vm1, %v1699_v38, %v3805_v31  ;;  %v498_v31 = vld [vmem:[%s4586_s14 + $0x199] sm:$0xff] }
  0xd9   : > { %v4953_v54 = vpop.permute.xlu0 %3812  ;;  %v3820_v55 = vunpack.i.h.bf16 %v3818_v27  ;;  %v3819_v56 = vunpack.i.l.bf16 %v3818_v27  ;;  %v4964_v4 = vpop.permute.xlu2 %3867 }
  0xda   : > { %v3815_v13 = vunpack.i.h.bf16 %v4953_v54  ;;  %v3814_v27 = vunpack.i.l.bf16 %v4953_v54 }
  0xdb   : > { %v1714_v6 = vsel %vm1687_vm0, %v411_v53, %v3819_v56  ;;  %v1715_v7 = vsel %vm1687_vm0, %v412_v59, %v3820_v55  ;;  %v1824_v55 = vsel %vm1813_vm2, %v1761_v48, %v3809_v16  ;;  %v1825_v56 = vsel %vm1813_vm2, %v1762_v49, %v3810_v42  ;;  %v467_v59 = vld [vmem:[%s4586_s14 + $0xa1] sm:$0xff] }
  0xdc   : > { %v1777_v15 = vsel %vm1750_vm1, %v1714_v6, %v3824_v2  ;;  %v1778_v18 = vsel %vm1750_vm1, %v1715_v7, %v3825_v1  ;;  %v1887_v54 = vsel %vm1876_vm3, %v1824_v55, %v3814_v27  ;;  %v1888_v53 = vsel %vm1876_vm3, %v1825_v56, %v3815_v13  ;;  %v398_v1 = vld [vmem:[%s4586_s14 + $0x68] sm:$0xff] }
  0xdd   : > { %v1944_v2 = vpack.c.bf16 %v1888_v53, %v1887_v54  ;;  %v591_v6 = vld [vmem:[%s4586_s14 + $0xa3] sm:$0xff]  ;;  %v592_v7 = vld [vmem:[%s4586_s14 + $0xab] sm:$0xff]  ;;  %v1701_v26 = vsel %vm1687_vm0, %v398_v1, %v3840_v62  ;;  %v3870_v56 = vunpack.i.h.bf16 %v4964_v4  ;;  %v560_v62 = vld [vmem:[%s4586_s14 + $0x19a] sm:$0xff] }
  0xde   : > { %4042 = vrot.lane.b32.xlu1 %v4041_v58, %s4470_s16  ;;  %v4066_v58 = vpack.i.bf16 %v668_v36, %v667_v17  ;;  %v4086_v14 = vpack.i.bf16 %v592_v7, %v591_v6  ;;  %v414_v48 = vld [vmem:[%s4586_s14 + $0xe8] sm:$0xff] }
  0xdf   : > { %4037 = vrot.lane.b32.xlu0 %v4036_v61, %s4470_s16  ;;  %4047 = vrot.lane.b32.xlu2 %v4046_v11, %s4472_s24  ;;  %v468_v61 = vld [vmem:[%s4586_s14 + $0xa9] sm:$0xff] }
  0xe0   : > { %v3833_v57 = vpop.permute.xlu1 %3832  ;;  %v530_v11 = vld [vmem:[%s4586_s14 + $0xaa] sm:$0xff]  ;;  %v545_v17 = vld [vmem:[%s4586_s14 + $0x122] sm:$0xff] }
  0xe1   : > { %v3835_v19 = vunpack.i.h.bf16 %v3833_v57  ;;  %v3834_v3 = vunpack.i.l.bf16 %v3833_v57  ;;  %v3828_v20 = vpop.permute.xlu0 %3827  ;;  %3456 = vmatmul.msk.bf16.gmra.mxu0 %vm2014_vm4, %v1943_v8  ;;  %v4992_v41 = vpop.permute.xlu2 %3882  ;;  %v4076_v8 = vpack.i.bf16 %v468_v61, %v467_v59  ;;  %v546_v36 = vld [vmem:[%s4586_s14 + $0x12a] sm:$0xff]  ;;  %v559_v61 = vld [vmem:[%s4586_s14 + $0x192] sm:$0xff] }
  0xe2   : > { %v3830_v24 = vunpack.i.h.bf16 %v3828_v20  ;;  %v3829_v25 = vunpack.i.l.bf16 %v3828_v20  ;;  %v654_v20 = vld [vmem:[%s4586_s14 + $0xac] sm:$0xff]  ;;  %v607_v55 = vld [vmem:[%s4586_s14 + $0x123] sm:$0xff]  ;;  %v3885_v54 = vunpack.i.h.bf16 %v4992_v41  ;;  %v3884_v53 = vunpack.i.l.bf16 %v4992_v41 }
  0xe3   : > { %v608_v59 = vld [vmem:[%s4586_s14 + $0x12b] sm:$0xff]  ;;  %v4106_v6 = vpack.i.bf16 %v546_v36, %v545_v17 }
  0xe4   : > { %v1840_v5 = vsel %vm1813_vm2, %v1777_v15, %v3829_v25  ;;  %v1841_v33 = vsel %vm1813_vm2, %v1778_v18, %v3830_v24  ;;  %v4081_v15 = vpack.i.bf16 %v530_v11, %v529_v10  ;;  %v497_v25 = vld [vmem:[%s4586_s14 + $0x191] sm:$0xff]  ;;  %v4116_v10 = vpack.i.bf16 %v608_v59, %v607_v55 }
  0xe5   : > { %v1903_v39 = vsel %vm1876_vm3, %v1840_v5, %v3834_v3  ;;  %v1904_v40 = vsel %vm1876_vm3, %v1841_v33, %v3835_v19  ;;  %v653_v3 = vld [vmem:[%s4586_s14 + $0xa4] sm:$0xff]  ;;  %v4101_v45 = vpack.i.bf16 %v498_v31, %v497_v25  ;;  %v4111_v11 = vpack.i.bf16 %v560_v62, %v559_v61  ;;  %v621_v31 = vld [vmem:[%s4586_s14 + $0x193] sm:$0xff] }
  0xe6   : > { %4057 = vrot.lane.b32.xlu1 %v4056_v28, %s4469_s15  ;;  %v1952_v29 = vpack.c.bf16 %v1904_v40, %v1903_v39  ;;  %v3855_v28 = vunpack.i.h.bf16 %v4939_v44  ;;  %v484_v5 = vld [vmem:[%s4586_s14 + $0x129] sm:$0xff]  ;;  %v4091_v33 = vpack.i.bf16 %v654_v20, %v653_v3  ;;  %v469_v55 = vld [vmem:[%s4586_s14 + $0xb1] sm:$0xff] }
  0xe7   : > { %4052 = vrot.lane.b32.xlu0 %v4051_v30, %s4472_s24  ;;  %4062 = vrot.lane.b32.xlu2 %v4061_v47, %s4469_s15  ;;  %v3854_v30 = vunpack.i.l.bf16 %v4939_v44  ;;  %v427_v40 = vld [vmem:[%s4586_s14 + $0x150] sm:$0xff]  ;;  %v4096_v47 = vpack.i.bf16 %v484_v5, %v483_v32  ;;  %v622_v32 = vld [vmem:[%s4586_s14 + $0x19b] sm:$0xff] }
  0xe8   : > { %3465 = vmatmul.msk.bf16.gmra.mxu2 %vm2014_vm4, %v1952_v29  ;;  %v3848_v50 = vpop.permute.xlu1 %3847  ;;  %v428_v29 = vld [vmem:[%s4586_s14 + $0x158] sm:$0xff] }
  0xe9   : > { %v3843_v51 = vpop.permute.xlu0 %3842  ;;  %v5014_v21 = vpop.permute.xlu2 %3897  ;;  %v3850_v18 = vunpack.i.h.bf16 %v3848_v50  ;;  %v3849_v19 = vunpack.i.l.bf16 %v3848_v50  ;;  %v593_v62 = vld [vmem:[%s4586_s14 + $0xb3] sm:$0xff] }
  0xea   : > { %v3845_v60 = vunpack.i.h.bf16 %v3843_v51  ;;  %v3844_v43 = vunpack.i.l.bf16 %v3843_v51  ;;  %v3900_v5 = vunpack.i.h.bf16 %v5014_v21 }
  0xec   : > { %v1763_v22 = vsel %vm1750_vm1, %v1700_v12, %v3844_v43  ;;  %v1764_v23 = vsel %vm1750_vm1, %v1701_v26, %v3845_v60 }
  0xed   : > { %v1826_v38 = vsel %vm1813_vm2, %v1763_v22, %v3849_v19  ;;  %v1827_v39 = vsel %vm1813_vm2, %v1764_v23, %v3850_v18 }
  0xee   : > { %4072 = vrot.lane.b32.xlu1 %v4071_v52, %s4471_s22  ;;  %v1889_v27 = vsel %vm1876_vm3, %v1826_v38, %v3854_v30  ;;  %v1890_v50 = vsel %vm1876_vm3, %v1827_v39, %v3855_v28  ;;  %v399_v39 = vld [vmem:[%s4586_s14 + $0x70] sm:$0xff] }
  0xef   : > { %4067 = vrot.lane.b32.xlu0 %v4066_v58, %s4471_s22  ;;  %4077 = vrot.lane.b32.xlu2 %v4076_v8, %s4470_s16  ;;  %v3869_v58 = vunpack.i.l.bf16 %v4964_v4 }
  0xf0   : > { %v3863_v9 = vpop.permute.xlu1 %3862 }
  0xf1   : > { %v3858_v57 = vpop.permute.xlu0 %3857  ;;  %3457 = vmatmul.msk.bf16.gmra.mxu0 %vm2014_vm4, %v1944_v2  ;;  %v5034_v24 = vpop.permute.xlu2 %3912  ;;  %v3865_v34 = vunpack.i.h.bf16 %v3863_v9  ;;  %v3864_v35 = vunpack.i.l.bf16 %v3863_v9  ;;  %v1945_v2 = vpack.c.bf16 %v1890_v50, %v1889_v27 }
  0xf2   : > { %v3860_v42 = vunpack.i.h.bf16 %v3858_v57  ;;  %v3859_v16 = vunpack.i.l.bf16 %v3858_v57  ;;  %v3915_v50 = vunpack.i.h.bf16 %v5034_v24  ;;  %v3914_v17 = vunpack.i.l.bf16 %v5034_v24 }
  0xf3   : > { %v1730_v51 = vsel %vm1687_vm0, %v427_v40, %v3864_v35  ;;  %v1731_v52 = vsel %vm1687_vm0, %v428_v29, %v3865_v34  ;;  %v683_v35 = vld [vmem:[%s4586_s14 + $0x194] sm:$0xff]  ;;  %v4121_v29 = vpack.i.bf16 %v622_v32, %v621_v31 }
  0xf4   : > { %v1716_v0 = vsel %vm1687_vm0, %v413_v46, %v3859_v16  ;;  %v1717_v1 = vsel %vm1687_vm0, %v414_v48, %v3860_v42  ;;  %v400_v40 = vld [vmem:[%s4586_s14 + $0x78] sm:$0xff]  ;;  %v670_v16 = vld [vmem:[%s4586_s14 + $0x12c] sm:$0xff] }
  0xf5   : > { %v1779_v60 = vsel %vm1750_vm1, %v1716_v0, %v3869_v58  ;;  %v1780_v43 = vsel %vm1750_vm1, %v1717_v1, %v3870_v56  ;;  %v470_v56 = vld [vmem:[%s4586_s14 + $0xb9] sm:$0xff] }
  0xf6   : > { %4087 = vrot.lane.b32.xlu1 %v4086_v14, %s4469_s15  ;;  %v594_v0 = vld [vmem:[%s4586_s14 + $0xbb] sm:$0xff]  ;;  %v4136_v1 = vpack.i.bf16 %v470_v56, %v469_v55 }
  0xf7   : > { %4082 = vrot.lane.b32.xlu0 %v4081_v15, %s4472_s24  ;;  %4092 = vrot.lane.b32.xlu2 %v4091_v33, %s4471_s22  ;;  %v3899_v33 = vunpack.i.l.bf16 %v5014_v21  ;;  %v669_v21 = vld [vmem:[%s4586_s14 + $0x124] sm:$0xff] }
  0xf8   : > { %v3878_v37 = vpop.permute.xlu1 %3877  ;;  %v4126_v36 = vpack.i.bf16 %v670_v16, %v669_v21 }
  0xf9   : > { %v3873_v44 = vpop.permute.xlu0 %3872  ;;  %v5065_v63 = vpop.permute.xlu2 %3927  ;;  %v3880_v7 = vunpack.i.h.bf16 %v3878_v37  ;;  %v3879_v8 = vunpack.i.l.bf16 %v3878_v37  ;;  %v684_v37 = vld [vmem:[%s4586_s14 + $0x19c] sm:$0xff]  ;;  %v1702_v46 = vsel %vm1687_vm0, %v399_v39, %v3899_v33 }
  0xfa   : > { %v3875_v49 = vunpack.i.h.bf16 %v3873_v44  ;;  %v3874_v13 = vunpack.i.l.bf16 %v3873_v44  ;;  %v4131_v42 = vpack.i.bf16 %v684_v37, %v683_v35  ;;  %v548_v35 = vld [vmem:[%s4586_s14 + $0x13a] sm:$0xff] }
  0xfb   : > { %v1842_v3 = vsel %vm1813_vm2, %v1779_v60, %v3879_v8  ;;  %v1843_v20 = vsel %vm1813_vm2, %v1780_v43, %v3880_v7  ;;  %v532_v7 = vld [vmem:[%s4586_s14 + $0xba] sm:$0xff]  ;;  %v500_v43 = vld [vmem:[%s4586_s14 + $0x1a9] sm:$0xff] }
  0xfc   : > { %v1793_v4 = vsel %vm1750_vm1, %v1730_v51, %v3874_v13  ;;  %v1794_v9 = vsel %vm1750_vm1, %v1731_v52, %v3875_v49  ;;  %v499_v60 = vld [vmem:[%s4586_s14 + $0x1a1] sm:$0xff] }
  0xfd   : > { %v1856_v14 = vsel %vm1813_vm2, %v1793_v4, %v3884_v53  ;;  %v1857_v15 = vsel %vm1813_vm2, %v1794_v9, %v3885_v54  ;;  %v4146_v4 = vpack.i.bf16 %v594_v0, %v593_v62 }
  0xfe   : > { %4102 = vrot.lane.b32.xlu1 %v4101_v45, %s4470_s16  ;;  %v1703_v45 = vsel %vm1687_vm0, %v400_v40, %v3900_v5  ;;  %v5141_v5 = vld [vmem:[%s5905_s2] ss:$0 sm:$0xff]  ;;  %v3930_v40 = vunpack.i.h.bf16 %v5065_v63 }
  0xff   : > { %4097 = vrot.lane.b32.xlu0 %v4096_v47, %s4470_s16  ;;  %4107 = vrot.lane.b32.xlu2 %v4106_v6, %s4472_s24  ;;  %v531_v6 = vld [vmem:[%s4586_s14 + $0xb2] sm:$0xff] }
 0x100   : > { %v3893_v41 = vpop.permute.xlu1 %3892  ;;  %v4141_v9 = vpack.i.bf16 %v532_v7, %v531_v6 }
 0x101   : > { %v3895_v57 = vunpack.i.h.bf16 %v3893_v41  ;;  %v3894_v12 = vunpack.i.l.bf16 %v3893_v41  ;;  %v3888_v26 = vpop.permute.xlu0 %3887  ;;  %3458 = vmatmul.msk.bf16.gmra.mxu0 %vm2014_vm4, %v1945_v2  ;;  %v5091_v38 = vpop.permute.xlu2 %3942  ;;  %v655_v41 = vld [vmem:[%s4586_s14 + $0xb4] sm:$0xff] }
 0x102   : > { %v3890_v18 = vunpack.i.h.bf16 %v3888_v26  ;;  %v3889_v19 = vunpack.i.l.bf16 %v3888_v26 }
 0x103   : > { %v1919_v22 = vsel %vm1876_vm3, %v1856_v14, %v3894_v12  ;;  %v1920_v23 = vsel %vm1876_vm3, %v1857_v15, %v3895_v57  ;;  %v485_v15 = vld [vmem:[%s4586_s14 + $0x131] sm:$0xff] }
 0x104   : > { %v1905_v25 = vsel %vm1876_vm3, %v1842_v3, %v3889_v19  ;;  %v1906_v28 = vsel %vm1876_vm3, %v1843_v20, %v3890_v18  ;;  %v1960_v30 = vpack.c.bf16 %v1920_v23, %v1919_v22  ;;  %v486_v18 = vld [vmem:[%s4586_s14 + $0x139] sm:$0xff]  ;;  %v430_v3 = vld [vmem:[%s4586_s14 + $0x168] sm:$0xff] }
 0x105   : > { %v1953_v34 = vpack.c.bf16 %v1906_v28, %v1905_v25  ;;  %v429_v19 = vld [vmem:[%s4586_s14 + $0x160] sm:$0xff]  ;;  %v415_v25 = vld [vmem:[%s4586_s14 + $0xf0] sm:$0xff]  ;;  %v416_v28 = vld [vmem:[%s4586_s14 + $0xf8] sm:$0xff]  ;;  %v4156_v33 = vpack.i.bf16 %v486_v18, %v485_v15 }
 0x106   : > { %4117 = vrot.lane.b32.xlu1 %v4116_v10, %s4469_s15  ;;  %3473 = vmatmul.msk.bf16.vlgmr.msra.gmra.mxu3 %vm2014_vm4, %v1960_v30  ;;  %v656_v10 = vld [vmem:[%s4586_s14 + $0xbc] sm:$0xff]  ;;  %v4161_v30 = vpack.i.bf16 %v500_v43, %v499_v60  ;;  %v685_v15 = vld [vmem:[%s4586_s14 + $0x1a4] sm:$0xff]  ;;  %v686_v18 = vld [vmem:[%s4586_s14 + $0x1ac] sm:$0xff] }
 0x107   : > { %4112 = vrot.lane.b32.xlu0 %v4111_v11, %s4472_s24  ;;  %3466 = vmatmul.msk.bf16.gmra.mxu2 %vm2014_vm4, %v1953_v34  ;;  %v4151_v57 = vpack.i.bf16 %v656_v10, %v655_v41  ;;  %v547_v34 = vld [vmem:[%s4586_s14 + $0x132] sm:$0xff]  ;;  %v623_v43 = vld [vmem:[%s4586_s14 + $0x1a3] sm:$0xff] }
 0x108   : > { %v3908_v44 = vpop.permute.xlu1 %3907  ;;  %4122 = vrot.lane.b32.xlu2 %v4121_v29, %s4469_s15  ;;  %v3929_v29 = vunpack.i.l.bf16 %v5065_v63 }
 0x109   : > { %v3910_v47 = vunpack.i.h.bf16 %v3908_v44  ;;  %v3909_v48 = vunpack.i.l.bf16 %v3908_v44  ;;  %v3903_v49 = vpop.permute.xlu0 %3902  ;;  %v5112_v53 = vpop.permute.xlu2 %3957  ;;  %v609_v44 = vld [vmem:[%s4586_s14 + $0x133] sm:$0xff] }
 0x10a   : > { %v3905_v13 = vunpack.i.h.bf16 %v3903_v49  ;;  %v3904_v27 = vunpack.i.l.bf16 %v3903_v49  ;;  %v3945_v49 = vunpack.i.h.bf16 %v5091_v38 }
 0x10c   : > { %v1765_v51 = vsel %vm1750_vm1, %v1702_v46, %v3904_v27  ;;  %v1766_v52 = vsel %vm1750_vm1, %v1703_v45, %v3905_v13  ;;  %v610_v46 = vld [vmem:[%s4586_s14 + $0x13b] sm:$0xff]  ;;  %v3944_v13 = vunpack.i.l.bf16 %v5091_v38 }
 0x10d   : > { %v1828_v58 = vsel %vm1813_vm2, %v1765_v51, %v3909_v48  ;;  %v1829_v54 = vsel %vm1813_vm2, %v1766_v52, %v3910_v47  ;;  %v561_v45 = vld [vmem:[%s4586_s14 + $0x1a2] sm:$0xff]  ;;  %v562_v47 = vld [vmem:[%s4586_s14 + $0x1aa] sm:$0xff] }
 0x10e   : > { %4132 = vrot.lane.b32.xlu1 %v4131_v42, %s4471_s22  ;;  %v1891_v24 = vsel %vm1876_vm3, %v1828_v58, %v3914_v17  ;;  %v1892_v59 = vsel %vm1876_vm3, %v1829_v54, %v3915_v50  ;;  %v4166_v50 = vpack.i.bf16 %v548_v35, %v547_v34  ;;  %v4176_v58 = vpack.i.bf16 %v610_v46, %v609_v44  ;;  %v487_v46 = vld [vmem:[%s4586_s14 + $0x141] sm:$0xff] }
 0x10f   : > { %4127 = vrot.lane.b32.xlu0 %v4126_v36, %s4471_s22  ;;  %v1946_v61 = vpack.c.bf16 %v1892_v59, %v1891_v24  ;;  %v4171_v38 = vpack.i.bf16 %v562_v47, %v561_v45  ;;  %v488_v45 = vld [vmem:[%s4586_s14 + $0x149] sm:$0xff] }
 0x110   : > { %v3923_v2 = vpop.permute.xlu1 %3922  ;;  %4137 = vrot.lane.b32.xlu2 %v4136_v1, %s4470_s16 }
 0x111   : > { %v3918_v8 = vpop.permute.xlu0 %3917  ;;  %3459 = vmatmul.msk.bf16.gmra.mxu0 %vm2014_vm4, %v1946_v61  ;;  %v5126_v11 = vpop.permute.xlu2 %3972  ;;  %v3925_v12 = vunpack.i.h.bf16 %v3923_v2  ;;  %v3924_v26 = vunpack.i.l.bf16 %v3923_v2 }
 0x112   : > { %v3920_v20 = vunpack.i.h.bf16 %v3918_v8  ;;  %v3919_v22 = vunpack.i.l.bf16 %v3918_v8  ;;  %v3974_v44 = vunpack.i.l.bf16 %v5126_v11 }
 0x113   : > { %v1732_v37 = vsel %vm1687_vm0, %v429_v19, %v3924_v26  ;;  %v1733_v39 = vsel %vm1687_vm0, %v430_v3, %v3925_v12  ;;  %v3960_v12 = vunpack.i.h.bf16 %v5112_v53  ;;  %v401_v26 = vld [vmem:[%s4586_s14 + $0x80] sm:$0xff]  ;;  %v402_v3 = vld [vmem:[%s4586_s14 + $0x88] sm:$0xff] }
 0x114   : > { %v1718_v42 = vsel %vm1687_vm0, %v415_v25, %v3919_v22  ;;  %v1719_v21 = vsel %vm1687_vm0, %v416_v28, %v3920_v20  ;;  %v4191_v28 = vpack.i.bf16 %v686_v18, %v685_v15 }
 0x115   : > { %v1781_v52 = vsel %vm1750_vm1, %v1718_v42, %v3929_v29  ;;  %v1782_v55 = vsel %vm1750_vm1, %v1719_v21, %v3930_v40  ;;  %v3975_v29 = vunpack.i.h.bf16 %v5126_v11 }
 0x116   : > { %4147 = vrot.lane.b32.xlu1 %v4146_v4, %s4469_s15 }
 0x117   : > { %4142 = vrot.lane.b32.xlu0 %v4141_v9, %s4472_s24  ;;  %v3959_v9 = vunpack.i.l.bf16 %v5112_v53 }
 0x118   : > { %v3938_v14 = vpop.permute.xlu1 %3937  ;;  %4152 = vrot.lane.b32.xlu2 %v4151_v57, %s4471_s22  ;;  %v624_v57 = vld [vmem:[%s4586_s14 + $0x1ab] sm:$0xff] }
 0x119   : > { %v3933_v23 = vpop.permute.xlu0 %3932  ;;  %v3939_v16 = vunpack.i.l.bf16 %v3938_v14  ;;  %v5156_v48 = vpop.permute.xlu2 %3987  ;;  %v3940_v63 = vunpack.i.h.bf16 %v3938_v14  ;;  %v4181_v53 = vpack.i.bf16 %v624_v57, %v623_v43  ;;  %v611_v43 = vld [vmem:[%s4586_s14 + $0x143] sm:$0xff]  ;;  %v612_v57 = vld [vmem:[%s4586_s14 + $0x14b] sm:$0xff] }
 0x11a   : > { %v3935_v31 = vunpack.i.h.bf16 %v3933_v23  ;;  %v3934_v32 = vunpack.i.l.bf16 %v3933_v23  ;;  %v1704_v23 = vsel %vm1687_vm0, %v401_v26, %v3959_v9  ;;  %v432_v26 = vld [vmem:[%s4586_s14 + $0x178] sm:$0xff] }
 0x11b   : > { %v1844_v54 = vsel %vm1813_vm2, %v1781_v52, %v3939_v16  ;;  %v1845_v7 = vsel %vm1813_vm2, %v1782_v55, %v3940_v63  ;;  %v4196_v52 = vpack.i.bf16 %v488_v45, %v487_v46 }
 0x11c   : > { %v1795_v17 = vsel %vm1750_vm1, %v1732_v37, %v3934_v32  ;;  %v1796_v36 = vsel %vm1750_vm1, %v1733_v39, %v3935_v31  ;;  %v672_v31 = vld [vmem:[%s4586_s14 + $0x13c] sm:$0xff]  ;;  %v1705_v32 = vsel %vm1687_vm0, %v402_v3, %v3960_v12  ;;  %v431_v12 = vld [vmem:[%s4586_s14 + $0x170] sm:$0xff]  ;;  %v418_v3 = vld [vmem:[%s4586_s14 + $0x108] sm:$0xff] }
 0x11d   : > { %v1858_v0 = vsel %vm1813_vm2, %v1795_v17, %v3944_v13  ;;  %v1859_v1 = vsel %vm1813_vm2, %v1796_v36, %v3945_v49  ;;  %v549_v36 = vld [vmem:[%s4586_s14 + $0x142] sm:$0xff] }
 0x11e   : > { %v2117_v27 = vpop.f32.mrf.mxu0  ;;  %4162 = vrot.lane.b32.xlu1 %v4161_v30, %s4470_s16  ;;  %v671_v30 = vld [vmem:[%s4586_s14 + $0x134] sm:$0xff] }
 0x11f   : > { %v2118_v51 = vadd.f32 %v5141_v5, %v2117_v27  ;;  %4157 = vrot.lane.b32.xlu0 %v4156_v33, %s4470_s16  ;;  %v4186_v42 = vpack.i.bf16 %v672_v31, %v671_v30  ;;  %v5239_v30 = vld [vmem:[%s4586_s14 + $0x1b4] sm:$0xff]  ;;  %v5242_v31 = vld [vmem:[%s4586_s14 + $0x1bc] sm:$0xff] }
 0x120   : > { %v3953_v56 = vpop.permute.xlu1 %3952  ;;  %4167 = vrot.lane.b32.xlu2 %v4166_v50, %s4472_s24 }
 0x121   : > { %v2272_v24 = vmax.f32 %v2118_v51, 0.0  ;;  %v3955_v59 = vunpack.i.h.bf16 %v3953_v56  ;;  %v3954_v61 = vunpack.i.l.bf16 %v3953_v56  ;;  %v3948_v62 = vpop.permute.xlu0 %3947  ;;  %v5184_v19 = vpop.permute.xlu2 %4002  ;;  %v550_v51 = vld [vmem:[%s4586_s14 + $0x14a] sm:$0xff] }
 0x122   : > { %v3950_v2 = vunpack.i.h.bf16 %v3948_v62  ;;  %v3949_v6 = vunpack.i.l.bf16 %v3948_v62  ;;  %v501_v56 = vld [vmem:[%s4586_s14 + $0x1b1] sm:$0xff]  ;;  %v564_v62 = vld [vmem:[%s4586_s14 + $0x1ba] sm:$0xff]  ;;  %v4005_v46 = vunpack.i.h.bf16 %v5184_v19  ;;  %v4004_v45 = vunpack.i.l.bf16 %v5184_v19 }
 0x123   : > { %2334 = vst.msk [vmem:[#allocation2] sm:$0xff] %vm1750_vm1, %v2272_v24  ;;  %v1921_v8 = vsel %vm1876_vm3, %v1858_v0, %v3954_v61  ;;  %v1922_v4 = vsel %vm1876_vm3, %v1859_v1, %v3955_v59  ;;  %v4206_v24 = vpack.i.bf16 %v550_v51, %v549_v36  ;;  %v563_v61 = vld [vmem:[%s4586_s14 + $0x1b2] sm:$0xff] }
 0x124   : > { %v1907_v41 = vsel %vm1876_vm3, %v1844_v54, %v3949_v6  ;;  %v1908_v10 = vsel %vm1876_vm3, %v1845_v7, %v3950_v2  ;;  %v1961_v60 = vpack.c.bf16 %v1922_v4, %v1921_v8  ;;  %v625_v7 = vld [vmem:[%s4586_s14 + $0x1b3] sm:$0xff]  ;;  %v626_v8 = vld [vmem:[%s4586_s14 + $0x1bb] sm:$0xff]  ;;  %v4211_v4 = vpack.i.bf16 %v564_v62, %v563_v61 }
 0x125   : > { %v1954_v14 = vpack.c.bf16 %v1908_v10, %v1907_v41  ;;  %v417_v10 = vld [vmem:[%s4586_s14 + $0x100] sm:$0xff] }
 0x126   : > { %v2119_v20 = vpop.f32.mrf.mxu0  ;;  %4177 = vrot.lane.b32.xlu1 %v4176_v58, %s4469_s15  ;;  %3474 = vmatmul.msk.bf16.gmra.mxu3 %vm2014_vm4, %v1961_v60  ;;  %v502_v58 = vld [vmem:[%s4586_s14 + $0x1b9] sm:$0xff] }
 0x127   : > { %v2120_v22 = vadd.f32 %v5141_v5, %v2119_v20  ;;  %4172 = vrot.lane.b32.xlu0 %v4171_v38, %s4472_s24  ;;  %3467 = vmatmul.msk.bf16.gmra.mxu2 %vm2014_vm4, %v1954_v14  ;;  %v4201_v59 = vpack.i.bf16 %v502_v58, %v501_v56  ;;  %v3989_v20 = vunpack.i.l.bf16 %v5156_v48 }
 0x128   : > { %v3968_v25 = vpop.permute.xlu1 %3967  ;;  %4182 = vrot.lane.b32.xlu2 %v4181_v53, %s4469_s15 }
 0x129   : > { %v2273_v33 = vmax.f32 %v2120_v22, 0.0  ;;  %v3970_v34 = vunpack.i.h.bf16 %v3968_v25  ;;  %v3969_v35 = vunpack.i.l.bf16 %v3968_v25  ;;  %v3963_v37 = vpop.permute.xlu0 %3962  ;;  %v5206_v11 = vpop.permute.xlu2 %4017  ;;  %v4221_v22 = vpack.i.bf16 %v626_v8, %v625_v7 }
 0x12a   : > { %v3965_v39 = vunpack.i.h.bf16 %v3963_v37  ;;  %v3964_v40 = vunpack.i.l.bf16 %v3963_v37  ;;  %v673_v37 = vld [vmem:[%s4586_s14 + $0x144] sm:$0xff]  ;;  %v4020_v36 = vunpack.i.h.bf16 %v5206_v11  ;;  %v4019_v8 = vunpack.i.l.bf16 %v5206_v11 }
 0x12b   : > { %2335 = vst.msk [vmem:[#allocation2 + $0x8] sm:$0xff] %vm1750_vm1, %v2273_v33 }
 0x12c   : > { %v1767_v21 = vsel %vm1750_vm1, %v1704_v23, %v3964_v40  ;;  %v1768_v16 = vsel %vm1750_vm1, %v1705_v32, %v3965_v39  ;;  %v674_v39 = vld [vmem:[%s4586_s14 + $0x14c] sm:$0xff] }
 0x12d   : > { %v1830_v47 = vsel %vm1813_vm2, %v1767_v21, %v3969_v35  ;;  %v1831_v49 = vsel %vm1813_vm2, %v1768_v16, %v3970_v34  ;;  %v3990_v34 = vunpack.i.h.bf16 %v5156_v48  ;;  %v4231_v48 = vpack.i.bf16 %v5242_v31, %v5239_v30  ;;  %v627_v31 = vld [vmem:[%s4586_s14 + $0x1c3] sm:$0xff] }
 0x12e   : > { %v2122_v13 = vpop.f32.mrf.mxu0  ;;  %4192 = vrot.lane.b32.xlu1 %v4191_v28, %s4471_s22  ;;  %v1893_v27 = vsel %vm1876_vm3, %v1830_v47, %v3974_v44  ;;  %v1894_v50 = vsel %vm1876_vm3, %v1831_v49, %v3975_v29  ;;  %v4216_v28 = vpack.i.bf16 %v612_v57, %v611_v43  ;;  %v503_v44 = vld [vmem:[%s4586_s14 + $0x1c1] sm:$0xff]  ;;  %v403_v57 = vld [vmem:[%s4586_s14 + $0x90] sm:$0xff] }
 0x12f   : > { %v2123_v63 = vadd.f32 %v5141_v5, %v2122_v13  ;;  %4187 = vrot.lane.b32.xlu0 %v4186_v42, %s4471_s22  ;;  %v1947_v17 = vpack.c.bf16 %v1894_v50, %v1893_v27  ;;  %v504_v42 = vld [vmem:[%s4586_s14 + $0x1c9] sm:$0xff]  ;;  %v4226_v50 = vpack.i.bf16 %v674_v39, %v673_v37 }
 0x130   : > { %v3983_v55 = vpop.permute.xlu1 %3982  ;;  %4197 = vrot.lane.b32.xlu2 %v4196_v52, %s4470_s16  ;;  %v4236_v51 = vpack.i.bf16 %v504_v42, %v503_v44 }
 0x131   : > { %v2274_v38 = vmax.f32 %v2123_v63, 0.0  ;;  %v3978_v54 = vpop.permute.xlu0 %3977  ;;  %3460 = vmatmul.msk.bf16.gmra.mxu0 %vm2014_vm4, %v1947_v17  ;;  %v5222_v0 = vpop.permute.xlu2 %4032  ;;  %v3985_v9 = vunpack.i.h.bf16 %v3983_v55  ;;  %v3984_v41 = vunpack.i.l.bf16 %v3983_v55 }
 0x132   : > { %v3979_v2 = vunpack.i.l.bf16 %v3978_v54  ;;  %v3980_v14 = vunpack.i.h.bf16 %v3978_v54  ;;  %v4035_v44 = vunpack.i.h.bf16 %v5222_v0  ;;  %v4034_v42 = vunpack.i.l.bf16 %v5222_v0 }
 0x133   : > { %2336 = vst.msk [vmem:[#allocation2 + $0x10] sm:$0xff] %vm1750_vm1, %v2274_v38  ;;  %v1734_v32 = vsel %vm1687_vm0, %v431_v12, %v3984_v41  ;;  %v1735_v33 = vsel %vm1687_vm0, %v432_v26, %v3985_v9  ;;  %v404_v12 = vld [vmem:[%s4586_s14 + $0x98] sm:$0xff] }
 0x134   : > { %v1720_v53 = vsel %vm1687_vm0, %v417_v10, %v3979_v2  ;;  %v1721_v40 = vsel %vm1687_vm0, %v418_v3, %v3980_v14  ;;  %v689_v14 = vld [vmem:[%s4586_s14 + $0x1c4] sm:$0xff]  ;;  %v690_v3 = vld [vmem:[%s4586_s14 + $0x1cc] sm:$0xff] }
 0x135   : > { %v1783_v16 = vsel %vm1750_vm1, %v1720_v53, %v3989_v20  ;;  %v1784_v63 = vsel %vm1750_vm1, %v1721_v40, %v3990_v34  ;;  %v565_v20 = vld [vmem:[%s4586_s14 + $0x1c2] sm:$0xff]  ;;  %v4251_v39 = vpack.i.bf16 %v690_v3, %v689_v14 }
 0x136   : > { %v2124_v1 = vpop.f32.mrf.mxu0  ;;  %4207 = vrot.lane.b32.xlu1 %v4206_v24, %s4472_s24  ;;  %v434_v14 = vld [vmem:[%s4586_s14 + $0x188] sm:$0xff] }
 0x137   : > { %v2125_v6 = vadd.f32 %v5141_v5, %v2124_v1  ;;  %4202 = vrot.lane.b32.xlu0 %v4201_v59, %s4470_s16 }
 0x138   : > { %v3998_v60 = vpop.permute.xlu1 %3997  ;;  %4212 = vrot.lane.b32.xlu2 %v4211_v4, %s4472_s24 }
 0x139   : > { %v2275_v15 = vmax.f32 %v2125_v6, 0.0  ;;  %v3993_v18 = vpop.permute.xlu0 %3992  ;;  %v3999_v35 = vunpack.i.l.bf16 %v3998_v60  ;;  %v4000_v29 = vunpack.i.h.bf16 %v3998_v60  ;;  %v5253_v21 = vpop.permute.xlu2 %4047 }
 0x13a   : > { %v3995_v23 = vunpack.i.h.bf16 %v3993_v18  ;;  %v3994_v25 = vunpack.i.l.bf16 %v3993_v18 }
 0x13b   : > { %2337 = vst.msk [vmem:[#allocation2 + $0x18] sm:$0xff] %vm1750_vm1, %v2275_v15  ;;  %v1846_v17 = vsel %vm1813_vm2, %v1783_v16, %v3999_v35  ;;  %v1847_v52 = vsel %vm1813_vm2, %v1784_v63, %v4000_v29 }
 0x13c   : > { %v1797_v49 = vsel %vm1750_vm1, %v1734_v32, %v3994_v25  ;;  %v1798_v13 = vsel %vm1750_vm1, %v1735_v33, %v3995_v23  ;;  %v1706_v25 = vsel %vm1687_vm0, %v403_v57, %v4019_v8  ;;  %v628_v32 = vld [vmem:[%s4586_s14 + $0x1cb] sm:$0xff]  ;;  %v507_v8 = vld [vmem:[%s4586_s14 + $0x1e1] sm:$0xff]  ;;  %v691_v57 = vld [vmem:[%s4586_s14 + $0x1d4] sm:$0xff] }
 0x13d   : > { %v1860_v61 = vsel %vm1813_vm2, %v1797_v49, %v4004_v45  ;;  %v1861_v62 = vsel %vm1813_vm2, %v1798_v13, %v4005_v46  ;;  %v4246_v16 = vpack.i.bf16 %v628_v32, %v627_v31 }
 0x13e   : > { %v2127_v47 = vpop.f32.mrf.mxu0  ;;  %4222 = vrot.lane.b32.xlu1 %v4221_v22, %s4469_s15  ;;  %v566_v22 = vld [vmem:[%s4586_s14 + $0x1ca] sm:$0xff] }
 0x13f   : > { %v2128_v27 = vadd.f32 %v5141_v5, %v2127_v47  ;;  %4217 = vrot.lane.b32.xlu0 %v4216_v28, %s4469_s15  ;;  %v4241_v23 = vpack.i.bf16 %v566_v22, %v565_v20  ;;  %v1707_v28 = vsel %vm1687_vm0, %v404_v12, %v4020_v36  ;;  %v630_v36 = vld [vmem:[%s4586_s14 + $0x1db] sm:$0xff] }
 0x140   : > { %v4013_v19 = vpop.permute.xlu1 %4012  ;;  %4227 = vrot.lane.b32.xlu2 %v4226_v50, %s4471_s22  ;;  %v692_v12 = vld [vmem:[%s4586_s14 + $0x1dc] sm:$0xff] }
 0x141   : > { %v2276_v55 = vmax.f32 %v2128_v27, 0.0  ;;  %v4015_v56 = vunpack.i.h.bf16 %v4013_v19  ;;  %v4014_v58 = vunpack.i.l.bf16 %v4013_v19  ;;  %v4008_v38 = vpop.permute.xlu0 %4007  ;;  %v5281_v11 = vpop.permute.xlu2 %4062  ;;  %v629_v19 = vld [vmem:[%s4586_s14 + $0x1d3] sm:$0xff]  ;;  %v4271_v22 = vpack.i.bf16 %v692_v12, %v691_v57  ;;  %v405_v12 = vld [vmem:[%s4586_s14 + $0xa0] sm:$0xff] }
 0x142   : > { %v2396_v54 = vld [vmem:[#allocation2] ss:$4 sm:$0xff]  ;;  %v2428_v24 = vld [vmem:[#allocation2 + $0x1] ss:$4 sm:$0xff]  ;;  %v2460_v59 = vld [vmem:[#allocation2 + $0x2] ss:$4 sm:$0xff]  ;;  %v4010_v1 = vunpack.i.h.bf16 %v4008_v38  ;;  %v4009_v2 = vunpack.i.l.bf16 %v4008_v38 }
 0x143   : > { %v2492_v6 = vld [vmem:[#allocation2 + $0x3] ss:$4 sm:$0xff]  ;;  %v2523_v7 = vmax.f32 %v2396_v54, %v2428_v24  ;;  %2338 = vst.msk [vmem:[#allocation2 + $0x20] sm:$0xff] %vm1750_vm1, %v2276_v55  ;;  %v1923_v4 = vsel %vm1876_vm3, %v1860_v61, %v4014_v58  ;;  %v1924_v9 = vsel %vm1876_vm3, %v1861_v62, %v4015_v56  ;;  %v4266_v24 = vpack.i.bf16 %v630_v36, %v629_v19 }
 0x144   : > { %v2539_v41 = vmax.f32 %v2460_v59, %v2492_v6  ;;  %v1909_v10 = vsel %vm1876_vm3, %v1846_v17, %v4009_v2  ;;  %v1910_v60 = vsel %vm1876_vm3, %v1847_v52, %v4010_v1  ;;  %v1962_v43 = vpack.c.bf16 %v1924_v9, %v1923_v4  ;;  %v567_v17 = vld [vmem:[%s4586_s14 + $0x1d2] sm:$0xff]  ;;  %v568_v52 = vld [vmem:[%s4586_s14 + $0x1da] sm:$0xff]  ;;  %v569_v4 = vld [vmem:[%s4586_s14 + $0x1e2] sm:$0xff] }
 0x145   : > { %v1955_v26 = vpack.c.bf16 %v1910_v60, %v1909_v10  ;;  %v505_v55 = vld [vmem:[%s4586_s14 + $0x1d1] sm:$0xff]  ;;  %v506_v56 = vld [vmem:[%s4586_s14 + $0x1d9] sm:$0xff]  ;;  %v4261_v59 = vpack.i.bf16 %v568_v52, %v567_v17 }
 0x146   : > { %v2555_v15 = vmax.f32 %v2523_v7, %v2539_v41  ;;  %v2129_v18 = vpop.f32.mrf.mxu0  ;;  %3475 = vmatmul.msk.bf16.gmra.mxu3 %vm2014_vm4, %v1962_v43  ;;  %4237 = vrot.lane.b32.xlu1 %v4236_v51, %s4470_s16  ;;  %v4256_v54 = vpack.i.bf16 %v506_v56, %v505_v55  ;;  %v570_v9 = vld [vmem:[%s4586_s14 + $0x1ea] sm:$0xff] }
 0x147   : > { %v2130_v53 = vadd.f32 %v5141_v5, %v2129_v18  ;;  %4232 = vrot.lane.b32.xlu0 %v4231_v48, %s4471_s22  ;;  %3468 = vmatmul.msk.bf16.gmra.mxu2 %vm2014_vm4, %v1955_v26  ;;  %v508_v43 = vld [vmem:[%s4586_s14 + $0x1e9] sm:$0xff]  ;;  %v433_v26 = vld [vmem:[%s4586_s14 + $0x180] sm:$0xff] }
 0x148   : > { %2571 = vst.msk [vmem:[#allocation3] sm:$0xff] %vm1750_vm1, %v2555_v15  ;;  %v4028_v30 = vpop.permute.xlu1 %4027  ;;  %4242 = vrot.lane.b32.xlu2 %v4241_v23, %s4472_s24  ;;  %v420_v23 = vld [vmem:[%s4586_s14 + $0x118] sm:$0xff]  ;;  %v4276_v31 = vpack.i.bf16 %v508_v43, %v507_v8 }
 0x149   : > { %v2277_v33 = vmax.f32 %v2130_v53, 0.0  ;;  %v4030_v34 = vunpack.i.h.bf16 %v4028_v30  ;;  %v4029_v35 = vunpack.i.l.bf16 %v4028_v30  ;;  %v4023_v37 = vpop.permute.xlu0 %4022  ;;  %v5304_v0 = vpop.permute.xlu2 %4077  ;;  %v419_v53 = vld [vmem:[%s4586_s14 + $0x110] sm:$0xff] }
 0x14a   : > { %v4025_v40 = vunpack.i.h.bf16 %v4023_v37  ;;  %v4024_v29 = vunpack.i.l.bf16 %v4023_v37  ;;  %v4080_v57 = vunpack.i.h.bf16 %v5304_v0 }
 0x14b   : > { %2339 = vst.msk [vmem:[#allocation2 + $0x28] sm:$0xff] %vm1750_vm1, %v2277_v33 }
 0x14c   : > { %v1769_v46 = vsel %vm1750_vm1, %v1706_v25, %v4024_v29  ;;  %v1770_v45 = vsel %vm1750_vm1, %v1707_v28, %v4025_v40  ;;  %v4281_v25 = vpack.i.bf16 %v570_v9, %v569_v4 }
 0x14d   : > { %v1832_v47 = vsel %vm1813_vm2, %v1769_v46, %v4029_v35  ;;  %v1833_v48 = vsel %vm1813_vm2, %v1770_v45, %v4030_v34  ;;  %v4050_v34 = vunpack.i.h.bf16 %v5253_v21  ;;  %v4049_v35 = vunpack.i.l.bf16 %v5253_v21 }
 0x14e   : > { %v2132_v49 = vpop.f32.mrf.mxu0  ;;  %v1895_v13 = vsel %vm1876_vm3, %v1832_v47, %v4034_v42  ;;  %v1896_v27 = vsel %vm1876_vm3, %v1833_v48, %v4035_v44  ;;  %4252 = vrot.lane.b32.xlu1 %v4251_v39, %s4471_s22  ;;  %v693_v42 = vld [vmem:[%s4586_s14 + $0x1e4] sm:$0xff]  ;;  %v4065_v45 = vunpack.i.h.bf16 %v5281_v11  ;;  %v4064_v47 = vunpack.i.l.bf16 %v5281_v11 }
 0x14f   : > { %v2133_v50 = vadd.f32 %v5141_v5, %v2132_v49  ;;  %4247 = vrot.lane.b32.xlu0 %v4246_v16, %s4469_s15  ;;  %v1948_v63 = vpack.c.bf16 %v1896_v27, %v1895_v13  ;;  %v694_v16 = vld [vmem:[%s4586_s14 + $0x1ec] sm:$0xff]  ;;  %v4079_v11 = vunpack.i.l.bf16 %v5304_v0 }
 0x150   : > { %v4043_v51 = vpop.permute.xlu1 %4042  ;;  %4257 = vrot.lane.b32.xlu2 %v4256_v54, %s4470_s16  ;;  %v4291_v36 = vpack.i.bf16 %v694_v16, %v693_v42 }
 0x151   : > { %v2278_v58 = vmax.f32 %v2133_v50, 0.0  ;;  %v4038_v38 = vpop.permute.xlu0 %4037  ;;  %3461 = vmatmul.msk.bf16.gmra.mxu0 %vm2014_vm4, %v1948_v63  ;;  %v5321_v1 = vpop.permute.xlu2 %4092  ;;  %v4045_v41 = vunpack.i.h.bf16 %v4043_v51  ;;  %v4044_v10 = vunpack.i.l.bf16 %v4043_v51 }
 0x152   : > { %v4040_v15 = vunpack.i.h.bf16 %v4038_v38  ;;  %v4039_v18 = vunpack.i.l.bf16 %v4038_v38 }
 0x153   : > { %2340 = vst.msk [vmem:[#allocation2 + $0x30] sm:$0xff] %vm1750_vm1, %v2278_v58  ;;  %v1736_v32 = vsel %vm1687_vm0, %v433_v26, %v4044_v10  ;;  %v1737_v33 = vsel %vm1687_vm0, %v434_v14, %v4045_v41 }
 0x154   : > { %v2177_v61 = vpop.f32.mrf.mxu2  ;;  %v1722_v39 = vsel %vm1687_vm0, %v419_v53, %v4039_v18  ;;  %v1723_v40 = vsel %vm1687_vm0, %v420_v23, %v4040_v15  ;;  %v406_v15 = vld [vmem:[%s4586_s14 + $0xa8] sm:$0xff]  ;;  %v1708_v53 = vsel %vm1687_vm0, %v405_v12, %v4079_v11 }
 0x155   : > { %v2178_v62 = vadd.f32 %v5141_v5, %v2177_v61  ;;  %v1785_v63 = vsel %vm1750_vm1, %v1722_v39, %v4049_v35  ;;  %v1786_v17 = vsel %vm1750_vm1, %v1723_v40, %v4050_v34  ;;  %v4094_v39 = vunpack.i.l.bf16 %v5321_v1 }
 0x156   : > { %v2134_v2 = vpop.f32.mrf.mxu0  ;;  %4267 = vrot.lane.b32.xlu1 %v4266_v24, %s4469_s15 }
 0x157   : > { %v2296_v6 = vmax.f32 %v2178_v62, 0.0  ;;  %v2135_v7 = vadd.f32 %v5141_v5, %v2134_v2  ;;  %4262 = vrot.lane.b32.xlu0 %v4261_v59, %s4472_s24 }
 0x158   : > { %v5329_v60 = vpop.permute.xlu1 %4057  ;;  %4272 = vrot.lane.b32.xlu2 %v4271_v22, %s4471_s22  ;;  %v632_v22 = vld [vmem:[%s4586_s14 + $0x1eb] sm:$0xff] }
 0x159   : > { %2358 = vst.msk [vmem:[#allocation2 + $0xc0] sm:$0xff] %vm1750_vm1, %v2296_v6  ;;  %v2279_v3 = vmax.f32 %v2135_v7, 0.0  ;;  %v4053_v20 = vpop.permute.xlu0 %4052  ;;  %v4059_v29 = vunpack.i.l.bf16 %v5329_v60  ;;  %v4060_v46 = vunpack.i.h.bf16 %v5329_v60  ;;  %v5355_v21 = vpop.permute.xlu2 %4107 }
 0x15a   : > { %v4055_v28 = vunpack.i.h.bf16 %v4053_v20  ;;  %v4054_v30 = vunpack.i.l.bf16 %v4053_v20  ;;  %v631_v20 = vld [vmem:[%s4586_s14 + $0x1e3] sm:$0xff] }
 0x15b   : > { %2341 = vst.msk [vmem:[#allocation2 + $0x38] sm:$0xff] %vm1750_vm1, %v2279_v3  ;;  %v1848_v51 = vsel %vm1813_vm2, %v1785_v63, %v4059_v29  ;;  %v1849_v8 = vsel %vm1813_vm2, %v1786_v17, %v4060_v46 }
 0x15c   : > { %v2179_v37 = vpop.f32.mrf.mxu2  ;;  %v1799_v49 = vsel %vm1750_vm1, %v1736_v32, %v4054_v30  ;;  %v1800_v13 = vsel %vm1750_vm1, %v1737_v33, %v4055_v28  ;;  %v1709_v28 = vsel %vm1687_vm0, %v406_v15, %v4080_v57 }
 0x15d   : > { %v2180_v44 = vadd.f32 %v5141_v5, %v2179_v37  ;;  %v1862_v59 = vsel %vm1813_vm2, %v1799_v49, %v4064_v47  ;;  %v1863_v61 = vsel %vm1813_vm2, %v1800_v13, %v4065_v45  ;;  %v4095_v37 = vunpack.i.h.bf16 %v5321_v1 }
 0x15e   : > { %v2137_v48 = vpop.f32.mrf.mxu0  ;;  %4282 = vrot.lane.b32.xlu1 %v4281_v25, %s4472_s24  ;;  %v4286_v25 = vpack.i.bf16 %v632_v22, %v631_v20 }
 0x15f   : > { %v2297_v27 = vmax.f32 %v2180_v44, 0.0  ;;  %v2138_v50 = vadd.f32 %v5141_v5, %v2137_v48  ;;  %4277 = vrot.lane.b32.xlu0 %v4276_v31, %s4470_s16 }
 0x160   : > { %v4073_v19 = vpop.permute.xlu1 %4072  ;;  %4287 = vrot.lane.b32.xlu2 %v4286_v25, %s4469_s15  ;;  %s3372_s15 = sshll.u32 %s3368_s13, 4  ;;  %s3373_s15 = int_to_ptr.hbm [resolvable:$true] %s3372_s15 }
 0x161   : > { %2359 = vst.msk [vmem:[#allocation2 + $0xc8] sm:$0xff] %vm1750_vm1, %v2297_v27  ;;  %v2280_v52 = vmax.f32 %v2138_v50, 0.0  ;;  %v4075_v55 = vunpack.i.h.bf16 %v4073_v19  ;;  %v4074_v56 = vunpack.i.l.bf16 %v4073_v19  ;;  %v4068_v58 = vpop.permute.xlu0 %4067  ;;  %s4419_s30 = sshra.s32 %s3373_s15, 4  ;;  %s4420_s30 = int_to_ptr.hbm [resolvable:$true] %s4419_s30 }
 0x162   : > { %v2398_v38 = vld [vmem:[#allocation2 + $0x20] ss:$4 sm:$0xff]  ;;  %v2430_v54 = vld [vmem:[#allocation2 + $0x21] ss:$4 sm:$0xff]  ;;  %v2462_v24 = vld [vmem:[#allocation2 + $0x22] ss:$4 sm:$0xff]  ;;  %v4070_v62 = vunpack.i.h.bf16 %v4068_v58  ;;  %v4069_v2 = vunpack.i.l.bf16 %v4068_v58  ;;  %v5385_v23 = vpop.permute.xlu2 %4122  ;;  %p4426_p0 = scmp.lt.s32.totalorder %s4420_s30, %s5914_s11 }
 0x163   : > { %v2494_v6 = vld [vmem:[#allocation2 + $0x23] ss:$4 sm:$0xff]  ;;  %v2524_v7 = vmax.f32 %v2398_v38, %v2430_v54  ;;  %2342 = vst.msk [vmem:[#allocation2 + $0x40] sm:$0xff] %vm1750_vm1, %v2280_v52  ;;  %v1925_v4 = vsel %vm1876_vm3, %v1862_v59, %v4074_v56  ;;  %v1926_v9 = vsel %vm1876_vm3, %v1863_v61, %v4075_v55  ;;  %v4124_v15 = vunpack.i.l.bf16 %v5385_v23 }
 0x164   : > { %v2540_v41 = vmax.f32 %v2462_v24, %v2494_v6  ;;  %v1911_v10 = vsel %vm1876_vm3, %v1848_v51, %v4069_v2  ;;  %v1912_v60 = vsel %vm1876_vm3, %v1849_v8, %v4070_v62  ;;  %v1963_v43 = vpack.c.bf16 %v1926_v9, %v1925_v4  ;;  %v435_v38 = vld [vmem:[%s4586_s14 + $0x190] sm:$0xff]  ;;  %v421_v24 = vld [vmem:[%s4586_s14 + $0x120] sm:$0xff]  ;;  %v436_v61 = vld [vmem:[%s4586_s14 + $0x198] sm:$0xff] }
 0x165   : > { %v1956_v26 = vpack.c.bf16 %v1912_v60, %v1911_v10  ;;  %v422_v62 = vld [vmem:[%s4586_s14 + $0x128] sm:$0xff]  ;;  %v4109_v8 = vunpack.i.l.bf16 %v5355_v21 }
 0x166   : > { %v2556_v14 = vmax.f32 %v2524_v7, %v2540_v41  ;;  %v2139_v18 = vpop.f32.mrf.mxu0  ;;  %3476 = vmatmul.msk.bf16.gmra.mxu3 %vm2014_vm4, %v1963_v43  ;;  %v4110_v7 = vunpack.i.h.bf16 %v5355_v21  ;;  %v4125_v21 = vunpack.i.h.bf16 %v5385_v23 }
 0x167   : > { %v2140_v3 = vadd.f32 %v5141_v5, %v2139_v18  ;;  %3469 = vmatmul.msk.bf16.gmra.mxu2 %vm2014_vm4, %v1956_v26  ;;  %4292 = vrot.lane.b32.xlu0 %v4291_v36, %s4471_s22 }
 0x168   : > { %2572 = vst.msk [vmem:[#allocation3 + $0x8] sm:$0xff] %vm1750_vm1, %v2556_v14  ;;  %v4088_v0 = vpop.permute.xlu1 %4087 }
 0x169   : > { %v2281_v30 = vmax.f32 %v2140_v3, 0.0  ;;  %v4090_v31 = vunpack.i.h.bf16 %v4088_v0  ;;  %v4089_v32 = vunpack.i.l.bf16 %v4088_v0  ;;  %v4083_v33 = vpop.permute.xlu0 %4082 }
 0x16a   : > { %v4085_v34 = vunpack.i.h.bf16 %v4083_v33  ;;  %v4084_v35 = vunpack.i.l.bf16 %v4083_v33  ;;  %v5402_v17 = vpop.permute.xlu2 %4137 }
 0x16b   : > { %2343 = vst.msk [vmem:[#allocation2 + $0x48] sm:$0xff] %vm1750_vm1, %v2281_v30  ;;  %v2182_v40 = vpop.f32.mrf.mxu2  ;;  %v4140_v3 = vunpack.i.h.bf16 %v5402_v17 }
 0x16c   : > { %v1771_v29 = vsel %vm1750_vm1, %v1708_v53, %v4084_v35  ;;  %v1772_v44 = vsel %vm1750_vm1, %v1709_v28, %v4085_v34  ;;  %v2183_v42 = vadd.f32 %v5141_v5, %v2182_v40  ;;  %v4139_v35 = vunpack.i.l.bf16 %v5402_v17 }
 0x16d   : > { %v1834_v16 = vsel %vm1813_vm2, %v1771_v29, %v4089_v32  ;;  %v1835_v46 = vsel %vm1813_vm2, %v1772_v44, %v4090_v31 }
 0x16e   : > { %v2298_v45 = vmax.f32 %v2183_v42, 0.0  ;;  %v2142_v47 = vpop.f32.mrf.mxu0  ;;  %v1897_v48 = vsel %vm1876_vm3, %v1834_v16, %v4094_v39  ;;  %v1898_v1 = vsel %vm1876_vm3, %v1835_v46, %v4095_v37 }
 0x16f   : > { %v2143_v49 = vadd.f32 %v5141_v5, %v2142_v47  ;;  %v1949_v13 = vpack.c.bf16 %v1898_v1, %v1897_v48 }
 0x170   : > { %2360 = vst.msk [vmem:[#allocation2 + $0xd0] sm:$0xff] %vm1750_vm1, %v2298_v45  ;;  %v4103_v27 = vpop.permute.xlu1 %4102 }
 0x171   : > { %v2282_v50 = vmax.f32 %v2143_v49, 0.0  ;;  %v4098_v63 = vpop.permute.xlu0 %4097  ;;  %3462 = vmatmul.msk.bf16.gmra.mxu0 %vm2014_vm4, %v1949_v13  ;;  %v4104_v52 = vunpack.i.l.bf16 %v4103_v27  ;;  %v4105_v58 = vunpack.i.h.bf16 %v4103_v27 }
 0x172   : > { %v4099_v55 = vunpack.i.l.bf16 %v4098_v63  ;;  %v4100_v54 = vunpack.i.h.bf16 %v4098_v63  ;;  %v5419_v26 = vpop.permute.xlu2 %4152 }
 0x173   : > { %2344 = vst.msk [vmem:[#allocation2 + $0x50] sm:$0xff] %vm1750_vm1, %v2282_v50  ;;  %v2184_v19 = vpop.f32.mrf.mxu2  ;;  %v1738_v4 = vsel %vm1687_vm0, %v435_v38, %v4104_v52  ;;  %v1739_v60 = vsel %vm1687_vm0, %v436_v61, %v4105_v58  ;;  %v408_v52 = vld [vmem:[%s4586_s14 + $0xb8] sm:$0xff] }
 0x174   : > { %v2185_v11 = vadd.f32 %v5141_v5, %v2184_v19  ;;  %v1724_v9 = vsel %vm1687_vm0, %v421_v24, %v4099_v55  ;;  %v1725_v43 = vsel %vm1687_vm0, %v422_v62, %v4100_v54 }
 0x175   : > { %v1787_v14 = vsel %vm1750_vm1, %v1724_v9, %v4109_v8  ;;  %v1788_v20 = vsel %vm1750_vm1, %v1725_v43, %v4110_v7  ;;  %v4155_v8 = vunpack.i.h.bf16 %v5419_v26 }
 0x176   : > { %v2299_v36 = vmax.f32 %v2185_v11, 0.0  ;;  %v2144_v51 = vpop.f32.mrf.mxu0 }
 0x177   : > { %v2145_v56 = vadd.f32 %v5141_v5, %v2144_v51  ;;  %v407_v51 = vld [vmem:[%s4586_s14 + $0xb0] sm:$0xff] }
 0x178   : > { %2361 = vst.msk [vmem:[#allocation2 + $0xd8] sm:$0xff] %vm1750_vm1, %v2299_v36  ;;  %v4118_v59 = vpop.permute.xlu1 %4117  ;;  %v1710_v24 = vsel %vm1687_vm0, %v407_v51, %v4139_v35 }
 0x179   : > { %v2283_v2 = vmax.f32 %v2145_v56, 0.0  ;;  %v4113_v6 = vpop.permute.xlu0 %4112  ;;  %v4120_v57 = vunpack.i.h.bf16 %v4118_v59  ;;  %v4119_v12 = vunpack.i.l.bf16 %v4118_v59  ;;  %v1711_v59 = vsel %vm1687_vm0, %v408_v52, %v4140_v3 }
 0x17a   : > { %v4115_v41 = vunpack.i.h.bf16 %v4113_v6  ;;  %v4114_v10 = vunpack.i.l.bf16 %v4113_v6  ;;  %v5443_v38 = vpop.permute.xlu2 %4167 }
 0x17b   : > { %2345 = vst.msk [vmem:[#allocation2 + $0x58] sm:$0xff] %vm1750_vm1, %v2283_v2  ;;  %v1850_v33 = vsel %vm1813_vm2, %v1787_v14, %v4119_v12  ;;  %v1851_v23 = vsel %vm1813_vm2, %v1788_v20, %v4120_v57 }
 0x17c   : > { %v1801_v25 = vsel %vm1750_vm1, %v1738_v4, %v4114_v10  ;;  %v1802_v28 = vsel %vm1750_vm1, %v1739_v60, %v4115_v41  ;;  %v4154_v10 = vunpack.i.l.bf16 %v5419_v26 }
 0x17d   : > { %v1864_v45 = vsel %vm1813_vm2, %v1801_v25, %v4124_v15  ;;  %v1865_v47 = vsel %vm1813_vm2, %v1802_v28, %v4125_v21 }
 0x17e   : > { %v2147_v18 = vpop.f32.mrf.mxu0 }
 0x17f   : > { %v2408_v22 = vld [vmem:[#allocation2 + $0xc0] ss:$4 sm:$0xff]  ;;  %v2440_v53 = vld [vmem:[#allocation2 + $0xc1] ss:$4 sm:$0xff]  ;;  %v2472_v0 = vld [vmem:[#allocation2 + $0xc2] ss:$4 sm:$0xff]  ;;  %v2148_v30 = vadd.f32 %v5141_v5, %v2147_v18 }
 0x180   : > { %v2504_v31 = vld [vmem:[#allocation2 + $0xc3] ss:$4 sm:$0xff]  ;;  %v2529_v32 = vmax.f32 %v2408_v22, %v2440_v53  ;;  %v4133_v34 = vpop.permute.xlu1 %4132 }
 0x181   : > { %v2545_v37 = vmax.f32 %v2472_v0, %v2504_v31  ;;  %v2284_v39 = vmax.f32 %v2148_v30, 0.0  ;;  %v4135_v40 = vunpack.i.h.bf16 %v4133_v34  ;;  %v4134_v29 = vunpack.i.l.bf16 %v4133_v34  ;;  %v4128_v44 = vpop.permute.xlu0 %4127  ;;  %v2620_v53 = vld [vmem:[#allocation3 + $0x2] sm:$0xff] }
 0x182   : > { %v2400_v42 = vld [vmem:[#allocation2 + $0x40] ss:$4 sm:$0xff]  ;;  %v2432_v16 = vld [vmem:[#allocation2 + $0x41] ss:$4 sm:$0xff]  ;;  %v2464_v46 = vld [vmem:[#allocation2 + $0x42] ss:$4 sm:$0xff]  ;;  %v4130_v48 = vunpack.i.h.bf16 %v4128_v44  ;;  %v4129_v1 = vunpack.i.l.bf16 %v4128_v44  ;;  %v4183_v34 = vpop.permute.xlu2 %4182 }
 0x183   : > { %v2561_v49 = vmax.f32 %v2529_v32, %v2545_v37  ;;  %v2496_v13 = vld [vmem:[#allocation2 + $0x43] ss:$4 sm:$0xff]  ;;  %v2525_v27 = vmax.f32 %v2400_v42, %v2432_v16  ;;  %2346 = vst.msk [vmem:[#allocation2 + $0x60] sm:$0xff] %vm1750_vm1, %v2284_v39  ;;  %v1927_v50 = vsel %vm1876_vm3, %v1864_v45, %v4134_v29  ;;  %v1928_v63 = vsel %vm1876_vm3, %v1865_v47, %v4135_v40  ;;  %v5475_v45 = vld [vmem:[%s5905_s2] ss:$0 sm:$0xff] }
 0x184   : > { %v2541_v17 = vmax.f32 %v2464_v46, %v2496_v13  ;;  %v1913_v19 = vsel %vm1876_vm3, %v1850_v33, %v4129_v1  ;;  %v1914_v11 = vsel %vm1876_vm3, %v1851_v23, %v4130_v48  ;;  %v1964_v36 = vpack.c.bf16 %v1928_v63, %v1927_v50  ;;  %v2604_v30 = vld [vmem:[#allocation3 + $0x1] sm:$0xff]  ;;  %v438_v13 = vld [vmem:[%s4586_s14 + $0x1a8] sm:$0xff] }
 0x185   : > { %2577 = vst.msk [vmem:[#allocation3 + $0x30] sm:$0xff] %vm1750_vm1, %v2561_v49  ;;  %v1957_v55 = vpack.c.bf16 %v1914_v11, %v1913_v19  ;;  %v423_v19 = vld [vmem:[%s4586_s14 + $0x130] sm:$0xff] }
 0x186   : > { %v2557_v56 = vmax.f32 %v2525_v27, %v2541_v17  ;;  %v2149_v58 = vpop.f32.mrf.mxu0  ;;  %3477 = vmatmul.msk.bf16.gmra.mxu3 %vm2014_vm4, %v1964_v36  ;;  %v424_v36 = vld [vmem:[%s4586_s14 + $0x138] sm:$0xff] }
 0x187   : > { %v2150_v54 = vadd.f32 %v5141_v5, %v2149_v58  ;;  %3470 = vmatmul.msk.bf16.gmra.mxu2 %vm2014_vm4, %v1957_v55  ;;  %v4169_v58 = vunpack.i.l.bf16 %v5443_v38 }
 0x188   : > { %2573 = vst.msk [vmem:[#allocation3 + $0x10] sm:$0xff] %vm1750_vm1, %v2557_v56  ;;  %v4148_v61 = vpop.permute.xlu1 %4147 }
 0x189   : > { %v2285_v62 = vmax.f32 %v2150_v54, 0.0  ;;  %v4150_v2 = vunpack.i.h.bf16 %v4148_v61  ;;  %v4149_v6 = vunpack.i.l.bf16 %v4148_v61  ;;  %v4143_v7 = vpop.permute.xlu0 %4142  ;;  %v2222_v4 = vpop.f32.mrf.mxu3 }
 0x18a   : > { %v4145_v9 = vunpack.i.h.bf16 %v4143_v7  ;;  %v4144_v41 = vunpack.i.l.bf16 %v4143_v7  ;;  %v2187_v60 = vpop.f32.mrf.mxu2  ;;  %v2223_v43 = vadd.f32 %v5141_v5, %v2222_v4  ;;  %v5481_v11 = vpop.permute.xlu2 %4197 }
 0x18b   : > { %2347 = vst.msk [vmem:[#allocation2 + $0x68] sm:$0xff] %vm1750_vm1, %v2285_v62  ;;  %v2188_v57 = vadd.f32 %v5141_v5, %v2187_v60  ;;  %v4185_v62 = vunpack.i.h.bf16 %v4183_v34 }
 0x18c   : > { %v1773_v12 = vsel %vm1750_vm1, %v1710_v24, %v4144_v41  ;;  %v1774_v14 = vsel %vm1750_vm1, %v1711_v59, %v4145_v9  ;;  %v2314_v21 = vmax.f32 %v2223_v43, 0.0  ;;  %v4170_v24 = vunpack.i.h.bf16 %v5443_v38 }
 0x18d   : > { %v2300_v15 = vmax.f32 %v2188_v57, 0.0  ;;  %v1836_v18 = vsel %vm1813_vm2, %v1773_v12, %v4149_v6  ;;  %v1837_v3 = vsel %vm1813_vm2, %v1774_v14, %v4150_v2  ;;  %v4184_v2 = vunpack.i.l.bf16 %v4183_v34 }
 0x18e   : > { %2376 = vst.msk [vmem:[#allocation2 + $0x150] sm:$0xff] %vm1750_vm1, %v2314_v21  ;;  %v2152_v26 = vpop.f32.mrf.mxu0  ;;  %v1899_v20 = vsel %vm1876_vm3, %v1836_v18, %v4154_v10  ;;  %v1900_v22 = vsel %vm1876_vm3, %v1837_v3, %v4155_v8 }
 0x18f   : > { %2362 = vst.msk [vmem:[#allocation2 + $0xe0] sm:$0xff] %vm1750_vm1, %v2300_v15  ;;  %v2153_v0 = vadd.f32 %v5141_v5, %v2152_v26  ;;  %v1950_v25 = vpack.c.bf16 %v1900_v22, %v1899_v20  ;;  %v2621_v28 = vld [vmem:[#allocation3 + $0xa] sm:$0xff] }
 0x190   : > { %v2605_v31 = vld [vmem:[#allocation3 + $0x9] sm:$0xff]  ;;  %v4163_v32 = vpop.permute.xlu1 %4162  ;;  %v4301_v33 = vpack.i.bf16 %v2621_v28, %v2620_v53 }
 0x191   : > { %v4296_v23 = vpack.i.bf16 %v2605_v31, %v2604_v30  ;;  %v2286_v35 = vmax.f32 %v2153_v0, 0.0  ;;  %v4158_v37 = vpop.permute.xlu0 %4157  ;;  %3463 = vmatmul.msk.bf16.gmra.mxu0 %vm2014_vm4, %v1950_v25  ;;  %v2224_v39 = vpop.f32.mrf.mxu3  ;;  %v4165_v48 = vunpack.i.h.bf16 %v4163_v32  ;;  %v4164_v1 = vunpack.i.l.bf16 %v4163_v32 }
 0x192   : > { %4302 = vrot.lane.b32.xlu2 %v4301_v33, %s4471_s22  ;;  %v2189_v40 = vpop.f32.mrf.mxu2  ;;  %v2225_v29 = vadd.f32 %v5141_v5, %v2224_v39  ;;  %v4159_v27 = vunpack.i.l.bf16 %v4158_v37  ;;  %v4160_v17 = vunpack.i.h.bf16 %v4158_v37  ;;  %v5503_v32 = vpop.permute.xlu2 %4212 }
 0x193   : > { %4297 = vrot.lane.b32.xlu1 %v4296_v23, %s4472_s24  ;;  %2348 = vst.msk [vmem:[#allocation2 + $0x70] sm:$0xff] %vm1750_vm1, %v2286_v35  ;;  %v2190_v44 = vadd.f32 %v5141_v5, %v2189_v40  ;;  %v437_v5 = vld [vmem:[%s4586_s14 + $0x1a0] sm:$0xff]  ;;  %v1741_v56 = vsel %vm1687_vm0, %v438_v13, %v4165_v48 }
 0x194   : > { %v2315_v42 = vmax.f32 %v2225_v29, 0.0  ;;  %v1740_v55 = vsel %vm1687_vm0, %v437_v5, %v4164_v1  ;;  %v1726_v54 = vsel %vm1687_vm0, %v423_v19, %v4159_v27  ;;  %v1727_v61 = vsel %vm1687_vm0, %v424_v36, %v4160_v17 }
 0x195   : > { %v2301_v16 = vmax.f32 %v2190_v44, 0.0  ;;  %v1789_v4 = vsel %vm1750_vm1, %v1726_v54, %v4169_v58  ;;  %v1790_v41 = vsel %vm1750_vm1, %v1727_v61, %v4170_v24  ;;  %v4200_v44 = vunpack.i.h.bf16 %v5481_v11 }
 0x196   : > { %2377 = vst.msk [vmem:[#allocation2 + $0x158] sm:$0xff] %vm1750_vm1, %v2315_v42  ;;  %v2154_v46 = vpop.f32.mrf.mxu0  ;;  %v4199_v42 = vunpack.i.l.bf16 %v5481_v11 }
 0x197   : > { %2363 = vst.msk [vmem:[#allocation2 + $0xe8] sm:$0xff] %vm1750_vm1, %v2301_v16  ;;  %v2155_v47 = vadd.f32 %v5475_v45, %v2154_v46  ;;  %v425_v46 = vld [vmem:[%s4586_s14 + $0x140] sm:$0xff] }
 0x198   : > { %v4178_v49 = vpop.permute.xlu1 %4177 }
 0x199   : > { %v2287_v50 = vmax.f32 %v2155_v47, 0.0  ;;  %v4173_v63 = vpop.permute.xlu0 %4172  ;;  %v4179_v59 = vunpack.i.l.bf16 %v4178_v49  ;;  %v4180_v6 = vunpack.i.h.bf16 %v4178_v49  ;;  %v426_v47 = vld [vmem:[%s4586_s14 + $0x148] sm:$0xff] }
 0x19a   : > { %v4175_v51 = vunpack.i.h.bf16 %v4173_v63  ;;  %v4174_v52 = vunpack.i.l.bf16 %v4173_v63  ;;  %v4228_v49 = vpop.permute.xlu2 %4227  ;;  %v1729_v63 = vsel %vm1687_vm0, %v426_v47, %v4200_v44 }
 0x19b   : > { %2349 = vst.msk [vmem:[#allocation2 + $0x78] sm:$0xff] %vm1750_vm1, %v2287_v50  ;;  %v1852_v10 = vsel %vm1813_vm2, %v1789_v4, %v4179_v59  ;;  %v1853_v22 = vsel %vm1813_vm2, %v1790_v41, %v4180_v6  ;;  %v1728_v50 = vsel %vm1687_vm0, %v425_v46, %v4199_v42  ;;  %v4230_v36 = vunpack.i.h.bf16 %v4228_v49 }
 0x19c   : > { %v1803_v7 = vsel %vm1750_vm1, %v1740_v55, %v4174_v52  ;;  %v1804_v8 = vsel %vm1750_vm1, %v1741_v56, %v4175_v51  ;;  %v4229_v51 = vunpack.i.l.bf16 %v4228_v49 }
 0x19d   : > { %v1866_v21 = vsel %vm1813_vm2, %v1803_v7, %v4184_v2  ;;  %v1867_v15 = vsel %vm1813_vm2, %v1804_v8, %v4185_v62  ;;  %v439_v2 = vld [vmem:[%s4586_s14 + $0x1b0] sm:$0xff]  ;;  %v440_v7 = vld [vmem:[%s4586_s14 + $0x1b8] sm:$0xff] }
 0x1a0   : > { %v4193_v9 = vpop.permute.xlu1 %4192 }
 0x1a1   : > { %v4195_v60 = vunpack.i.h.bf16 %v4193_v9  ;;  %v4194_v43 = vunpack.i.l.bf16 %v4193_v9  ;;  %v4188_v38 = vpop.permute.xlu0 %4187 }
 0x1a2   : > { %v2402_v57 = vld [vmem:[#allocation2 + $0x60] ss:$4 sm:$0xff]  ;;  %v2434_v12 = vld [vmem:[#allocation2 + $0x61] ss:$4 sm:$0xff]  ;;  %v2466_v14 = vld [vmem:[#allocation2 + $0x62] ss:$4 sm:$0xff]  ;;  %v4190_v18 = vunpack.i.h.bf16 %v4188_v38  ;;  %v4189_v3 = vunpack.i.l.bf16 %v4188_v38  ;;  %v4215_v38 = vunpack.i.h.bf16 %v5503_v32 }
 0x1a3   : > { %v2498_v26 = vld [vmem:[#allocation2 + $0x63] ss:$4 sm:$0xff]  ;;  %v2526_v20 = vmax.f32 %v2402_v57, %v2434_v12  ;;  %v1929_v53 = vsel %vm1876_vm3, %v1866_v21, %v4194_v43  ;;  %v1930_v0 = vsel %vm1876_vm3, %v1867_v15, %v4195_v60  ;;  %v4214_v57 = vunpack.i.l.bf16 %v5503_v32 }
 0x1a4   : > { %v2542_v25 = vmax.f32 %v2466_v14, %v2498_v26  ;;  %v1915_v28 = vsel %vm1876_vm3, %v1852_v10, %v4189_v3  ;;  %v1916_v30 = vsel %vm1876_vm3, %v1853_v22, %v4190_v18  ;;  %v1965_v31 = vpack.c.bf16 %v1930_v0, %v1929_v53 }
 0x1a5   : > { %v1958_v33 = vpack.c.bf16 %v1916_v30, %v1915_v28 }
 0x1a6   : > { %v2558_v23 = vmax.f32 %v2526_v20, %v2542_v25  ;;  %3478 = vmatmul.msk.bf16.gmra.mxu3 %vm2014_vm4, %v1965_v31 }
 0x1a7   : > { %3471 = vmatmul.msk.bf16.gmra.mxu2 %vm2014_vm4, %v1958_v33 }
 0x1a8   : > { %2574 = vst.msk [vmem:[#allocation3 + $0x18] sm:$0xff] %vm1750_vm1, %v2558_v23  ;;  %v4208_v34 = vpop.permute.xlu1 %4207 }
 0x1a9   : > { %v4203_v35 = vpop.permute.xlu0 %4202  ;;  %v2227_v37 = vpop.f32.mrf.mxu3  ;;  %v4210_v5 = vunpack.i.h.bf16 %v4208_v34  ;;  %v4209_v13 = vunpack.i.l.bf16 %v4208_v34 }
 0x1aa   : > { %v2192_v39 = vpop.f32.mrf.mxu2  ;;  %v2228_v40 = vadd.f32 %v5475_v45, %v2227_v37  ;;  %v4204_v55 = vunpack.i.l.bf16 %v4203_v35  ;;  %v4205_v62 = vunpack.i.h.bf16 %v4203_v35  ;;  %v441_v35 = vld [vmem:[%s4586_s14 + $0x1c0] sm:$0xff]  ;;  %v442_v37 = vld [vmem:[%s4586_s14 + $0x1c8] sm:$0xff] }
 0x1ab   : > { %v2193_v29 = vadd.f32 %v5475_v45, %v2192_v39  ;;  %v1791_v59 = vsel %vm1750_vm1, %v1728_v50, %v4209_v13  ;;  %v1792_v61 = vsel %vm1750_vm1, %v1729_v63, %v4210_v5 }
 0x1ac   : > { %v2316_v16 = vmax.f32 %v2228_v40, 0.0  ;;  %v1742_v43 = vsel %vm1687_vm0, %v439_v2, %v4204_v55  ;;  %v1743_v21 = vsel %vm1687_vm0, %v440_v7, %v4205_v62  ;;  %v4243_v40 = vpop.permute.xlu2 %4242 }
 0x1ad   : > { %v2302_v48 = vmax.f32 %v2193_v29, 0.0  ;;  %v1805_v53 = vsel %vm1750_vm1, %v1742_v43, %v4214_v57  ;;  %v1806_v0 = vsel %vm1750_vm1, %v1743_v21, %v4215_v38 }
 0x1ae   : > { %2378 = vst.msk [vmem:[#allocation2 + $0x160] sm:$0xff] %vm1750_vm1, %v2316_v16  ;;  %v2157_v1 = vpop.f32.mrf.mxu0 }
 0x1af   : > { %2364 = vst.msk [vmem:[#allocation2 + $0xf0] sm:$0xff] %vm1750_vm1, %v2302_v48  ;;  %v2158_v27 = vadd.f32 %v5475_v45, %v2157_v1  ;;  %v4245_v48 = vunpack.i.h.bf16 %v4243_v40  ;;  %v4244_v1 = vunpack.i.l.bf16 %v4243_v40  ;;  %v3602_v40 = vld [vmem:[%s5906_s3 + $0x20] sm:$0xff] }
 0x1b0   : > { %v4223_v17 = vpop.permute.xlu1 %4222 }
 0x1b1   : > { %v2288_v19 = vmax.f32 %v2158_v27, 0.0  ;;  %v4218_v11 = vpop.permute.xlu0 %4217  ;;  %v2229_v52 = vpop.f32.mrf.mxu3  ;;  %v4225_v15 = vunpack.i.h.bf16 %v4223_v17  ;;  %v4224_v18 = vunpack.i.l.bf16 %v4223_v17 }
 0x1b2   : > { %v4220_v56 = vunpack.i.h.bf16 %v4218_v11  ;;  %v4219_v58 = vunpack.i.l.bf16 %v4218_v11  ;;  %v2194_v54 = vpop.f32.mrf.mxu2  ;;  %v2230_v24 = vadd.f32 %v5475_v45, %v2229_v52 }
 0x1b3   : > { %2350 = vst.msk [vmem:[#allocation2 + $0x80] sm:$0xff] %vm1750_vm1, %v2288_v19  ;;  %v2195_v6 = vadd.f32 %v5475_v45, %v2194_v54  ;;  %v1868_v30 = vsel %vm1813_vm2, %v1805_v53, %v4224_v18  ;;  %v1869_v31 = vsel %vm1813_vm2, %v1806_v0, %v4225_v15 }
 0x1b4   : > { %v1854_v8 = vsel %vm1813_vm2, %v1791_v59, %v4219_v58  ;;  %v1855_v4 = vsel %vm1813_vm2, %v1792_v61, %v4220_v56  ;;  %v2317_v9 = vmax.f32 %v2230_v24, 0.0  ;;  %v4258_v58 = vpop.permute.xlu2 %4257 }
 0x1b5   : > { %v2303_v41 = vmax.f32 %v2195_v6, 0.0  ;;  %v1917_v10 = vsel %vm1876_vm3, %v1854_v8, %v4229_v51  ;;  %v1918_v60 = vsel %vm1876_vm3, %v1855_v4, %v4230_v36  ;;  %v4260_v7 = vunpack.i.h.bf16 %v4258_v58 }
 0x1b6   : > { %2379 = vst.msk [vmem:[#allocation2 + $0x168] sm:$0xff] %vm1750_vm1, %v2317_v9  ;;  %v2159_v12 = vpop.f32.mrf.mxu0  ;;  %v1959_v14 = vpack.c.bf16 %v1918_v60, %v1917_v10  ;;  %v4259_v8 = vunpack.i.l.bf16 %v4258_v58  ;;  %v444_v10 = vld [vmem:[%s4586_s14 + $0x1d8] sm:$0xff] }
 0x1b7   : > { %2365 = vst.msk [vmem:[#allocation2 + $0xf8] sm:$0xff] %vm1750_vm1, %v2303_v41  ;;  %v2160_v3 = vadd.f32 %v5475_v45, %v2159_v12  ;;  %v443_v41 = vld [vmem:[%s4586_s14 + $0x1d0] sm:$0xff]  ;;  %v1747_v21 = vsel %vm1687_vm0, %v444_v10, %v4260_v7 }
 0x1b8   : > { %3472 = vmatmul.msk.bf16.gmra.mxu2 %vm2014_vm4, %v1959_v14  ;;  %v4238_v22 = vpop.permute.xlu1 %4237  ;;  %v1746_v14 = vsel %vm1687_vm0, %v443_v41, %v4259_v8 }
 0x1b9   : > { %v2289_v26 = vmax.f32 %v2160_v3, 0.0  ;;  %v4233_v20 = vpop.permute.xlu0 %4232  ;;  %v4240_v23 = vunpack.i.h.bf16 %v4238_v22  ;;  %v4239_v34 = vunpack.i.l.bf16 %v4238_v22 }
 0x1ba   : > { %v4235_v25 = vunpack.i.h.bf16 %v4233_v20  ;;  %v4234_v28 = vunpack.i.l.bf16 %v4233_v20 }
 0x1bb   : > { %2351 = vst.msk [vmem:[#allocation2 + $0x88] sm:$0xff] %vm1750_vm1, %v2289_v26  ;;  %v1744_v49 = vsel %vm1687_vm0, %v441_v35, %v4239_v34  ;;  %v1745_v5 = vsel %vm1687_vm0, %v442_v37, %v4240_v23 }
 0x1bc   : > { %v1931_v32 = vsel %vm1876_vm3, %v1868_v30, %v4234_v28  ;;  %v1932_v33 = vsel %vm1876_vm3, %v1869_v31, %v4235_v25  ;;  %v1807_v19 = vsel %vm1750_vm1, %v1744_v49, %v4244_v1  ;;  %v1808_v11 = vsel %vm1750_vm1, %v1745_v5, %v4245_v48  ;;  %v4273_v0 = vpop.permute.xlu2 %4272  ;;  %v3603_v25 = vld [vmem:[%s5906_s3 + $0x28] sm:$0xff] }
 0x1bd   : > { %v1966_v39 = vpack.c.bf16 %v1932_v33, %v1931_v32  ;;  %2883 = vmatpush.bf16.msra.mxu1 %v3603_v25  ;;  %v4275_v33 = vunpack.i.h.bf16 %v4273_v0  ;;  %v4274_v23 = vunpack.i.l.bf16 %v4273_v0 }
 0x1be   : > { %v2410_v29 = vld [vmem:[#allocation2 + $0xe0] ss:$4 sm:$0xff]  ;;  %v2442_v44 = vld [vmem:[#allocation2 + $0xe1] ss:$4 sm:$0xff]  ;;  %v2474_v42 = vld [vmem:[#allocation2 + $0xe2] ss:$4 sm:$0xff] }
 0x1bf   : > { %v2506_v16 = vld [vmem:[#allocation2 + $0xe3] ss:$4 sm:$0xff]  ;;  %v2530_v46 = vmax.f32 %v2410_v29, %v2442_v44  ;;  %3479 = vmatmul.msk.bf16.gmra.mxu3 %vm2014_vm4, %v1966_v39 }
 0x1c0   : > { %v2546_v47 = vmax.f32 %v2474_v42, %v2506_v16  ;;  %v4253_v17 = vpop.permute.xlu1 %4252 }
 0x1c1   : > { %v4248_v13 = vpop.permute.xlu0 %4247  ;;  %v4255_v36 = vunpack.i.h.bf16 %v4253_v17  ;;  %v4254_v51 = vunpack.i.l.bf16 %v4253_v17  ;;  %2884 = vmatpush.bf16.msra.mxu1 %v3602_v40  ;;  %v445_v17 = vld [vmem:[%s4586_s14 + $0x1e0] sm:$0xff] }
 0x1c2   : > { %v2562_v27 = vmax.f32 %v2530_v46, %v2546_v47  ;;  %v4250_v50 = vunpack.i.h.bf16 %v4248_v13  ;;  %v4249_v63 = vunpack.i.l.bf16 %v4248_v13  ;;  %v3601_v46 = vld [vmem:[%s5906_s3 + $0x18] sm:$0xff] }
 0x1c4   : > { %2578 = vst.msk [vmem:[#allocation3 + $0x38] sm:$0xff] %vm1750_vm1, %v2562_v27  ;;  %v1870_v52 = vsel %vm1813_vm2, %v1807_v19, %v4249_v63  ;;  %v1871_v55 = vsel %vm1813_vm2, %v1808_v11, %v4250_v50  ;;  %v446_v19 = vld [vmem:[%s4586_s14 + $0x1e8] sm:$0xff]  ;;  %s4421_s14 = scalar_lea.hbm %s4420_s30, 1 }
 0x1c5   : > { %v1933_v59 = vsel %vm1876_vm3, %v1870_v52, %v4254_v51  ;;  %v1934_v61 = vsel %vm1876_vm3, %v1871_v55, %v4255_v36  ;;  %2885 = vmatpush.bf16.msra.mxu1 %v3601_v46  ;;  %v3600_v36 = vld [vmem:[%s5906_s3 + $0x10] sm:$0xff]  ;;  %v4288_v55 = vpop.permute.xlu2 %4287  ;;  %p4422_p11 = scmp.ne.s32.totalorder %s4420_s30, %s4421_s14  ;;  %p4427_p1 = scmp.lt.s32.totalorder %s4425_s21, %s4421_s14 }
 0x1c6   : > { %v1967_v4 = vpack.c.bf16 %v1934_v61, %v1933_v59  ;;  %v4289_v7 = vunpack.i.l.bf16 %v4288_v55 }
 0x1c7   : > { %p4423_p12 = pnand %p4422_p11, %p4571_p5  ;;  %p4428_p2 = por %p4427_p1, %p4426_p0 }
 0x1c8   : > { %v4268_v12 = vpop.permute.xlu1 %4267 }
 0x1c9   : > { %v2232_v56 = vpop.f32.mrf.mxu3  ;;  %v4263_v9 = vpop.permute.xlu0 %4262  ;;  %v4270_v22 = vunpack.i.h.bf16 %v4268_v12  ;;  %v4269_v53 = vunpack.i.l.bf16 %v4268_v12  ;;  %2886 = vmatpush.bf16.msra.mxu1 %v3600_v36  ;;  %p4424_p13 = pneg %p4423_p12 }
 0x1ca   : > { %v2197_v54 = vpop.f32.mrf.mxu2  ;;  %v2233_v24 = vadd.f32 %v5475_v45, %v2232_v56  ;;  %v4265_v38 = vunpack.i.h.bf16 %v4263_v9  ;;  %v4264_v57 = vunpack.i.l.bf16 %v4263_v9 }
 0x1cb   : > { %v2198_v62 = vadd.f32 %v5475_v45, %v2197_v54  ;;  %p4429_p3 = pnand %p4428_p2, %p4424_p13 }
 0x1cc   : > { %v2318_v2 = vmax.f32 %v2233_v24, 0.0  ;;  %v1809_v28 = vsel %vm1750_vm1, %v1746_v14, %v4264_v57  ;;  %v1810_v30 = vsel %vm1750_vm1, %v1747_v21, %v4265_v38  ;;  %v3598_v14 = vld [vmem:[%s5906_s3] sm:$0xff] }
 0x1cd   : > { %v2304_v6 = vmax.f32 %v2198_v62, 0.0  ;;  %v1872_v35 = vsel %vm1813_vm2, %v1809_v28, %v4269_v53  ;;  %v1873_v37 = vsel %vm1813_vm2, %v1810_v30, %v4270_v22  ;;  %v2606_v28 = vld [vmem:[#allocation3 + $0x11] sm:$0xff] }
 0x1ce   : > { %2380 = vst.msk [vmem:[#allocation2 + $0x170] sm:$0xff] %vm1750_vm1, %v2318_v2  ;;  %v2162_v60 = vpop.f32.mrf.mxu0  ;;  %v1935_v42 = vsel %vm1876_vm3, %v1872_v35, %v4274_v23  ;;  %v1936_v16 = vsel %vm1876_vm3, %v1873_v37, %v4275_v33 }
 0x1cf   : > { %2366 = vst.msk [vmem:[#allocation2 + $0x100] sm:$0xff] %vm1750_vm1, %v2304_v6  ;;  %v2163_v43 = vadd.f32 %v5475_v45, %v2162_v60  ;;  %3480 = vmatmul.msk.bf16.gmra.mxu3 %vm2014_vm4, %v1967_v4  ;;  %v1968_v13 = vpack.c.bf16 %v1936_v16, %v1935_v42  ;;  %v4290_v6 = vunpack.i.h.bf16 %v4288_v55  ;;  %v3599_v4 = vld [vmem:[%s5906_s3 + $0x8] sm:$0xff]  ;;  %v2588_v55 = vld [vmem:[#allocation3] sm:$0xff] }
 0x1d0   : > { %v4283_v27 = vpop.permute.xlu1 %4282  ;;  %2887 = vmatpush.bf16.msra.mxu1 %v3599_v4 }
 0x1d1   : > { %v2290_v15 = vmax.f32 %v2163_v43, 0.0  ;;  %v2234_v18 = vpop.f32.mrf.mxu3  ;;  %v4278_v44 = vpop.permute.xlu0 %4277  ;;  %v4285_v51 = vunpack.i.h.bf16 %v4283_v27  ;;  %v4284_v52 = vunpack.i.l.bf16 %v4283_v27 }
 0x1d2   : > { %v2199_v3 = vpop.f32.mrf.mxu2  ;;  %v2235_v26 = vadd.f32 %v5475_v45, %v2234_v18  ;;  %v4280_v49 = vunpack.i.h.bf16 %v4278_v44  ;;  %v4279_v5 = vunpack.i.l.bf16 %v4278_v44 }
 0x1d3   : > { %2352 = vst.msk [vmem:[#allocation2 + $0x90] sm:$0xff] %vm1750_vm1, %v2290_v15  ;;  %v2200_v20 = vadd.f32 %v5475_v45, %v2199_v3 }
 0x1d4   : > { %v2319_v31 = vmax.f32 %v2235_v26, 0.0  ;;  %v1748_v58 = vsel %vm1687_vm0, %v445_v17, %v4279_v5  ;;  %v1749_v54 = vsel %vm1687_vm0, %v446_v19, %v4280_v49  ;;  %2888 = vmatpush.bf16.msra.mxu1 %v3598_v14 }
 0x1d5   : > { %v2305_v32 = vmax.f32 %v2200_v20, 0.0  ;;  %v1811_v41 = vsel %vm1750_vm1, %v1748_v58, %v4284_v52  ;;  %v1812_v10 = vsel %vm1750_vm1, %v1749_v54, %v4285_v51  ;;  %v2589_v52 = vld [vmem:[#allocation3 + $0x8] sm:$0xff] }
 0x1d6   : > { %2381 = vst.msk [vmem:[#allocation2 + $0x178] sm:$0xff] %vm1750_vm1, %v2319_v31  ;;  %v2164_v34 = vpop.f32.mrf.mxu0  ;;  %v1874_v57 = vsel %vm1813_vm2, %v1811_v41, %v4289_v7  ;;  %v1875_v12 = vsel %vm1813_vm2, %v1812_v10, %v4290_v6  ;;  %v2610_v7 = vld [vmem:[#allocation3 + $0x31] sm:$0xff] }
 0x1d7   : > { %2367 = vst.msk [vmem:[#allocation2 + $0x108] sm:$0xff] %vm1750_vm1, %v2305_v32  ;;  %v2165_v39 = vadd.f32 %v5475_v45, %v2164_v34  ;;  %v2622_v32 = vld [vmem:[#allocation3 + $0x12] sm:$0xff] }
 0x1d9   : > { %v2291_v29 = vmax.f32 %v2165_v39, 0.0  ;;  %v4293_v8 = vpop.permute.xlu0 %4292 }
 0x1da   : > { %v4295_v43 = vunpack.i.h.bf16 %v4293_v8  ;;  %v4294_v38 = vunpack.i.l.bf16 %v4293_v8 }
 0x1db   : > { %2353 = vst.msk [vmem:[#allocation2 + $0x98] sm:$0xff] %vm1750_vm1, %v2291_v29 }
 0x1dc   : > { %v1937_v3 = vsel %vm1876_vm3, %v1874_v57, %v4294_v38  ;;  %v1938_v26 = vsel %vm1876_vm3, %v1875_v12, %v4295_v43 }
 0x1dd   : > { %v2418_v47 = vld [vmem:[#allocation2 + $0x160] ss:$4 sm:$0xff]  ;;  %v2450_v48 = vld [vmem:[#allocation2 + $0x161] ss:$4 sm:$0xff]  ;;  %v2482_v1 = vld [vmem:[#allocation2 + $0x162] ss:$4 sm:$0xff]  ;;  %v1969_v0 = vpack.c.bf16 %v1938_v26, %v1937_v3 }
 0x1de   : > { %v2514_v50 = vld [vmem:[#allocation2 + $0x163] ss:$4 sm:$0xff]  ;;  %v2534_v63 = vmax.f32 %v2418_v47, %v2450_v48 }
 0x1df   : > { %v2550_v11 = vmax.f32 %v2482_v1, %v2514_v50  ;;  %3481 = vmatmul.msk.bf16.gmra.mxu3 %vm2014_vm4, %v1968_v13 }
 0x1e1   : > { %v2566_v56 = vmax.f32 %v2534_v63, %v2550_v11 }
 0x1e2   : > { %v2404_v24 = vld [vmem:[#allocation2 + $0x80] ss:$4 sm:$0xff]  ;;  %v2436_v59 = vld [vmem:[#allocation2 + $0x81] ss:$4 sm:$0xff]  ;;  %v2468_v61 = vld [vmem:[#allocation2 + $0x82] ss:$4 sm:$0xff] }
 0x1e3   : > { %2582 = vst.msk [vmem:[#allocation3 + $0x58] sm:$0xff] %vm1750_vm1, %v2566_v56  ;;  %v2500_v62 = vld [vmem:[#allocation2 + $0x83] ss:$4 sm:$0xff]  ;;  %v2527_v2 = vmax.f32 %v2404_v24, %v2436_v59 }
 0x1e4   : > { %v2543_v9 = vmax.f32 %v2468_v61, %v2500_v62 }
 0x1e6   : > { %v2559_v60 = vmax.f32 %v2527_v2, %v2543_v9 }
 0x1e8   : > { %2575 = vst.msk [vmem:[#allocation3 + $0x20] sm:$0xff] %vm1750_vm1, %v2559_v60 }
 0x1e9   : > { %v2237_v21 = vpop.f32.mrf.mxu3 }
 0x1ea   : > { %v2202_v15 = vpop.f32.mrf.mxu2  ;;  %v2238_v18 = vadd.f32 %v5475_v45, %v2237_v21 }
 0x1eb   : > { %v2203_v20 = vadd.f32 %v5475_v45, %v2202_v15 }
 0x1ec   : > { %v2320_v22 = vmax.f32 %v2238_v18, 0.0  ;;  %v4303_v63 = vpop.permute.xlu2 %4302 }
 0x1ed   : > { %v2306_v53 = vmax.f32 %v2203_v20, 0.0  ;;  %v4305_v36 = vunpack.i.h.bf16 %v4303_v63  ;;  %v4304_v51 = vunpack.i.l.bf16 %v4303_v63 }
 0x1ee   : > { %2382 = vst.msk [vmem:[#allocation2 + $0x180] sm:$0xff] %vm1750_vm1, %v2320_v22  ;;  %v2167_v25 = vpop.f32.mrf.mxu0 }
 0x1ef   : > { %2368 = vst.msk [vmem:[#allocation2 + $0x110] sm:$0xff] %vm1750_vm1, %v2306_v53  ;;  %v2168_v30 = vadd.f32 %v5475_v45, %v2167_v25  ;;  %3482 = vmatmul.msk.bf16.gmra.mxu3 %vm2014_vm4, %v1969_v0  ;;  %v2607_v31 = vld [vmem:[#allocation3 + $0x19] sm:$0xff] }
 0x1f0   : > { %v2623_v33 = vld [vmem:[#allocation3 + $0x1a] sm:$0xff]  ;;  %v4306_v23 = vpack.i.bf16 %v2607_v31, %v2606_v28 }
 0x1f1   : > { %v4311_v34 = vpack.i.bf16 %v2623_v33, %v2622_v32  ;;  %v2292_v35 = vmax.f32 %v2168_v30, 0.0  ;;  %v2239_v37 = vpop.f32.mrf.mxu3 }
 0x1f2   : > { %4307 = vrot.lane.b32.xlu0 %v4306_v23, %s4472_s24  ;;  %v2204_v39 = vpop.f32.mrf.mxu2  ;;  %v2240_v40 = vadd.f32 %v5475_v45, %v2239_v37 }
 0x1f3   : > { %4312 = vrot.lane.b32.xlu1 %v4311_v34, %s4471_s22  ;;  %2354 = vst.msk [vmem:[#allocation2 + $0xa0] sm:$0xff] %vm1750_vm1, %v2292_v35  ;;  %v2205_v29 = vadd.f32 %v5475_v45, %v2204_v39 }
 0x1f4   : > { %v2321_v44 = vmax.f32 %v2240_v40, 0.0 }
 0x1f5   : > { %v2307_v42 = vmax.f32 %v2205_v29, 0.0 }
 0x1f6   : > { %2383 = vst.msk [vmem:[#allocation2 + $0x188] sm:$0xff] %vm1750_vm1, %v2321_v44  ;;  %v2169_v16 = vpop.f32.mrf.mxu0 }
 0x1f7   : > { %2369 = vst.msk [vmem:[#allocation2 + $0x118] sm:$0xff] %vm1750_vm1, %v2307_v42  ;;  %v2170_v46 = vadd.f32 %v5475_v45, %v2169_v16 }
 0x1f9   : > { %v2293_v47 = vmax.f32 %v2170_v46, 0.0 }
 0x1fb   : > { %2355 = vst.msk [vmem:[#allocation2 + $0xa8] sm:$0xff] %vm1750_vm1, %v2293_v47 }
 0x1fe   : > { %v2412_v48 = vld [vmem:[#allocation2 + $0x100] ss:$4 sm:$0xff]  ;;  %v2444_v1 = vld [vmem:[#allocation2 + $0x101] ss:$4 sm:$0xff]  ;;  %v2476_v49 = vld [vmem:[#allocation2 + $0x102] ss:$4 sm:$0xff] }
 0x1ff   : > { %v2508_v5 = vld [vmem:[#allocation2 + $0x103] ss:$4 sm:$0xff]  ;;  %v2531_v13 = vmax.f32 %v2412_v48, %v2444_v1 }
 0x200   : > { %v2547_v27 = vmax.f32 %v2476_v49, %v2508_v5 }
 0x202   : > { %v2563_v50 = vmax.f32 %v2531_v13, %v2547_v27 }
 0x204   : > { %2579 = vst.msk [vmem:[#allocation3 + $0x40] sm:$0xff] %vm1750_vm1, %v2563_v50 }
 0x205   : > { %v4298_v17 = vpop.permute.xlu1 %4297 }
 0x206   : > { %v4300_v19 = vunpack.i.h.bf16 %v4298_v17  ;;  %v4299_v11 = vunpack.i.l.bf16 %v4298_v17 }
 0x208   : > { %v2765_v56 = vsel %vm1750_vm1, %v2589_v52, %v4300_v19  ;;  %v2764_v58 = vsel %vm1750_vm1, %v2588_v55, %v4299_v11 }
 0x209   : > { %v2780_v54 = vsel %vm1876_vm3, %v2764_v58, %v4304_v51  ;;  %v2781_v24 = vsel %vm1876_vm3, %v2765_v56, %v4305_v36  ;;  %v2242_v59 = vpop.f32.mrf.mxu3  ;;  %v2626_v36 = vld [vmem:[#allocation3 + $0x32] sm:$0xff] }
 0x20a   : > { %v2796_v61 = vpack.c.bf16 %v2781_v24, %v2780_v54  ;;  %v2207_v62 = vpop.f32.mrf.mxu2  ;;  %v2243_v2 = vadd.f32 %v5475_v45, %v2242_v59 }
 0x20b   : > { %v2208_v6 = vadd.f32 %v5475_v45, %v2207_v62  ;;  %v2611_v8 = vld [vmem:[#allocation3 + $0x39] sm:$0xff] }
 0x20c   : > { %3507 = vmatmul.msk.bf16.vlgmr.msra.gmra.mxu1 %vm2856_vm5, %v2796_v61  ;;  %v2322_v4 = vmax.f32 %v2243_v2, 0.0  ;;  %v4326_v9 = vpack.i.bf16 %v2611_v8, %v2610_v7  ;;  %v2627_v11 = vld [vmem:[#allocation3 + $0x3a] sm:$0xff] }
 0x20d   : > { %v2308_v41 = vmax.f32 %v2208_v6, 0.0  ;;  %v4331_v51 = vpack.i.bf16 %v2627_v11, %v2626_v36  ;;  %v2590_v11 = vld [vmem:[#allocation3 + $0x10] sm:$0xff] }
 0x20e   : > { %2384 = vst.msk [vmem:[#allocation2 + $0x190] sm:$0xff] %vm1750_vm1, %v2322_v4  ;;  %4327 = vrot.lane.b32.xlu1 %v4326_v9, %s4472_s24  ;;  %v2172_v10 = vpop.f32.mrf.mxu0 }
 0x20f   : > { %2370 = vst.msk [vmem:[#allocation2 + $0x120] sm:$0xff] %vm1750_vm1, %v2308_v41  ;;  %v2173_v60 = vadd.f32 %v5475_v45, %v2172_v10 }
 0x211   : > { %v2294_v43 = vmax.f32 %v2173_v60, 0.0  ;;  %v2244_v38 = vpop.f32.mrf.mxu3 }
 0x212   : > { %v2209_v57 = vpop.f32.mrf.mxu2  ;;  %v2245_v12 = vadd.f32 %v5475_v45, %v2244_v38 }
 0x213   : > { %2356 = vst.msk [vmem:[#allocation2 + $0xb0] sm:$0xff] %vm1750_vm1, %v2294_v43  ;;  %v2210_v14 = vadd.f32 %v5475_v45, %v2209_v57 }
 0x214   : > { %v2323_v21 = vmax.f32 %v2245_v12, 0.0 }
 0x215   : > { %v2309_v15 = vmax.f32 %v2210_v14, 0.0 }
 0x216   : > { %2385 = vst.msk [vmem:[#allocation2 + $0x198] sm:$0xff] %vm1750_vm1, %v2323_v21  ;;  %v2174_v18 = vpop.f32.mrf.mxu0 }
 0x217   : > { %2371 = vst.msk [vmem:[#allocation2 + $0x128] sm:$0xff] %vm1750_vm1, %v2309_v15  ;;  %v2175_v3 = vadd.f32 %v5475_v45, %v2174_v18 }
 0x219   : > { %v2295_v26 = vmax.f32 %v2175_v3, 0.0 }
 0x21b   : > { %2357 = vst.msk [vmem:[#allocation2 + $0xb8] sm:$0xff] %vm1750_vm1, %v2295_v26 }
 0x21d   : > { %v2420_v20 = vld [vmem:[#allocation2 + $0x180] ss:$4 sm:$0xff]  ;;  %v2452_v22 = vld [vmem:[#allocation2 + $0x181] ss:$4 sm:$0xff]  ;;  %v2484_v53 = vld [vmem:[#allocation2 + $0x182] ss:$4 sm:$0xff] }
 0x21e   : > { %v2516_v0 = vld [vmem:[#allocation2 + $0x183] ss:$4 sm:$0xff]  ;;  %v2535_v25 = vmax.f32 %v2420_v20, %v2452_v22 }
 0x21f   : > { %v2551_v28 = vmax.f32 %v2484_v53, %v2516_v0 }
 0x221   : > { %v2567_v30 = vmax.f32 %v2535_v25, %v2551_v28 }
 0x222   : > { %v2406_v31 = vld [vmem:[#allocation2 + $0xa0] ss:$4 sm:$0xff]  ;;  %v2438_v32 = vld [vmem:[#allocation2 + $0xa1] ss:$4 sm:$0xff]  ;;  %v2470_v33 = vld [vmem:[#allocation2 + $0xa2] ss:$4 sm:$0xff] }
 0x223   : > { %2583 = vst.msk [vmem:[#allocation3 + $0x60] sm:$0xff] %vm1750_vm1, %v2567_v30  ;;  %v2502_v23 = vld [vmem:[#allocation2 + $0xa3] ss:$4 sm:$0xff]  ;;  %v2528_v34 = vmax.f32 %v2406_v31, %v2438_v32 }
 0x224   : > { %v2544_v35 = vmax.f32 %v2470_v33, %v2502_v23 }
 0x226   : > { %v2560_v37 = vmax.f32 %v2528_v34, %v2544_v35 }
 0x228   : > { %2576 = vst.msk [vmem:[#allocation3 + $0x28] sm:$0xff] %vm1750_vm1, %v2560_v37 }
 0x229   : > { %v2247_v39 = vpop.f32.mrf.mxu3 }
 0x22a   : > { %v2212_v40 = vpop.f32.mrf.mxu2  ;;  %v2248_v29 = vadd.f32 %v5475_v45, %v2247_v39  ;;  %v2615_v34 = vld [vmem:[#allocation3 + $0x59] sm:$0xff] }
 0x22b   : > { %v2213_v44 = vadd.f32 %v5475_v45, %v2212_v40 }
 0x22c   : > { %v2324_v42 = vmax.f32 %v2248_v29, 0.0 }
 0x22d   : > { %v2310_v16 = vmax.f32 %v2213_v44, 0.0 }
 0x22e   : > { %2386 = vst.msk [vmem:[#allocation2 + $0x1a0] sm:$0xff] %vm1750_vm1, %v2324_v42 }
 0x22f   : > { %2372 = vst.msk [vmem:[#allocation2 + $0x130] sm:$0xff] %vm1750_vm1, %v2310_v16  ;;  %v2624_v46 = vld [vmem:[#allocation3 + $0x22] sm:$0xff]  ;;  %v2625_v47 = vld [vmem:[#allocation3 + $0x2a] sm:$0xff] }
 0x230   : > { %v2608_v48 = vld [vmem:[#allocation3 + $0x21] sm:$0xff]  ;;  %v4321_v1 = vpack.i.bf16 %v2625_v47, %v2624_v46  ;;  %v2609_v49 = vld [vmem:[#allocation3 + $0x29] sm:$0xff] }
 0x231   : > { %v4316_v5 = vpack.i.bf16 %v2609_v49, %v2608_v48  ;;  %v2249_v13 = vpop.f32.mrf.mxu3 }
 0x232   : > { %4322 = vrot.lane.b32.xlu0 %v4321_v1, %s4471_s22  ;;  %v2214_v27 = vpop.f32.mrf.mxu2  ;;  %v2250_v50 = vadd.f32 %v5475_v45, %v2249_v13  ;;  %v2631_v1 = vld [vmem:[#allocation3 + $0x5a] sm:$0xff] }
 0x233   : > { %4317 = vrot.lane.b32.xlu2 %v4316_v5, %s4472_s24  ;;  %v2215_v63 = vadd.f32 %v5475_v45, %v2214_v27 }
 0x234   : > { %v2325_v17 = vmax.f32 %v2250_v50, 0.0 }
 0x235   : > { %v2311_v19 = vmax.f32 %v2215_v63, 0.0 }
 0x236   : > { %2387 = vst.msk [vmem:[#allocation2 + $0x1a8] sm:$0xff] %vm1750_vm1, %v2325_v17 }
 0x237   : > { %2373 = vst.msk [vmem:[#allocation2 + $0x138] sm:$0xff] %vm1750_vm1, %v2311_v19  ;;  %v2591_v19 = vld [vmem:[#allocation3 + $0x18] sm:$0xff] }
 0x23b   : > { %4332 = vrot.lane.b32.xlu2 %v4331_v51, %s4471_s22  ;;  %v2217_v52 = vpop.f32.mrf.mxu2 }
 0x23c   : > { %v2218_v55 = vadd.f32 %v5475_v45, %v2217_v52 }
 0x23e   : > { %v2414_v56 = vld [vmem:[#allocation2 + $0x120] ss:$4 sm:$0xff]  ;;  %v2446_v58 = vld [vmem:[#allocation2 + $0x121] ss:$4 sm:$0xff]  ;;  %v2478_v54 = vld [vmem:[#allocation2 + $0x122] ss:$4 sm:$0xff] }
 0x23f   : > { %v2510_v24 = vld [vmem:[#allocation2 + $0x123] ss:$4 sm:$0xff]  ;;  %v2532_v59 = vmax.f32 %v2414_v56, %v2446_v58  ;;  %v2312_v61 = vmax.f32 %v2218_v55, 0.0 }
 0x240   : > { %v2548_v62 = vmax.f32 %v2478_v54, %v2510_v24 }
 0x241   : > { %2374 = vst.msk [vmem:[#allocation2 + $0x140] sm:$0xff] %vm1750_vm1, %v2312_v61 }
 0x242   : > { %v2564_v2 = vmax.f32 %v2532_v59, %v2548_v62  ;;  %v2252_v6 = vpop.f32.mrf.mxu3 }
 0x243   : > { %v2253_v7 = vadd.f32 %v5475_v45, %v2252_v6  ;;  %v2219_v8 = vpop.f32.mrf.mxu2 }
 0x244   : > { %2580 = vst.msk [vmem:[#allocation3 + $0x48] sm:$0xff] %vm1750_vm1, %v2564_v2  ;;  %v2220_v4 = vadd.f32 %v5475_v45, %v2219_v8 }
 0x245   : > { %v2326_v9 = vmax.f32 %v2253_v7, 0.0 }
 0x246   : > { %v2313_v41 = vmax.f32 %v2220_v4, 0.0 }
 0x247   : > { %2388 = vst.msk [vmem:[#allocation2 + $0x1b0] sm:$0xff] %vm1750_vm1, %v2326_v9 }
 0x248   : > { %2375 = vst.msk [vmem:[#allocation2 + $0x148] sm:$0xff] %vm1750_vm1, %v2313_v41 }
 0x24a   : > { %v2254_v10 = vpop.f32.mrf.mxu3 }
 0x24b   : > { %v2255_v60 = vadd.f32 %v5475_v45, %v2254_v10  ;;  %v2612_v23 = vld [vmem:[#allocation3 + $0x41] sm:$0xff] }
 0x24c   : > { %v2628_v35 = vld [vmem:[#allocation3 + $0x42] sm:$0xff] }
 0x24d   : > { %v2327_v43 = vmax.f32 %v2255_v60, 0.0 }
 0x24f   : > { %v2416_v38 = vld [vmem:[#allocation2 + $0x140] ss:$4 sm:$0xff]  ;;  %v2448_v57 = vld [vmem:[#allocation2 + $0x141] ss:$4 sm:$0xff]  ;;  %v2480_v12 = vld [vmem:[#allocation2 + $0x142] ss:$4 sm:$0xff] }
 0x250   : > { %v2512_v14 = vld [vmem:[#allocation2 + $0x143] ss:$4 sm:$0xff]  ;;  %v2533_v21 = vmax.f32 %v2416_v38, %v2448_v57  ;;  %2389 = vst.msk [vmem:[#allocation2 + $0x1b8] sm:$0xff] %vm1750_vm1, %v2327_v43 }
 0x251   : > { %v2549_v15 = vmax.f32 %v2480_v12, %v2512_v14 }
 0x252   : > { %v2257_v18 = vpop.f32.mrf.mxu3 }
 0x253   : > { %v2565_v3 = vmax.f32 %v2533_v21, %v2549_v15  ;;  %v2258_v26 = vadd.f32 %v5475_v45, %v2257_v18 }
 0x255   : > { %2581 = vst.msk [vmem:[#allocation3 + $0x50] sm:$0xff] %vm1750_vm1, %v2565_v3  ;;  %v2328_v20 = vmax.f32 %v2258_v26, 0.0  ;;  %v5694_v3 = vld [vmem:[%s5907_s4] ss:$0 sm:$0xff] }
 0x257   : > { %v2422_v22 = vld [vmem:[#allocation2 + $0x1a0] ss:$4 sm:$0xff]  ;;  %v2454_v53 = vld [vmem:[#allocation2 + $0x1a1] ss:$4 sm:$0xff]  ;;  %v2486_v0 = vld [vmem:[#allocation2 + $0x1a2] ss:$4 sm:$0xff] }
 0x258   : > { %v2518_v25 = vld [vmem:[#allocation2 + $0x1a3] ss:$4 sm:$0xff]  ;;  %v2536_v28 = vmax.f32 %v2422_v22, %v2454_v53  ;;  %2390 = vst.msk [vmem:[#allocation2 + $0x1c0] sm:$0xff] %vm1750_vm1, %v2328_v20 }
 0x259   : > { %v2552_v30 = vmax.f32 %v2486_v0, %v2518_v25 }
 0x25a   : > { %v2259_v31 = vpop.f32.mrf.mxu3 }
 0x25b   : > { %v2568_v32 = vmax.f32 %v2536_v28, %v2552_v30  ;;  %v2260_v33 = vadd.f32 %v5475_v45, %v2259_v31 }
 0x25c   : > { %v2613_v37 = vld [vmem:[#allocation3 + $0x49] sm:$0xff]  ;;  %v2614_v39 = vld [vmem:[#allocation3 + $0x51] sm:$0xff] }
 0x25d   : > { %v2629_v40 = vld [vmem:[#allocation3 + $0x4a] sm:$0xff]  ;;  %2584 = vst.msk [vmem:[#allocation3 + $0x68] sm:$0xff] %vm1750_vm1, %v2568_v32  ;;  %v2329_v29 = vmax.f32 %v2260_v33, 0.0  ;;  %v4336_v44 = vpack.i.bf16 %v2613_v37, %v2612_v23  ;;  %v4346_v42 = vpack.i.bf16 %v2615_v34, %v2614_v39  ;;  %v2630_v46 = vld [vmem:[#allocation3 + $0x52] sm:$0xff] }
 0x25e   : > { %v4341_v16 = vpack.i.bf16 %v2629_v40, %v2628_v35  ;;  %v4351_v13 = vpack.i.bf16 %v2631_v1, %v2630_v46 }
 0x25f   : > { %2391 = vst.msk [vmem:[#allocation2 + $0x1c8] sm:$0xff] %vm1750_vm1, %v2329_v29  ;;  %4337 = vrot.lane.b32.xlu0 %v4336_v44, %s4472_s24  ;;  %4347 = vrot.lane.b32.xlu2 %v4346_v42, %s4472_s24 }
 0x260   : > { %4342 = vrot.lane.b32.xlu1 %v4341_v16, %s4471_s22 }
 0x262   : > { %v2262_v47 = vpop.f32.mrf.mxu3 }
 0x263   : > { %v2263_v48 = vadd.f32 %v5475_v45, %v2262_v47  ;;  %v2592_v47 = vld [vmem:[#allocation3 + $0x20] sm:$0xff] }
 0x264   : > { %v4308_v49 = vpop.permute.xlu0 %4307  ;;  %v2632_v57 = vld [vmem:[#allocation3 + $0x62] sm:$0xff] }
 0x265   : > { %v4313_v5 = vpop.permute.xlu1 %4312  ;;  %v2330_v27 = vmax.f32 %v2263_v48, 0.0  ;;  %v4310_v50 = vunpack.i.h.bf16 %v4308_v49  ;;  %v4309_v63 = vunpack.i.l.bf16 %v4308_v49  ;;  %v2616_v14 = vld [vmem:[#allocation3 + $0x61] sm:$0xff] }
 0x266   : > { %v4315_v17 = vunpack.i.h.bf16 %v4313_v5  ;;  %v4314_v36 = vunpack.i.l.bf16 %v4313_v5  ;;  %v2593_v48 = vld [vmem:[#allocation3 + $0x28] sm:$0xff] }
 0x267   : > { %2392 = vst.msk [vmem:[#allocation2 + $0x1d0] sm:$0xff] %vm1750_vm1, %v2330_v27  ;;  %v2767_v51 = vsel %vm1750_vm1, %v2591_v19, %v4310_v50  ;;  %v2766_v52 = vsel %vm1750_vm1, %v2590_v11, %v4309_v63  ;;  %4352 = vrot.lane.b32.xlu0 %v4351_v13, %s4471_s22 }
 0x268   : > { %v2782_v55 = vsel %vm1876_vm3, %v2766_v52, %v4314_v36  ;;  %v2783_v56 = vsel %vm1876_vm3, %v2767_v51, %v4315_v17 }
 0x269   : > { %v2797_v58 = vpack.c.bf16 %v2783_v56, %v2782_v55  ;;  %v2594_v55 = vld [vmem:[#allocation3 + $0x30] sm:$0xff]  ;;  %v2595_v56 = vld [vmem:[#allocation3 + $0x38] sm:$0xff] }
 0x26a   : > { %v2264_v54 = vpop.f32.mrf.mxu3 }
 0x26b   : > { %v2265_v24 = vadd.f32 %v5475_v45, %v2264_v54  ;;  %3508 = vmatmul.msk.bf16.gmra.mxu1 %vm2856_vm5, %v2797_v58 }
 0x26d   : > { %v2331_v59 = vmax.f32 %v2265_v24, 0.0 }
 0x26f   : > { %2393 = vst.msk [vmem:[#allocation2 + $0x1d8] sm:$0xff] %vm1750_vm1, %v2331_v59 }
 0x272   : > { %v2267_v61 = vpop.f32.mrf.mxu3 }
 0x273   : > { %v2268_v62 = vadd.f32 %v5475_v45, %v2267_v61 }
 0x275   : > { %v2332_v2 = vmax.f32 %v2268_v62, 0.0 }
 0x276   : > { %v2424_v6 = vld [vmem:[#allocation2 + $0x1c0] ss:$4 sm:$0xff]  ;;  %v2456_v7 = vld [vmem:[#allocation2 + $0x1c1] ss:$4 sm:$0xff]  ;;  %v2488_v8 = vld [vmem:[#allocation2 + $0x1c2] ss:$4 sm:$0xff] }
 0x277   : > { %v2520_v4 = vld [vmem:[#allocation2 + $0x1c3] ss:$4 sm:$0xff]  ;;  %v2537_v9 = vmax.f32 %v2424_v6, %v2456_v7  ;;  %2394 = vst.msk [vmem:[#allocation2 + $0x1e0] sm:$0xff] %vm1750_vm1, %v2332_v2 }
 0x278   : > { %v2553_v41 = vmax.f32 %v2488_v8, %v2520_v4  ;;  %v2596_v8 = vld [vmem:[#allocation3 + $0x40] sm:$0xff]  ;;  %v2597_v4 = vld [vmem:[#allocation3 + $0x48] sm:$0xff] }
 0x27a   : > { %v2569_v10 = vmax.f32 %v2537_v9, %v2553_v41  ;;  %v2269_v60 = vpop.f32.mrf.mxu3 }
 0x27b   : > { %v2270_v43 = vadd.f32 %v5475_v45, %v2269_v60 }
 0x27c   : > { %2585 = vst.msk [vmem:[#allocation3 + $0x70] sm:$0xff] %vm1750_vm1, %v2569_v10 }
 0x27d   : > { %v2333_v38 = vmax.f32 %v2270_v43, 0.0 }
 0x27f   : > { %2395 = vst.msk [vmem:[#allocation2 + $0x1e8] sm:$0xff] %vm1750_vm1, %v2333_v38 }
 0x280   : > { %v4328_v17 = vpop.permute.xlu1 %4327 }
 0x281   : > { %v4330_v11 = vunpack.i.h.bf16 %v4328_v17  ;;  %v4329_v36 = vunpack.i.l.bf16 %v4328_v17 }
 0x283   : > { %v2633_v12 = vld [vmem:[#allocation3 + $0x6a] sm:$0xff]  ;;  %v2771_v58 = vsel %vm1750_vm1, %v2595_v56, %v4330_v11  ;;  %v2770_v54 = vsel %vm1750_vm1, %v2594_v55, %v4329_v36 }
 0x284   : > { %v2617_v21 = vld [vmem:[#allocation3 + $0x69] sm:$0xff]  ;;  %v4361_v15 = vpack.i.bf16 %v2633_v12, %v2632_v57 }
 0x285   : > { %v4356_v18 = vpack.i.bf16 %v2617_v21, %v2616_v14  ;;  %v2602_v55 = vld [vmem:[#allocation3 + $0x70] sm:$0xff] }
 0x286   : > { %v2426_v26 = vld [vmem:[#allocation2 + $0x1e0] ss:$4 sm:$0xf]  ;;  %v2458_v20 = vld [vmem:[#allocation2 + $0x1e1] ss:$4 sm:$0xf]  ;;  %4362 = vrot.lane.b32.xlu2 %v4361_v15, %s4471_s22 }
 0x287   : > { %4357 = vrot.lane.b32.xlu1 %v4356_v18, %s4472_s24  ;;  %v2490_v45 = vld [vmem:[#allocation2 + $0x1e2] ss:$4 sm:$0xf]  ;;  %v2522_v22 = vld [vmem:[#allocation2 + $0x1e3] ss:$4 sm:$0xf]  ;;  %v2538_v53 = vmax.f32 %v2426_v26, %v2458_v20 }
 0x288   : > { %v2554_v0 = vmax.f32 %v2490_v45, %v2522_v22  ;;  %v2598_v20 = vld [vmem:[#allocation3 + $0x50] sm:$0xff]  ;;  %v2599_v45 = vld [vmem:[#allocation3 + $0x58] sm:$0xff] }
 0x289   : > { %v2890_v25 = vpop.f32.mrf.mxu1 }
 0x28a   : > { %v2891_v28 = vadd.f32 %v5694_v3, %v2890_v25  ;;  %v2570_v30 = vmax.f32 %v2538_v53, %v2554_v0 }
 0x28c   : > { %v2930_v31 = vmax.f32 %v2891_v28, 0.0  ;;  %2587 = vst.msk [vmem:[#allocation3 + $0x78] sm:$0xf] %vm2586_vm6, %v2570_v30 }
 0x28d   : > { %v4318_v44 = vpop.permute.xlu2 %4317 }
 0x28e   : > { %2946 = vst.msk [vmem:[#allocation4] sm:$0xff] %vm1750_vm1, %v2930_v31  ;;  %v4320_v42 = vunpack.i.h.bf16 %v4318_v44  ;;  %v4319_v16 = vunpack.i.l.bf16 %v4318_v44 }
 0x290   : > { %v2769_v5 = vsel %vm1750_vm1, %v2593_v48, %v4320_v42  ;;  %v2768_v13 = vsel %vm1750_vm1, %v2592_v47, %v4319_v16  ;;  %v2600_v42 = vld [vmem:[#allocation3 + $0x60] sm:$0xff]  ;;  %v2601_v16 = vld [vmem:[#allocation3 + $0x68] sm:$0xff] }
 0x291   : > { %v2892_v32 = vpop.f32.mrf.mxu1 }
 0x292   : > { %v2893_v33 = vadd.f32 %v5694_v3, %v2892_v32 }
 0x293   : > { %v2618_v34 = vld [vmem:[#allocation3 + $0x71] sm:$0xff]  ;;  %v2619_v35 = vld [vmem:[#allocation3 + $0x79] sm:$0x3] }
 0x294   : > { %v2931_v23 = vmax.f32 %v2893_v33, 0.0  ;;  %v2634_v37 = vld [vmem:[#allocation3 + $0x72] sm:$0xff]  ;;  %v4366_v39 = vpack.i.bf16 %v2619_v35, %v2618_v34  ;;  %v2635_v40 = vld [vmem:[#allocation3 + $0x7a] sm:$0x3] }
 0x295   : > { %v4371_v29 = vpack.i.bf16 %v2635_v40, %v2634_v37  ;;  %v4333_v19 = vpop.permute.xlu2 %4332  ;;  %v2603_v56 = vld [vmem:[#allocation3 + $0x78] sm:$0x3] }
 0x296   : > { %2947 = vst.msk [vmem:[#allocation4 + $0x8] sm:$0xff] %vm1750_vm1, %v2931_v23  ;;  %4367 = vrot.lane.b32.xlu0 %v4366_v39, %s4472_s24  ;;  %v4335_v51 = vunpack.i.h.bf16 %v4333_v19  ;;  %v4334_v52 = vunpack.i.l.bf16 %v4333_v19 }
 0x297   : > { %4372 = vrot.lane.b32.xlu1 %v4371_v29, %s4471_s22 }
 0x298   : > { %v2786_v24 = vsel %vm1876_vm3, %v2770_v54, %v4334_v52  ;;  %v2787_v59 = vsel %vm1876_vm3, %v2771_v58, %v4335_v51 }
 0x299   : > { %v2799_v61 = vpack.c.bf16 %v2787_v59, %v2786_v24 }
 0x2a4   : > { %v4323_v46 = vpop.permute.xlu0 %4322 }
 0x2a5   : > { %v4325_v1 = vunpack.i.h.bf16 %v4323_v46  ;;  %v4324_v49 = vunpack.i.l.bf16 %v4323_v46 }
 0x2a7   : > { %v2784_v27 = vsel %vm1876_vm3, %v2768_v13, %v4324_v49  ;;  %v2785_v50 = vsel %vm1876_vm3, %v2769_v5, %v4325_v1 }
 0x2a8   : > { %v2798_v63 = vpack.c.bf16 %v2785_v50, %v2784_v27 }
 0x2aa   : > { %3509 = vmatmul.msk.bf16.gmra.mxu1 %vm2856_vm5, %v2798_v63 }
 0x2b9   : > { %v4348_v12 = vpop.permute.xlu2 %4347 }
 0x2ba   : > { %3510 = vmatmul.msk.bf16.gmra.mxu1 %vm2856_vm5, %v2799_v61  ;;  %v4350_v21 = vunpack.i.h.bf16 %v4348_v12  ;;  %v4349_v15 = vunpack.i.l.bf16 %v4348_v12 }
 0x2bc   : > { %v2775_v22 = vsel %vm1750_vm1, %v2599_v45, %v4350_v21  ;;  %v2774_v53 = vsel %vm1750_vm1, %v2598_v20, %v4349_v15 }
 0x2d1   : > { %v4338_v62 = vpop.permute.xlu0 %4337 }
 0x2d2   : > { %v4340_v2 = vunpack.i.h.bf16 %v4338_v62  ;;  %v4339_v6 = vunpack.i.l.bf16 %v4338_v62  ;;  %v4343_v7 = vpop.permute.xlu1 %4342 }
 0x2d3   : > { %v4345_v9 = vunpack.i.h.bf16 %v4343_v7  ;;  %v4344_v41 = vunpack.i.l.bf16 %v4343_v7 }
 0x2d4   : > { %v2773_v10 = vsel %vm1750_vm1, %v2597_v4, %v4340_v2  ;;  %v2772_v60 = vsel %vm1750_vm1, %v2596_v8, %v4339_v6 }
 0x2d5   : > { %v2788_v43 = vsel %vm1876_vm3, %v2772_v60, %v4344_v41  ;;  %v2789_v38 = vsel %vm1876_vm3, %v2773_v10, %v4345_v9 }
 0x2d6   : > { %v2800_v57 = vpack.c.bf16 %v2789_v38, %v2788_v43 }
 0x2d8   : > { %3511 = vmatmul.msk.bf16.gmra.mxu1 %vm2856_vm5, %v2800_v57 }
 0x2d9   : > { %v4353_v14 = vpop.permute.xlu0 %4352 }
 0x2da   : > { %v4355_v18 = vunpack.i.h.bf16 %v4353_v14  ;;  %v4354_v26 = vunpack.i.l.bf16 %v4353_v14 }
 0x2dc   : > { %v2790_v0 = vsel %vm1876_vm3, %v2774_v53, %v4354_v26  ;;  %v2791_v25 = vsel %vm1876_vm3, %v2775_v22, %v4355_v18 }
 0x2dd   : > { %v2801_v28 = vpack.c.bf16 %v2791_v25, %v2790_v0 }
 0x2e0   : > { %v4363_v35 = vpop.permute.xlu2 %4362 }
 0x2e1   : > { %v4365_v29 = vunpack.i.h.bf16 %v4363_v35  ;;  %v4364_v44 = vunpack.i.l.bf16 %v4363_v35 }
 0x2e8   : > { %v2895_v30 = vpop.f32.mrf.mxu1  ;;  %3512 = vmatmul.msk.bf16.gmra.mxu1 %vm2856_vm5, %v2801_v28 }
 0x2e9   : > { %v2896_v31 = vadd.f32 %v5694_v3, %v2895_v30 }
 0x2eb   : > { %v2932_v32 = vmax.f32 %v2896_v31, 0.0  ;;  %v3609_v31 = vld [vmem:[%s5908_s5 + $0x28] sm:$0xff] }
 0x2ec   : > { %3125 = vmatpush.bf16.msrb.mxu2 %v3609_v31 }
 0x2ed   : > { %2948 = vst.msk [vmem:[#allocation4 + $0x10] sm:$0xff] %vm1750_vm1, %v2932_v32 }
 0x2f0   : > { %v2897_v33 = vpop.f32.mrf.mxu1 }
 0x2f1   : > { %v2898_v23 = vadd.f32 %v5694_v3, %v2897_v33 }
 0x2f3   : > { %v2933_v34 = vmax.f32 %v2898_v23, 0.0 }
 0x2f5   : > { %2949 = vst.msk [vmem:[#allocation4 + $0x18] sm:$0xff] %vm1750_vm1, %v2933_v34 }
 0x2f9   : > { %v4358_v37 = vpop.permute.xlu1 %4357 }
 0x2fa   : > { %v4360_v39 = vunpack.i.h.bf16 %v4358_v37  ;;  %v4359_v40 = vunpack.i.l.bf16 %v4358_v37 }
 0x2fc   : > { %v2777_v46 = vsel %vm1750_vm1, %v2601_v16, %v4360_v39  ;;  %v2776_v47 = vsel %vm1750_vm1, %v2600_v42, %v4359_v40  ;;  %v2963_v48 = vld [vmem:[#allocation4] ss:$4 sm:$0xff]  ;;  %v2971_v1 = vld [vmem:[#allocation4 + $0x1] ss:$4 sm:$0xff]  ;;  %v2979_v49 = vld [vmem:[#allocation4 + $0x2] ss:$4 sm:$0xff] }
 0x2fd   : > { %v2792_v5 = vsel %vm1876_vm3, %v2776_v47, %v4364_v44  ;;  %v2793_v13 = vsel %vm1876_vm3, %v2777_v46, %v4365_v29  ;;  %v2987_v27 = vld [vmem:[#allocation4 + $0x3] ss:$4 sm:$0xff]  ;;  %v2994_v50 = vmax.f32 %v2963_v48, %v2971_v1 }
 0x2fe   : > { %v2802_v63 = vpack.c.bf16 %v2793_v13, %v2792_v5  ;;  %v2998_v17 = vmax.f32 %v2979_v49, %v2987_v27  ;;  %v3608_v47 = vld [vmem:[%s5908_s5 + $0x20] sm:$0xff] }
 0x2ff   : > { %3126 = vmatpush.bf16.msrb.mxu2 %v3608_v47 }
 0x300   : > { %3513 = vmatmul.msk.bf16.gmra.mxu1 %vm2856_vm5, %v2802_v63  ;;  %v3002_v19 = vmax.f32 %v2994_v50, %v2998_v17 }
 0x302   : > { %3006 = vst.msk [vmem:[#allocation5] sm:$0xff] %vm1750_vm1, %v3002_v19 }
 0x308   : > { %v4368_v11 = vpop.permute.xlu0 %4367 }
 0x309   : > { %v4370_v36 = vunpack.i.h.bf16 %v4368_v11  ;;  %v4369_v51 = vunpack.i.l.bf16 %v4368_v11  ;;  %v4373_v52 = vpop.permute.xlu1 %4372 }
 0x30a   : > { %v4375_v58 = vunpack.i.h.bf16 %v4373_v52  ;;  %v4374_v54 = vunpack.i.l.bf16 %v4373_v52  ;;  %v3606_v52 = vld [vmem:[%s5908_s5 + $0x10] sm:$0xff] }
 0x30b   : > { %v2779_v24 = vsel %vm1750_vm1, %v2603_v56, %v4370_v36  ;;  %v2778_v59 = vsel %vm1750_vm1, %v2602_v55, %v4369_v51  ;;  %v3607_v51 = vld [vmem:[%s5908_s5 + $0x18] sm:$0xff] }
 0x30c   : > { %v2794_v61 = vsel %vm1876_vm3, %v2778_v59, %v4374_v54  ;;  %v2795_v62 = vsel %vm1876_vm3, %v2779_v24, %v4375_v58  ;;  %3127 = vmatpush.bf16.msrb.mxu2 %v3607_v51  ;;  %v3605_v54 = vld [vmem:[%s5908_s5 + $0x8] sm:$0xff] }
 0x30d   : > { %v2803_v2 = vpack.c.bf16 %v2795_v62, %v2794_v61 }
 0x310   : > { %3514 = vmatmul.msk.bf16.gmra.mxu1 %vm2856_vm5, %v2803_v2  ;;  %3128 = vmatpush.bf16.msrb.mxu2 %v3606_v52 }
 0x314   : > { %3129 = vmatpush.bf16.msrb.mxu2 %v3605_v54 }
 0x327   : > { %v2900_v6 = vpop.f32.mrf.mxu1 }
 0x328   : > { %v2901_v7 = vadd.f32 %v5694_v3, %v2900_v6 }
 0x32a   : > { %v2934_v8 = vmax.f32 %v2901_v7, 0.0 }
 0x32c   : > { %2950 = vst.msk [vmem:[#allocation4 + $0x20] sm:$0xff] %vm1750_vm1, %v2934_v8 }
 0x32f   : > { %v2902_v4 = vpop.f32.mrf.mxu1 }
 0x330   : > { %v2903_v9 = vadd.f32 %v5694_v3, %v2902_v4 }
 0x332   : > { %v2935_v41 = vmax.f32 %v2903_v9, 0.0 }
 0x334   : > { %2951 = vst.msk [vmem:[#allocation4 + $0x28] sm:$0xff] %vm1750_vm1, %v2935_v41 }
 0x337   : > { %v2905_v10 = vpop.f32.mrf.mxu1 }
 0x338   : > { %v2906_v60 = vadd.f32 %v5694_v3, %v2905_v10 }
 0x33a   : > { %v2936_v43 = vmax.f32 %v2906_v60, 0.0 }
 0x33c   : > { %2952 = vst.msk [vmem:[#allocation4 + $0x30] sm:$0xff] %vm1750_vm1, %v2936_v43  ;;  %v3604_v43 = vld [vmem:[%s5908_s5] sm:$0xff] }
 0x33d   : > { %3130 = vmatpush.bf16.msrb.mxu2 %v3604_v43 }
 0x33f   : > { %v2907_v38 = vpop.f32.mrf.mxu1 }
 0x340   : > { %v2908_v57 = vadd.f32 %v5694_v3, %v2907_v38 }
 0x342   : > { %v2937_v12 = vmax.f32 %v2908_v57, 0.0 }
 0x344   : > { %2953 = vst.msk [vmem:[#allocation4 + $0x38] sm:$0xff] %vm1750_vm1, %v2937_v12 }
 0x34b   : > { %v2965_v14 = vld [vmem:[#allocation4 + $0x20] ss:$4 sm:$0xff]  ;;  %v2973_v21 = vld [vmem:[#allocation4 + $0x21] ss:$4 sm:$0xff]  ;;  %v2981_v15 = vld [vmem:[#allocation4 + $0x22] ss:$4 sm:$0xff] }
 0x34c   : > { %v2989_v18 = vld [vmem:[#allocation4 + $0x23] ss:$4 sm:$0xff]  ;;  %v2995_v26 = vmax.f32 %v2965_v14, %v2973_v21 }
 0x34d   : > { %v2999_v20 = vmax.f32 %v2981_v15, %v2989_v18  ;;  %v3011_v15 = vld [vmem:[#allocation5] sm:$0xff] }
 0x34f   : > { %v3003_v45 = vmax.f32 %v2995_v26, %v2999_v20 }
 0x351   : > { %3007 = vst.msk [vmem:[#allocation5 + $0x8] sm:$0xff] %vm1750_vm1, %v3003_v45 }
 0x355   : > { %v2910_v22 = vpop.f32.mrf.mxu1 }
 0x356   : > { %v2911_v53 = vadd.f32 %v5694_v3, %v2910_v22 }
 0x358   : > { %v2938_v0 = vmax.f32 %v2911_v53, 0.0  ;;  %v3019_v27 = vld [vmem:[#allocation5 + $0x2] sm:$0xff] }
 0x359   : > { %v3015_v63 = vld [vmem:[#allocation5 + $0x1] sm:$0xff] }
 0x35a   : > { %2954 = vst.msk [vmem:[#allocation4 + $0x40] sm:$0xff] %vm1750_vm1, %v2938_v0  ;;  %v3012_v21 = vld [vmem:[#allocation5 + $0x8] sm:$0xff] }
 0x35d   : > { %v2912_v25 = vpop.f32.mrf.mxu1 }
 0x35e   : > { %v2913_v28 = vadd.f32 %v5694_v3, %v2912_v25 }
 0x360   : > { %v2939_v30 = vmax.f32 %v2913_v28, 0.0 }
 0x362   : > { %2955 = vst.msk [vmem:[#allocation4 + $0x48] sm:$0xff] %vm1750_vm1, %v2939_v30 }
 0x365   : > { %v2915_v32 = vpop.f32.mrf.mxu1 }
 0x366   : > { %v2916_v33 = vadd.f32 %v5694_v3, %v2915_v32 }
 0x368   : > { %v2940_v23 = vmax.f32 %v2916_v33, 0.0 }
 0x36a   : > { %2956 = vst.msk [vmem:[#allocation4 + $0x50] sm:$0xff] %vm1750_vm1, %v2940_v23 }
 0x36d   : > { %v2917_v34 = vpop.f32.mrf.mxu1 }
 0x36e   : > { %v2918_v35 = vadd.f32 %v5694_v3, %v2917_v34 }
 0x370   : > { %v2941_v37 = vmax.f32 %v2918_v35, 0.0 }
 0x372   : > { %2957 = vst.msk [vmem:[#allocation4 + $0x58] sm:$0xff] %vm1750_vm1, %v2941_v37 }
 0x379   : > { %v2967_v39 = vld [vmem:[#allocation4 + $0x40] ss:$4 sm:$0xff]  ;;  %v2975_v40 = vld [vmem:[#allocation4 + $0x41] ss:$4 sm:$0xff]  ;;  %v2983_v29 = vld [vmem:[#allocation4 + $0x42] ss:$4 sm:$0xff] }
 0x37a   : > { %v2991_v44 = vld [vmem:[#allocation4 + $0x43] ss:$4 sm:$0xff]  ;;  %v2996_v42 = vmax.f32 %v2967_v39, %v2975_v40 }
 0x37b   : > { %v3000_v16 = vmax.f32 %v2983_v29, %v2991_v44  ;;  %v3617_v44 = vld [vmem:[%s5910_s7 + $0x38] sm:$0xff] }
 0x37c   : > { %3276 = vmatpush.bf16.msrb.mxu3 %v3617_v44 }
 0x37d   : > { %v2920_v46 = vpop.f32.mrf.mxu1  ;;  %v3004_v48 = vmax.f32 %v2996_v42, %v3000_v16  ;;  %v4398_v42 = vld [vmem:[%s5909_s6] ss:$0 sm:$0xff] }
 0x37e   : > { %v2921_v1 = vadd.f32 %v5694_v3, %v2920_v46 }
 0x37f   : > { %3008 = vst.msk [vmem:[#allocation5 + $0x10] sm:$0xff] %vm1750_vm1, %v3004_v48 }
 0x380   : > { %v2942_v49 = vmax.f32 %v2921_v1, 0.0 }
 0x382   : > { %2958 = vst.msk [vmem:[#allocation4 + $0x60] sm:$0xff] %vm1750_vm1, %v2942_v49 }
 0x385   : > { %v2922_v5 = vpop.f32.mrf.mxu1 }
 0x386   : > { %v2923_v13 = vadd.f32 %v5694_v3, %v2922_v5  ;;  %v3020_v50 = vld [vmem:[#allocation5 + $0xa] sm:$0xff]  ;;  %v3616_v5 = vld [vmem:[%s5910_s7 + $0x30] sm:$0xff] }
 0x387   : > { %v3016_v17 = vld [vmem:[#allocation5 + $0x9] sm:$0xff]  ;;  %v4381_v11 = vpack.i.bf16 %v3020_v50, %v3019_v27  ;;  %3277 = vmatpush.bf16.msrb.mxu3 %v3616_v5 }
 0x388   : > { %v2943_v19 = vmax.f32 %v2923_v13, 0.0  ;;  %v4376_v36 = vpack.i.bf16 %v3016_v17, %v3015_v63  ;;  %v3013_v34 = vld [vmem:[#allocation5 + $0x10] sm:$0xff]  ;;  %v3615_v13 = vld [vmem:[%s5910_s7 + $0x28] sm:$0xff] }
 0x389   : > { %4382 = vrot.lane.b32.xlu0 %v4381_v11, %s4471_s22  ;;  %v3614_v63 = vld [vmem:[%s5910_s7 + $0x20] sm:$0xff] }
 0x38a   : > { %2959 = vst.msk [vmem:[#allocation4 + $0x68] sm:$0xff] %vm1750_vm1, %v2943_v19  ;;  %4377 = vrot.lane.b32.xlu2 %v4376_v36, %s4472_s24  ;;  %v3613_v19 = vld [vmem:[%s5910_s7 + $0x18] sm:$0xff]  ;;  %v3612_v36 = vld [vmem:[%s5910_s7 + $0x10] sm:$0xff] }
 0x38b   : > { %3278 = vmatpush.bf16.msrb.mxu3 %v3615_v13 }
 0x38d   : > { %v2925_v55 = vpop.f32.mrf.mxu1 }
 0x38e   : > { %v2926_v56 = vadd.f32 %v5694_v3, %v2925_v55  ;;  %v3611_v55 = vld [vmem:[%s5910_s7 + $0x8] sm:$0xff] }
 0x38f   : > { %3279 = vmatpush.bf16.msrb.mxu3 %v3614_v63 }
 0x390   : > { %v2944_v58 = vmax.f32 %v2926_v56, 0.0  ;;  %v3610_v56 = vld [vmem:[%s5910_s7] sm:$0xff] }
 0x392   : > { %2960 = vst.msk [vmem:[#allocation4 + $0x70] sm:$0xff] %vm1750_vm1, %v2944_v58 }
 0x393   : > { %3280 = vmatpush.bf16.msrb.mxu3 %v3613_v19 }
 0x395   : > { %v2927_v24 = vpop.f32.mrf.mxu1 }
 0x397   : > { %3281 = vmatpush.bf16.msrb.mxu3 %v3612_v36 }
 0x399   : > { %v2969_v59 = vld [vmem:[#allocation4 + $0x60] ss:$4 sm:$0x3f]  ;;  %v2977_v61 = vld [vmem:[#allocation4 + $0x61] ss:$4 sm:$0x3f] }
 0x39a   : > { %v2985_v62 = vld [vmem:[#allocation4 + $0x62] ss:$4 sm:$0x3f]  ;;  %v2993_v2 = vld [vmem:[#allocation4 + $0x63] ss:$4 sm:$0x3f]  ;;  %v2997_v6 = vmax.f32 %v2969_v59, %v2977_v61 }
 0x39b   : > { %v3001_v7 = vmax.f32 %v2985_v62, %v2993_v2  ;;  %3282 = vmatpush.bf16.msrb.mxu3 %v3611_v55 }
 0x39d   : > { %v3005_v8 = vmax.f32 %v2997_v6, %v3001_v7  ;;  %v3621_v7 = vld [vmem:[%s5910_s7 + $0x58] sm:$0xff] }
 0x39f   : > { %3010 = vst.msk [vmem:[#allocation5 + $0x18] sm:$0x3f] %vm3009_vm7, %v3005_v8  ;;  %3283 = vmatpush.bf16.msrb.mxu3 %v3610_v56  ;;  %v3620_v8 = vld [vmem:[%s5910_s7 + $0x50] sm:$0xff] }
 0x3a3   : > { %3293 = vmatpush.bf16.msra.mxu3 %v3621_v7 }
 0x3a6   : > { %v3017_v3 = vld [vmem:[#allocation5 + $0x11] sm:$0xff]  ;;  %v3018_v4 = vld [vmem:[#allocation5 + $0x19] sm:$0xf] }
 0x3a7   : > { %v3021_v9 = vld [vmem:[#allocation5 + $0x12] sm:$0xff]  ;;  %v4386_v41 = vpack.i.bf16 %v3018_v4, %v3017_v3  ;;  %v3022_v10 = vld [vmem:[#allocation5 + $0x1a] sm:$0xf]  ;;  %3294 = vmatpush.bf16.msra.mxu3 %v3620_v8 }
 0x3a8   : > { %v4391_v60 = vpack.i.bf16 %v3022_v10, %v3021_v9  ;;  %v3014_v23 = vld [vmem:[#allocation5 + $0x18] sm:$0xf]  ;;  %v3618_v4 = vld [vmem:[%s5910_s7 + $0x40] sm:$0xff] }
 0x3a9   : > { %4387 = vrot.lane.b32.xlu1 %v4386_v41, %s4472_s24  ;;  %v3619_v3 = vld [vmem:[%s5910_s7 + $0x48] sm:$0xff] }
 0x3aa   : > { %4392 = vrot.lane.b32.xlu2 %v4391_v60, %s4471_s22 }
 0x3ab   : > { %3295 = vmatpush.bf16.msra.mxu3 %v3619_v3 }
 0x3af   : > { %3296 = vmatpush.bf16.msra.mxu3 %v3618_v4 }
 0x3e4   : > { %v4378_v38 = vpop.permute.xlu2 %4377 }
 0x3e5   : > { %v4380_v57 = vunpack.i.h.bf16 %v4378_v38  ;;  %v4379_v12 = vunpack.i.l.bf16 %v4378_v38 }
 0x3e7   : > { %v3056_v20 = vsel %vm1750_vm1, %v3012_v21, %v4380_v57  ;;  %v3055_v45 = vsel %vm1750_vm1, %v3011_v15, %v4379_v12  ;;  %v3320_v57 = vld [vmem:[%s5912_s9 + $0x38] sm:$0xff]  ;;  %v3319_v12 = vld [vmem:[%s5912_s9 + $0x30] sm:$0xff]  ;;  %v3317_v21 = vld [vmem:[%s5912_s9 + $0x20] sm:$0xff] }
 0x3e8   : > { %3333 = vmatpush.msra.mxu2 %v3320_v57  ;;  %v3316_v15 = vld [vmem:[%s5912_s9 + $0x18] sm:$0xff] }
 0x3ea   : > { %3334 = vmatpush.msra.mxu2 %v3319_v12 }
 0x3fb   : > { %v4383_v14 = vpop.permute.xlu0 %4382 }
 0x3fc   : > { %v4385_v18 = vunpack.i.h.bf16 %v4383_v14  ;;  %v4384_v26 = vunpack.i.l.bf16 %v4383_v14  ;;  %v3318_v14 = vld [vmem:[%s5912_s9 + $0x28] sm:$0xff] }
 0x3fd   : > { %3335 = vmatpush.msra.mxu2 %v3318_v14 }
 0x3fe   : > { %v3059_v22 = vsel %vm1876_vm3, %v3055_v45, %v4384_v26  ;;  %v3060_v53 = vsel %vm1876_vm3, %v3056_v20, %v4385_v18  ;;  %v3315_v18 = vld [vmem:[%s5912_s9 + $0x10] sm:$0xff]  ;;  %v3314_v26 = vld [vmem:[%s5912_s9 + $0x8] sm:$0xff]  ;;  %v3313_v20 = vld [vmem:[%s5912_s9] sm:$0xff] }
 0x3ff   : > { %v3063_v0 = vpack.c.bf16 %v3060_v53, %v3059_v22  ;;  %3336 = vmatpush.msra.mxu2 %v3317_v21  ;;  %v4399_v53 = vld [vmem:[%s5911_s8] ss:$0 sm:$0xff] }
 0x401   : > { %3539 = vmatmul.msk.bf16.vlgmr.msrb.gmra.mxu2 %vm2856_vm5, %v3063_v0 }
 0x402   : > { %3337 = vmatpush.msra.mxu2 %v3316_v15 }
 0x404   : > { %v4393_v25 = vpop.permute.xlu2 %4392  ;;  %3338 = vmatpush.msra.mxu2 %v3315_v18 }
 0x405   : > { %v4395_v32 = vunpack.i.h.bf16 %v4393_v25  ;;  %v4394_v33 = vunpack.i.l.bf16 %v4393_v25 }
 0x406   : > { %3339 = vmatpush.msra.mxu2 %v3314_v26 }
 0x408   : > { %3340 = vmatpush.msra.mxu2 %v3313_v20 }
 0x41b   : > { %v4388_v28 = vpop.permute.xlu1 %4387 }
 0x41c   : > { %v4390_v30 = vunpack.i.h.bf16 %v4388_v28  ;;  %v4389_v31 = vunpack.i.l.bf16 %v4388_v28 }
 0x41e   : > { %v3058_v35 = vsel %vm1750_vm1, %v3014_v23, %v4390_v30  ;;  %v3057_v37 = vsel %vm1750_vm1, %v3013_v34, %v4389_v31 }
 0x41f   : > { %v3061_v39 = vsel %vm1876_vm3, %v3057_v37, %v4394_v33  ;;  %v3062_v40 = vsel %vm1876_vm3, %v3058_v35, %v4395_v32 }
 0x420   : > { %v3064_v29 = vpack.c.bf16 %v3062_v40, %v3061_v39  ;;  %v3321_v40 = vld [vmem:[%s5913_s10] sm:$0x1] }
 0x422   : > { %3540 = vmatmul.msk.bf16.gmra.mxu2 %vm2856_vm5, %v3064_v29 }
 0x484   : > { %v3132_v16 = vpop.f32.mrf.mxu2 }
 0x485   : > { %v3133_v46 = vadd.f32 %v4398_v42, %v3132_v16 }
 0x487   : > { %v3142_v47 = vmax.f32 %v3133_v46, 0.0 }
 0x489   : > { %3146 = vst.msk [vmem:[#allocation6] sm:$0xff] %vm1876_vm3, %v3142_v47 }
 0x48c   : > { %v3134_v48 = vpop.f32.mrf.mxu2 }
 0x48d   : > { %v3135_v1 = vadd.f32 %v4398_v42, %v3134_v48 }
 0x48f   : > { %v3143_v49 = vmax.f32 %v3135_v1, 0.0 }
 0x491   : > { %3147 = vst.msk [vmem:[#allocation6 + $0x8] sm:$0xff] %vm1876_vm3, %v3143_v49 }
 0x4a5   : > { %v3137_v27 = vpop.f32.mrf.mxu2 }
 0x4a6   : > { %v3138_v50 = vadd.f32 %v4398_v42, %v3137_v27 }
 0x4a8   : > { %v3144_v17 = vmax.f32 %v3138_v50, 0.0 }
 0x4aa   : > { %3148 = vst.msk [vmem:[#allocation6 + $0x10] sm:$0xff] %vm1876_vm3, %v3144_v17 }
 0x4ad   : > { %v3139_v11 = vpop.f32.mrf.mxu2 }
 0x4ae   : > { %v3140_v51 = vadd.f32 %v4398_v42, %v3139_v11 }
 0x4b0   : > { %v3145_v52 = vmax.f32 %v3140_v51, 0.0 }
 0x4b2   : > { %3150 = vst.msk [vmem:[#allocation6 + $0x18] sm:$0xf] %vm3149_vm8, %v3145_v52 }
 0x4b9   : > { %v3151_v58 = vld [vmem:[#allocation6] ss:$4 sm:$0x7f]  ;;  %v3153_v54 = vld [vmem:[#allocation6 + $0x1] ss:$4 sm:$0x7f] }
 0x4ba   : > { %v3155_v24 = vld [vmem:[#allocation6 + $0x2] ss:$4 sm:$0x7f]  ;;  %v3157_v59 = vld [vmem:[#allocation6 + $0x3] ss:$4 sm:$0x7f]  ;;  %v3158_v61 = vmax.f32 %v3151_v58, %v3153_v54 }
 0x4bb   : > { %v3159_v62 = vmax.f32 %v3155_v24, %v3157_v59 }
 0x4bd   : > { %v3160_v2 = vmax.f32 %v3158_v61, %v3159_v62 }
 0x4bf   : > { %3162 = vst.msk [vmem:[#allocation7] sm:$0x7f] %vm3161_vm9, %v3160_v2 }
 0x4c6   : > { %v3164_v6 = vld [vmem:[#allocation7 + $0x1] sm:$0x1f] }
 0x4c7   : > { %3167 = vrot.lane.b32.xlu0 %v3164_v6, %s4471_s22  ;;  %v3163_v41 = vld [vmem:[#allocation7] sm:$0x1f]  ;;  %s377_s22 = sand.u32 1, %s4459_s18  }
 0x4c8   : > { %v3165_v43 = vld [vmem:[#allocation7 + $0x2] sm:$0x1f]  ;;  %s378_s25 = scalar_lea.vmem [#allocation9], %s377_s22  ;;  %s3360_s16 = scalar_lea.sflag [#allocation10], %s377_s22 }
 0x4c9   : > { %v3172_v38 = vpack.c.bf16 %v3165_v43, %v3165_v43  ;;  %s3370_s29 = sshll.u32 %s378_s25, 4  ;;  %s3371_s29 = int_to_ptr.vmem [resolvable:$true] %s3370_s29 }
 0x539   : > { %v3168_v9 = vpop.permute.xlu0 %3167 }
 0x53a   : > { %v3170_v10 = vsel %vm1876_vm3, %v3163_v41, %v3168_v9 }
 0x53b   : > { %v3171_v60 = vpack.c.bf16 %v3170_v10, %v3170_v10 }
 0x53d   : > { %3284 = vmatmul.bf16.vlgmr.msrb.gmra.mxu3 %v3171_v60 }
 0x54d   : > { %3589 = vmatmul.msk.bf16.vlgmr.msra.gmra.mxu3 %vm1876_vm3, %v3172_v38 }
 0x5c0   : > { %v3285_v45 = vpop.f32.mrf.mxu3 }
 0x5c1   : > { %v3286_v0 = vadd.f32 %v4399_v53, %v3285_v45 }
 0x5c8   : > { %v3287_v22 = vpop.f32.mrf.mxu3 }
 0x5d0   : > { %v3298_v25 = vpop.f32.mrf.mxu3 }
 0x5d1   : > { %v3299_v28 = vadd.f32 %v3298_v25, %v3286_v0 }
 0x5d3   : > { %v3302_v30 = vmax.f32 %v3299_v28, 0.0 }
 0x5d5   : > { %3304 = vst.msk [vmem:[#allocation8] sm:$0x1f] %vm3303_vm10, %v3302_v30 }
 0x5d8   : > { %v3300_v31 = vpop.f32.mrf.mxu3 }
 0x5dc   : > { %v3305_v32 = vld [vmem:[#allocation8] sm:$0x1]  ;;  %v3306_v33 = vld [vmem:[#allocation8 + $0x1] sm:$0x1]  ;;  %v3307_v23 = vld [vmem:[#allocation8 + $0x2] sm:$0x1] }
 0x5dd   : > { %v3308_v34 = vld [vmem:[#allocation8 + $0x3] sm:$0x1]  ;;  %v3309_v35 = vmax.f32 %v3305_v32, %v3306_v33 }
 0x5de   : > { %v3310_v37 = vmax.f32 %v3307_v23, %v3308_v34 }
 0x5e0   : > { %v3311_v39 = vmax.f32 %v3309_v35, %v3310_v37 }
 0x5e2   : > { %3590 = vmatmul.msk.f32.vlgmr.msra.gmra.mxu2 %vm1876_vm3, %v3311_v39 }
 0x665   : > { %v3342_v29 = vpop.f32.mrf.mxu2 }
 0x666   : > { %v3343_v44 = vadd.f32 %v3342_v29, %v3321_v40 }
 0x668   : > { %v3346_v42 = vsel %vm3345_vm11, %v3343_v44, -inf }
 0x669   : > { %3347 = vmax.xlane.f32.xlu1 %v3346_v42 }
 0x6dc   : > { %v3348_v16 = vpop.xlane.xlu1 %3347 }
 0x6dd   : > { %v3349_v46 = vsub.f32 %v3343_v44, %v3348_v16 }
 0x6df   : > { %v3350_v47 = vmul.f32 1.442695, %v3349_v46 }
 0x6e1   : > { %4400 = vpow2.f32 %v3350_v47 }
 0x6e7   : > { %v4401_v48 = vpop.eup %4400 }
 0x6e8   : > { %v3352_v1 = vsel %vm3345_vm11, %v4401_v48, 0.0 }
 0x6e9   : > { %3353 = vadd.xlane.f32.xlu2 %v3352_v1 }
 0x75c   : > { %v3354_v49 = vpop.xlane.xlu2 %3353 }
 0x75d   : > { %4402 = vlog2.f32 %v3354_v49 }
 0x763   : > { %v4403_v5 = vpop.eup %4402 }
 0x764   : > { %v3356_v13 = vmul.f32 0.6931472, %v4403_v5 }
 0x766   : > { %v3357_v27 = vsub.f32 %v3349_v46, %v3356_v13 }
 0x768   : > { %3358 = vst [vmem:[%s378_s25] sm:$0x1] %v3357_v27 }
 0x769   : > { %4432 = shalt.err (!%p4429_p3)
}
 0x76a   : > { %3633 = dma.vmem_to_hbm [thread:$0]  (%p4571_p5), %s3371_s29, 16, %s3373_s15, %s3360_s16  }
 0x76b PF: > { %p3639_p4 = scmp.ge.s32.totalorder %s4467_s20, 2  ;;  %s3384_s22 = sand.u32 1, %s4455_s17  }
 0x76c   : > { %s3385_s13 = scalar_lea.sflag [#allocation10], %s3384_s22 }
 0x76d   : > { %p3636_p7 = pnand %p3639_p4, %p4575_p6 }
 0x76f   : > { %p3637_p8 = pneg %p3636_p7 }
 0x771   : > { %4450 = dma.done.wait (%p3637_p8), %s3385_s13, 16  }
 0x772   : > { %4452 = vsyncadd (%p3637_p8), %s3385_s13, 4294967280  ;;  %p21_p9 = scmp.ge.s32.totalorder %s4558_s23, 4   ;;  %s5921_s17 = smov %s4459_s18 }
 0x773   : > { %s5922_s18 = smov %s4463_s19  ;;  %s5923_s19 = smov %s4569_s26 }
 0x774   : > { %s5924_s20 = smov %s4558_s23  ;;  %23 = sbr.rel (!%p21_p9) target bundleno = 6 (0x6), region = 180 }
 0x779   :  { %3390 = vsyncpa [#allocation10], 1 }
 0x77a   :  { %3392 = vsyncpa [#allocation10 + $0x1], 1 }

</bundles_post_ra>
